<compile_context>
chip_gen: v7x
topology: tpu7x:2x2x1
jax: 0.10.0
libtpu: 0.0.40
codegen_flags: <defaults>
</compile_context>

<pallas_src>
import functools
from typing import NamedTuple

import jax
import jax.numpy as jnp
from jax.experimental import pallas as pl
from jax.experimental.pallas import tpu as pltpu


class DDDMInput(NamedTuple):
    emb_content: jnp.ndarray   # (B, content_dim, T)
    emb_pitch: jnp.ndarray     # (B, pitch_dim, T)  (frame-wise pitch)
    mask: jnp.ndarray          # (B, 1, T)


# -----------------------------------------------------------------------------
# Fused Pallas kernel: emb convs + both Decoders (pre -> WaveNet -> proj).
# -----------------------------------------------------------------------------
def _wavenet_dec_kernel(inp_ref, w64_ref, w192_ref, bias_ref, o_ref, hs_ref, *,
                        n_layers, kernel_size, dilation_rate, hidden, gin,
                        cin_tot, out_dim, T, compute_dtype):
    f32 = jnp.float32
    cdt = compute_dtype
    H = hidden
    H2, H4 = 2 * H, 4 * H
    L, k = n_layers, kernel_size
    BT = inp_ref.shape[1]
    seg = BT // T                       # batch segments folded onto the lanes

    # static row offsets into the packed weight / bias slabs
    o_emb, o_pre = 0, H2
    o_cond = 2 * H2
    o_rs = o_cond + H4 * L
    o_proj = o_rs + H4 * L

    def mm(w, a):                       # MXU matmul, f32 accumulate
        return jnp.dot(w, a.astype(cdt), preferred_element_type=f32)

    def bias(ofs, n):
        return bias_ref[ofs:ofs + n, :]           # (n, 1) f32, lane-broadcast

    inp = inp_ref[...]                            # (2H, B*T) f32 activation slab
    m = inp[cin_tot + gin:cin_tot + gin + 1, :]   # (1, B*T) mask row
    inp_c = inp.astype(cdt)                       # single hoisted cast

    # ---- hoisted per-offset edge masks for the dilated-conv time shifts -----
    # Batch lives on the lane axis, so validity is computed per 128-lane
    # (per-batch) segment: local t = lane % T.
    t_loc = jax.lax.broadcasted_iota(jnp.int32, (1, T), 1)
    offs = sorted({j * (dilation_rate ** i) - (dilation_rate ** i) * (k - 1) // 2
                   for i in range(L) for j in range(k)} - {0})

    def _edge(off):
        e = ((t_loc + off >= 0) & (t_loc + off < T)).astype(f32)   # (1, T)
        return jnp.concatenate([e] * seg, axis=1) if seg > 1 else e

    edge = {off: _edge(off) for off in offs}

    def shift_t(x, off):
        """y[:, b*T + t] = x[:, b*T + t + off], zero outside each segment."""
        if off == 0:
            return x
        if abs(off) >= T:
            return jnp.zeros_like(x)
        return pltpu.roll(x, shift=(-off) % BT, axis=1) * edge[off]

    # ---- fused emb_c / emb_f0 1x1 convs; ReLU only on the filter half -------
    e = mm(w64_ref[o_emb:o_emb + H2, :], inp_c) + bias(o_emb, H2)   # (2H, BT)
    row = jax.lax.broadcasted_iota(jnp.int32, (H2, 1), 0)
    # -finfo.min floor == identity for the source rows; exact while this stays f32
    relu_floor = jnp.where(row < H, 0.0, jnp.finfo(f32).min).astype(f32)
    e = jnp.maximum(e, relu_floor)

    # ---- Decoder.pre (both decoders, block-diagonal weight) -----------------
    h = (mm(w64_ref[o_pre:o_pre + H2, :], e * m) + bias(o_pre, H2)) * m

    # ---- WaveNet cond_layer (in_layer biases pre-folded into the bias slab) -
    gc = mm(w64_ref[o_cond:o_cond + H4 * L, :], inp_c) + bias(o_cond, H4 * L)

    output = None
    for i in range(L):
        dil = dilation_rate ** i
        pad = dil * (k - 1) // 2
        # k-tap dilated conv as ONE (4H, k*2H) @ (k*2H, B*T) matmul; shifted
        # taps are staged in VMEM scratch to bound vreg pressure.
        for j in range(k):
            hs_ref[j * H2:(j + 1) * H2, :] = shift_t(h, j * dil - pad).astype(cdt)
        preact = (mm(w192_ref[i * H4:(i + 1) * H4, :], hs_ref[...])
                  + gc[i * H4:(i + 1) * H4, :])
        # row layout [ftr tanh | src tanh | ftr sig | src sig] -> single gate
        acts = jnp.tanh(preact[:H2]) * jax.nn.sigmoid(preact[H2:])   # (2H, BT)
        rs = (mm(w64_ref[o_rs + i * H4:o_rs + (i + 1) * H4, :], acts)
              + bias(o_rs + i * H4, H4))
        if i < L - 1:
            h = (h + rs[:H2]) * m                 # residual (rows [ftr | src])
        skip = rs[H2:]
        output = skip if output is None else output + skip

    output = output * m                           # WaveNet returns output*mask
    y = (mm(w64_ref[o_proj:o_proj + 2 * out_dim, :], output)
         + bias(o_proj, 2 * out_dim)) * m
    o_ref[...] = y.astype(o_ref.dtype)            # (2*out, B*T): lane-dense vst


def run_wavenet_decoder(inp, w64, w192, bias, *, kernel_size, dilation_rate,
                        n_layers, hidden, gin, cin_tot, out_dim, T,
                        compute_dtype=jnp.float32):
    """inp: (2H, B*T) activation slab; w64/w192/bias: packed params."""
    CW, BT = inp.shape
    H2, H4 = 2 * hidden, 4 * hidden
    L, k = n_layers, kernel_size
    n_out = 2 * out_dim

    kern = functools.partial(
        _wavenet_dec_kernel, n_layers=L, kernel_size=k,
        dilation_rate=dilation_rate, hidden=hidden, gin=gin, cin_tot=cin_tot,
        out_dim=out_dim, T=T, compute_dtype=compute_dtype)

    cost = pl.CostEstimate(
        flops=int(2 * BT * (w64.shape[0] * CW + w192.shape[0] * w192.shape[1])),
        transcendentals=int(L * 2 * H2 * BT),
        bytes_accessed=int(sum(a.size * a.dtype.itemsize
                               for a in (inp, w64, w192, bias))
                           + n_out * BT * 4),
    )

    return pl.pallas_call(
        kern,
        out_shape=jax.ShapeDtypeStruct((n_out, BT), jnp.float32),
        scratch_shapes=[pltpu.VMEM((k * H2, BT), compute_dtype)],
        cost_estimate=cost,
    )(inp, w64, w192, bias)


# -----------------------------------------------------------------------------
# Parameter init (canonical PyTorch layout, weight-norm folded) + slab packing
# -----------------------------------------------------------------------------
def _normal(key, shape, scale=0.1):
    return jax.random.normal(key, shape, jnp.float32) * scale


def init_decoder_params(key, in_dim, hidden, kernel_size, n_layers, gin, out_dim):
    ks = iter(jax.random.split(key, 6 + 4 * n_layers))
    H = hidden
    p = dict(
        pre_w=_normal(next(ks), (H, in_dim)),
        pre_b=_normal(next(ks), (H,)),
        cond_w=_normal(next(ks), (2 * H * n_layers, gin)),
        cond_b=_normal(next(ks), (2 * H * n_layers,)),
        proj_w=_normal(next(ks), (out_dim, H)),
        proj_b=_normal(next(ks), (out_dim,)),
        in_w=[], in_b=[], rs_w=[], rs_b=[],
    )
    for i in range(n_layers):
        p["in_w"].append(_normal(next(ks), (2 * H, H, kernel_size)))
        p["in_b"].append(_normal(next(ks), (2 * H,)))
        rs_ch = 2 * H if i < n_layers - 1 else H
        p["rs_w"].append(_normal(next(ks), (rs_ch, H)))
        p["rs_b"].append(_normal(next(ks), (rs_ch,)))
    return p


def pack_kernel_params(raw, *, hidden, n_layers, kernel_size, content_dim,
                       pitch_dim, gin, out_dim, dtype=jnp.float32):
    """Pack emb_c/emb_f0 + both Decoders into 3 slabs (w64, w192, bias).

    Row layout (shared by w64 and bias):
      [emb(2H) | pre(2H) | cond(4H*L) | res_skip(4H*L) | proj(2*out)]
    cond / in_layer rows per layer are ordered [ftr tanh | src tanh | ftr sig |
    src sig]; res_skip rows per layer are [ftr res | src res | ftr skip | src
    skip] (zero res rows for the last layer).  emb/cond columns are aligned to
    the input-slab row layout [content | pitch | g | mask | pad].
    """
    H, L, k = hidden, n_layers, kernel_size
    H2, H4 = 2 * H, 4 * H
    cin_tot = content_dim + pitch_dim
    CW = H2
    assert cin_tot + gin + 1 <= CW, "input slab rows must fit the 2H contraction"
    ftr, src = raw["dec_ftr"], raw["dec_src"]
    assert ftr["pre_w"].shape == (H, H), "pack assumes in_dim == hidden_dim"

    o_emb, o_pre = 0, H2
    o_cond = 2 * H2
    o_rs = o_cond + H4 * L
    o_proj = o_rs + H4 * L
    n_rows = o_proj + 2 * out_dim

    w64 = jnp.zeros((n_rows, CW), jnp.float32)
    bias = jnp.zeros((n_rows, 1), jnp.float32)
    w192 = jnp.zeros((L * H4, k * H2), jnp.float32)

    # emb_c / emb_f0 (columns aligned with the input-slab row layout)
    w64 = w64.at[o_emb:o_emb + H, 0:content_dim].set(raw["emb_c_w"])
    w64 = w64.at[o_emb + H:o_emb + H2, content_dim:cin_tot].set(raw["emb_f0_w"])
    bias = bias.at[o_emb:o_emb + H, 0].set(raw["emb_c_b"])
    bias = bias.at[o_emb + H:o_emb + H2, 0].set(raw["emb_f0_b"])

    # Decoder.pre (block-diagonal over the two decoders)
    w64 = w64.at[o_pre:o_pre + H, 0:H].set(ftr["pre_w"])
    w64 = w64.at[o_pre + H:o_pre + H2, H:H2].set(src["pre_w"])
    bias = bias.at[o_pre:o_pre + H, 0].set(ftr["pre_b"])
    bias = bias.at[o_pre + H:o_pre + H2, 0].set(src["pre_b"])

    # cond_layer (columns at g's rows in the input slab); in_layer biases folded
    g0, g1 = cin_tot, cin_tot + gin
    for i in range(L):
        r = o_cond + i * H4
        fl, fh = ftr["cond_w"][2*H*i:2*H*i + H], ftr["cond_w"][2*H*i + H:2*H*(i+1)]
        sl, sh = src["cond_w"][2*H*i:2*H*i + H], src["cond_w"][2*H*i + H:2*H*(i+1)]
        w64 = w64.at[r:r + H, g0:g1].set(fl)
        w64 = w64.at[r + H:r + H2, g0:g1].set(sl)
        w64 = w64.at[r + H2:r + 3*H, g0:g1].set(fh)
        w64 = w64.at[r + 3*H:r + H4, g0:g1].set(sh)
        bias = bias.at[r:r + H, 0].set(
            ftr["cond_b"][2*H*i:2*H*i + H] + ftr["in_b"][i][:H])
        bias = bias.at[r + H:r + H2, 0].set(
            src["cond_b"][2*H*i:2*H*i + H] + src["in_b"][i][:H])
        bias = bias.at[r + H2:r + 3*H, 0].set(
            ftr["cond_b"][2*H*i + H:2*H*(i+1)] + ftr["in_b"][i][H:])
        bias = bias.at[r + 3*H:r + H4, 0].set(
            src["cond_b"][2*H*i + H:2*H*(i+1)] + src["in_b"][i][H:])

    # dilated in_layers: one (4H, k*2H) matrix per layer, taps along columns
    for i in range(L):
        r = i * H4
        for j in range(k):
            c = j * H2
            w192 = w192.at[r:r + H, c:c + H].set(ftr["in_w"][i][0:H, :, j])
            w192 = w192.at[r + H:r + H2, c + H:c + H2].set(src["in_w"][i][0:H, :, j])
            w192 = w192.at[r + H2:r + 3*H, c:c + H].set(ftr["in_w"][i][H:H2, :, j])
            w192 = w192.at[r + 3*H:r + H4, c + H:c + H2].set(src["in_w"][i][H:H2, :, j])

    # res_skip layers (block-diagonal columns; last layer has skip rows only)
    for i in range(L):
        r = o_rs + i * H4
        if i < L - 1:
            w64 = w64.at[r:r + H, 0:H].set(ftr["rs_w"][i][:H])
            w64 = w64.at[r + H:r + H2, H:H2].set(src["rs_w"][i][:H])
            w64 = w64.at[r + H2:r + 3*H, 0:H].set(ftr["rs_w"][i][H:])
            w64 = w64.at[r + 3*H:r + H4, H:H2].set(src["rs_w"][i][H:])
            bias = bias.at[r:r + H, 0].set(ftr["rs_b"][i][:H])
            bias = bias.at[r + H:r + H2, 0].set(src["rs_b"][i][:H])
            bias = bias.at[r + H2:r + 3*H, 0].set(ftr["rs_b"][i][H:])
            bias = bias.at[r + 3*H:r + H4, 0].set(src["rs_b"][i][H:])
        else:
            w64 = w64.at[r + H2:r + 3*H, 0:H].set(ftr["rs_w"][i])
            w64 = w64.at[r + 3*H:r + H4, H:H2].set(src["rs_w"][i])
            bias = bias.at[r + H2:r + 3*H, 0].set(ftr["rs_b"][i])
            bias = bias.at[r + 3*H:r + H4, 0].set(src["rs_b"][i])

    # proj
    w64 = w64.at[o_proj:o_proj + out_dim, 0:H].set(ftr["proj_w"])
    w64 = w64.at[o_proj + out_dim:o_proj + 2*out_dim, H:H2].set(src["proj_w"])
    bias = bias.at[o_proj:o_proj + out_dim, 0].set(ftr["proj_b"])
    bias = bias.at[o_proj + out_dim:o_proj + 2*out_dim, 0].set(src["proj_b"])

    return dict(w64=w64.astype(dtype), w192=w192.astype(dtype), bias=bias)


def wavenet_decoder_forward(x: DDDMInput, g_nct, packed, *, kernel_size,
                            dilation_rate, n_layers, hidden, content_dim,
                            pitch_dim, gin, out_dim,
                            compute_dtype=jnp.float32):
    """Equivalent of WavenetDecoder.forward(x, g, mixup_ratios=None).

    Folds batch and both decoders into a single (rows, B*T) lane-dense kernel
    invocation; wrapper-side data movement is only the tiny layout plumbing
    that builds the activation slab and reshapes the output.
    Returns (y_src, y_ftr), each (B, out_dim, T).
    """
    B, _, T = x.emb_content.shape
    cin_tot = content_dim + pitch_dim
    CW = packed["w64"].shape[1]
    n_rows = cin_tot + gin + 1
    assert CW >= n_rows

    # activation slab: rows = [content | pitch | g | mask | zero pad to 2H]
    inp = jnp.concatenate([x.emb_content, x.emb_pitch, g_nct, x.mask], axis=1)
    inp = inp.transpose(1, 0, 2).reshape(n_rows, B * T)
    inp = jnp.pad(inp, ((0, CW - n_rows), (0, 0))).astype(jnp.float32)

    out = run_wavenet_decoder(
        inp,
        packed["w64"].astype(compute_dtype),
        packed["w192"].astype(compute_dtype),
        packed["bias"],
        kernel_size=kernel_size, dilation_rate=dilation_rate,
        n_layers=n_layers, hidden=hidden, gin=gin, cin_tot=cin_tot,
        out_dim=out_dim, T=T, compute_dtype=compute_dtype)

    y = out.reshape(2, out_dim, B, T)
    y_ftr = jnp.transpose(y[0], (1, 0, 2))
    y_src = jnp.transpose(y[1], (1, 0, 2))
    # TODO(synk): nn.Embedding + F.interpolate pitch path (pitch_frame_wise=False)
    #             and the mixup/randperm branch are not implemented.
    return y_src, y_ftr


# -----------------------------------------------------------------------------
# Pure-JAX reference in NCT layout (for correctness check)
# -----------------------------------------------------------------------------
def _ref_conv1x1(x, w, b):
    return jnp.einsum('oc,bct->bot', w, x) + b[None, :, None]


def _ref_decoder(x, mask, g, p, *, kernel_size, dilation_rate, n_layers, hidden):
    H = hidden
    T = x.shape[-1]
    h = _ref_conv1x1(x * mask, p["pre_w"], p["pre_b"]) * mask
    gc = _ref_conv1x1(g, p["cond_w"], p["cond_b"])
    output = jnp.zeros_like(h)
    for i in range(n_layers):
        dil = dilation_rate ** i
        pad = dil * (kernel_size - 1) // 2
        hp = jnp.pad(h, ((0, 0), (0, 0), (pad, pad)))
        x_in = p["in_b"][i][None, :, None]
        for j in range(kernel_size):
            x_in = x_in + jnp.einsum('oc,bct->bot', p["in_w"][i][:, :, j],
                                     hp[:, :, j * dil:j * dil + T])
        in_act = x_in + gc[:, 2 * H * i:2 * H * (i + 1), :]
        acts = jnp.tanh(in_act[:, :H]) * jax.nn.sigmoid(in_act[:, H:])
        rs = _ref_conv1x1(acts, p["rs_w"][i], p["rs_b"][i])
        if i < n_layers - 1:
            h = (h + rs[:, :H]) * mask
            output = output + rs[:, H:]
        else:
            output = output + rs
    output = output * mask
    return _ref_conv1x1(output, p["proj_w"], p["proj_b"]) * mask


def _ref_forward(x, g, raw, *, kernel_size, dilation_rate, n_layers, hidden):
    content = _ref_conv1x1(x.emb_content, raw["emb_c_w"], raw["emb_c_b"])
    pitch = _ref_conv1x1(x.emb_pitch, raw["emb_f0_w"], raw["emb_f0_b"])
    kw = dict(kernel_size=kernel_size, dilation_rate=dilation_rate,
              n_layers=n_layers, hidden=hidden)
    y_ftr = _ref_decoder(jnp.maximum(content, 0.0), x.mask, g, raw["dec_ftr"], **kw)
    y_src = _ref_decoder(pitch, x.mask, g, raw["dec_src"], **kw)
    return y_src, y_ftr


# -----------------------------------------------------------------------------
# Main
# -----------------------------------------------------------------------------
if __name__ == "__main__":
    B, T = 2, 128                       # B*T = 256 lanes -> lane-dense slabs
    content_dim, pitch_dim = 12, 6
    hidden, in_dim, out_dim = 32, 32, 16
    gin, ksz, drate, nlayers = 16, 3, 2, 2

    key = jax.random.PRNGKey(0)
    k_in, k_c, k_f0, k_ftr, k_src = jax.random.split(key, 5)
    k1, k2, k3 = jax.random.split(k_in, 3)

    emb_content = jax.random.normal(k1, (B, content_dim, T), jnp.float32)
    emb_pitch = jax.random.normal(k2, (B, pitch_dim, T), jnp.float32)
    g = jax.random.normal(k3, (B, gin, T), jnp.float32)
    lengths = jnp.array([T, T - 37])
    mask = (jnp.arange(T)[None, None, :] < lengths[:, None, None]).astype(jnp.float32)

    kc = jax.random.split(k_c, 2)
    kf = jax.random.split(k_f0, 2)
    raw = dict(
        emb_c_w=_normal(kc[0], (hidden, content_dim)),
        emb_c_b=_normal(kc[1], (hidden,)),
        emb_f0_w=_normal(kf[0], (hidden, pitch_dim)),
        emb_f0_b=_normal(kf[1], (hidden,)),
        dec_ftr=init_decoder_params(k_ftr, in_dim, hidden, ksz, nlayers, gin, out_dim),
        dec_src=init_decoder_params(k_src, in_dim, hidden, ksz, nlayers, gin, out_dim),
    )

    x_in = DDDMInput(emb_content=emb_content, emb_pitch=emb_pitch, mask=mask)

    # pure-JAX reference (canonical params, NCT layout)
    y_src_ref, y_ftr_ref = _ref_forward(x_in, g, raw, kernel_size=ksz,
                                        dilation_rate=drate, n_layers=nlayers,
                                        hidden=hidden)

    common = dict(hidden=hidden, n_layers=nlayers, kernel_size=ksz,
                  content_dim=content_dim, pitch_dim=pitch_dim, gin=gin,
                  out_dim=out_dim)
    fwd_kw = dict(dilation_rate=drate, **common)

    # --- f32 weight slabs / f32 MXU passes: tight correctness check ----------
    packed_f32 = pack_kernel_params(raw, dtype=jnp.float32, **common)
    fwd_f32 = jax.jit(functools.partial(wavenet_decoder_forward,
                                        compute_dtype=jnp.float32, **fwd_kw))
    y_src, y_ftr = fwd_f32(x_in, g, packed_f32)
    y_src = jax.block_until_ready(y_src)
    y_ftr = jax.block_until_ready(y_ftr)
    assert y_src.shape == (B, out_dim, T) and y_ftr.shape == (B, out_dim, T)
    assert jnp.allclose(y_src, y_src_ref, rtol=2e-3, atol=5e-4)
    assert jnp.allclose(y_ftr, y_ftr_ref, rtol=2e-3, atol=5e-4)

    # --- bf16 weight slabs in HBM + bf16 MXU (halves weight DMA bytes) -------
    packed_bf16 = pack_kernel_params(raw, dtype=jnp.bfloat16, **common)
    fwd_bf16 = jax.jit(functools.partial(wavenet_decoder_forward,
                                         compute_dtype=jnp.bfloat16, **fwd_kw))
    y_src_b, y_ftr_b = fwd_bf16(x_in, g, packed_bf16)
    y_src_b = jax.block_until_ready(y_src_b)
    y_ftr_b = jax.block_until_ready(y_ftr_b)
    assert jnp.allclose(y_src_b, y_src_ref, rtol=1e-1, atol=5e-2)
    assert jnp.allclose(y_ftr_b, y_ftr_ref, rtol=1e-1, atol=5e-2)

    print("KERNEL_OK")
</pallas_src>

<mosaic_0001>
module attributes {stable_mosaic.version = 11 : i64} {
  func.func @_wavenet_dec_kernel(%arg0: memref<64x256xf32, #tpu.memory_space<vmem>>, %arg1: memref<672x64xf32, #tpu.memory_space<vmem>>, %arg2: memref<256x192xf32, #tpu.memory_space<vmem>>, %arg3: memref<672x1xf32, #tpu.memory_space<vmem>>, %arg4: memref<32x256xf32, #tpu.memory_space<vmem>>, %arg5: memref<192x256xf32, #tpu.memory_space<vmem>>) attributes {dimension_semantics = [], scalar_prefetch = 0 : i64, scratch_operands = 1 : i64, tpu.core_type = #tpu.core_type<tc>} {
    %c0 = arith.constant 0 : index
    %c0_0 = arith.constant 0 : index
    %0 = vector.load %arg0[%c0, %c0_0] : memref<64x256xf32, #tpu.memory_space<vmem>>, vector<64x256xf32>
    %1 = vector.extract_strided_slice %0 {offsets = [34, 0], sizes = [1, 256], strides = [1, 1]} : vector<64x256xf32> to vector<1x256xf32>
    %2 = tpu.iota {dimensions = array<i32: 1>} : vector<1x128xi32>
    %c-2_i32 = arith.constant -2 : i32
    %3 = vector.broadcast %c-2_i32 : i32 to vector<1x128xi32>
    %4 = arith.addi %2, %3 : vector<1x128xi32>
    %c0_i32 = arith.constant 0 : i32
    %5 = vector.broadcast %c0_i32 : i32 to vector<1x128xi32>
    %6 = arith.cmpi sge, %4, %5 : vector<1x128xi32>
    %c-2_i32_1 = arith.constant -2 : i32
    %7 = vector.broadcast %c-2_i32_1 : i32 to vector<1x128xi32>
    %8 = arith.addi %2, %7 : vector<1x128xi32>
    %c128_i32 = arith.constant 128 : i32
    %9 = vector.broadcast %c128_i32 : i32 to vector<1x128xi32>
    %10 = arith.cmpi slt, %8, %9 : vector<1x128xi32>
    %11 = arith.andi %6, %10 : vector<1x128xi1>
    %12 = arith.extui %11 : vector<1x128xi1> to vector<1x128xi32>
    %13 = arith.sitofp %12 : vector<1x128xi32> to vector<1x128xf32>
    %14 = tpu.concatenate %13, %13 in 1 : vector<1x128xf32>, vector<1x128xf32> -> vector<1x256xf32>
    %c-1_i32 = arith.constant -1 : i32
    %15 = vector.broadcast %c-1_i32 : i32 to vector<1x128xi32>
    %16 = arith.addi %2, %15 : vector<1x128xi32>
    %c0_i32_2 = arith.constant 0 : i32
    %17 = vector.broadcast %c0_i32_2 : i32 to vector<1x128xi32>
    %18 = arith.cmpi sge, %16, %17 : vector<1x128xi32>
    %c-1_i32_3 = arith.constant -1 : i32
    %19 = vector.broadcast %c-1_i32_3 : i32 to vector<1x128xi32>
    %20 = arith.addi %2, %19 : vector<1x128xi32>
    %c128_i32_4 = arith.constant 128 : i32
    %21 = vector.broadcast %c128_i32_4 : i32 to vector<1x128xi32>
    %22 = arith.cmpi slt, %20, %21 : vector<1x128xi32>
    %23 = arith.andi %18, %22 : vector<1x128xi1>
    %24 = arith.extui %23 : vector<1x128xi1> to vector<1x128xi32>
    %25 = arith.sitofp %24 : vector<1x128xi32> to vector<1x128xf32>
    %26 = tpu.concatenate %25, %25 in 1 : vector<1x128xf32>, vector<1x128xf32> -> vector<1x256xf32>
    %c1_i32 = arith.constant 1 : i32
    %27 = vector.broadcast %c1_i32 : i32 to vector<1x128xi32>
    %28 = arith.addi %2, %27 : vector<1x128xi32>
    %c0_i32_5 = arith.constant 0 : i32
    %29 = vector.broadcast %c0_i32_5 : i32 to vector<1x128xi32>
    %30 = arith.cmpi sge, %28, %29 : vector<1x128xi32>
    %c1_i32_6 = arith.constant 1 : i32
    %31 = vector.broadcast %c1_i32_6 : i32 to vector<1x128xi32>
    %32 = arith.addi %2, %31 : vector<1x128xi32>
    %c128_i32_7 = arith.constant 128 : i32
    %33 = vector.broadcast %c128_i32_7 : i32 to vector<1x128xi32>
    %34 = arith.cmpi slt, %32, %33 : vector<1x128xi32>
    %35 = arith.andi %30, %34 : vector<1x128xi1>
    %36 = arith.extui %35 : vector<1x128xi1> to vector<1x128xi32>
    %37 = arith.sitofp %36 : vector<1x128xi32> to vector<1x128xf32>
    %38 = tpu.concatenate %37, %37 in 1 : vector<1x128xf32>, vector<1x128xf32> -> vector<1x256xf32>
    %c2_i32 = arith.constant 2 : i32
    %39 = vector.broadcast %c2_i32 : i32 to vector<1x128xi32>
    %40 = arith.addi %2, %39 : vector<1x128xi32>
    %c0_i32_8 = arith.constant 0 : i32
    %41 = vector.broadcast %c0_i32_8 : i32 to vector<1x128xi32>
    %42 = arith.cmpi sge, %40, %41 : vector<1x128xi32>
    %c2_i32_9 = arith.constant 2 : i32
    %43 = vector.broadcast %c2_i32_9 : i32 to vector<1x128xi32>
    %44 = arith.addi %2, %43 : vector<1x128xi32>
    %c128_i32_10 = arith.constant 128 : i32
    %45 = vector.broadcast %c128_i32_10 : i32 to vector<1x128xi32>
    %46 = arith.cmpi slt, %44, %45 : vector<1x128xi32>
    %47 = arith.andi %42, %46 : vector<1x128xi1>
    %48 = arith.extui %47 : vector<1x128xi1> to vector<1x128xi32>
    %49 = arith.sitofp %48 : vector<1x128xi32> to vector<1x128xf32>
    %50 = tpu.concatenate %49, %49 in 1 : vector<1x128xf32>, vector<1x128xf32> -> vector<1x256xf32>
    %c0_11 = arith.constant 0 : index
    %c0_12 = arith.constant 0 : index
    %51 = vector.load %arg1[%c0_11, %c0_12] : memref<672x64xf32, #tpu.memory_space<vmem>>, vector<64x64xf32>
    %cst = arith.constant dense<0.000000e+00> : vector<64x256xf32>
    %52 = tpu.matmul %51, %0, %cst {dimension_numbers = #tpu.dot_dimension_numbers<[1], [0], [0], [1], [0, 0, 1, 1], [], []>} : vector<64x64xf32>, vector<64x256xf32>, vector<64x256xf32> -> vector<64x256xf32>
    %c0_13 = arith.constant 0 : index
    %c0_14 = arith.constant 0 : index
    %53 = vector.load %arg3[%c0_13, %c0_14] : memref<672x1xf32, #tpu.memory_space<vmem>>, vector<64x1xf32>
    %54 = vector.broadcast %53 : vector<64x1xf32> to vector<64x256xf32>
    %55 = arith.addf %52, %54 : vector<64x256xf32>
    %56 = tpu.iota {dimensions = array<i32: 0>} : vector<64x1xi32>
    %c32_i32 = arith.constant 32 : i32
    %57 = vector.broadcast %c32_i32 : i32 to vector<64x1xi32>
    %58 = arith.cmpi slt, %56, %57 : vector<64x1xi32>
    %cst_15 = arith.constant 0.000000e+00 : f32
    %cst_16 = arith.constant -3.40282347E+38 : f32
    %59 = vector.broadcast %cst_15 : f32 to vector<64x1xf32>
    %60 = vector.broadcast %cst_16 : f32 to vector<64x1xf32>
    %61 = arith.select %58, %59, %60 : vector<64x1xi1>, vector<64x1xf32>
    %62 = vector.broadcast %61 : vector<64x1xf32> to vector<64x256xf32>
    %63 = arith.maximumf %55, %62 : vector<64x256xf32>
    %c64 = arith.constant 64 : index
    %c0_17 = arith.constant 0 : index
    %64 = vector.load %arg1[%c64, %c0_17] : memref<672x64xf32, #tpu.memory_space<vmem>>, vector<64x64xf32>
    %65 = vector.broadcast %1 : vector<1x256xf32> to vector<64x256xf32>
    %66 = arith.mulf %63, %65 : vector<64x256xf32>
    %cst_18 = arith.constant dense<0.000000e+00> : vector<64x256xf32>
    %67 = tpu.matmul %64, %66, %cst_18 {dimension_numbers = #tpu.dot_dimension_numbers<[1], [0], [0], [1], [0, 0, 1, 1], [], []>} : vector<64x64xf32>, vector<64x256xf32>, vector<64x256xf32> -> vector<64x256xf32>
    %c64_19 = arith.constant 64 : index
    %c0_20 = arith.constant 0 : index
    %68 = vector.load %arg3[%c64_19, %c0_20] : memref<672x1xf32, #tpu.memory_space<vmem>>, vector<64x1xf32>
    %69 = vector.broadcast %68 : vector<64x1xf32> to vector<64x256xf32>
    %70 = arith.addf %67, %69 : vector<64x256xf32>
    %71 = vector.broadcast %1 : vector<1x256xf32> to vector<64x256xf32>
    %72 = arith.mulf %70, %71 : vector<64x256xf32>
    %c128 = arith.constant 128 : index
    %c0_21 = arith.constant 0 : index
    %73 = vector.load %arg1[%c128, %c0_21] : memref<672x64xf32, #tpu.memory_space<vmem>>, vector<256x64xf32>
    %cst_22 = arith.constant dense<0.000000e+00> : vector<256x256xf32>
    %74 = tpu.matmul %73, %0, %cst_22 {dimension_numbers = #tpu.dot_dimension_numbers<[1], [0], [0], [1], [0, 0, 1, 1], [], []>} : vector<256x64xf32>, vector<64x256xf32>, vector<256x256xf32> -> vector<256x256xf32>
    %c128_23 = arith.constant 128 : index
    %c0_24 = arith.constant 0 : index
    %75 = vector.load %arg3[%c128_23, %c0_24] : memref<672x1xf32, #tpu.memory_space<vmem>>, vector<256x1xf32>
    %76 = vector.broadcast %75 : vector<256x1xf32> to vector<256x256xf32>
    %77 = arith.addf %74, %76 : vector<256x256xf32>
    %c1_i32_25 = arith.constant 1 : i32
    %78 = tpu.dynamic_rotate %72 by %c1_i32_25 dim 1 : vector<64x256xf32>, i32 -> vector<64x256xf32>
    %79 = vector.broadcast %26 : vector<1x256xf32> to vector<64x256xf32>
    %80 = arith.mulf %78, %79 : vector<64x256xf32>
    %c0_26 = arith.constant 0 : index
    %c0_27 = arith.constant 0 : index
    %81 = vector.load %arg5[%c0_26, %c0_27] : memref<192x256xf32, #tpu.memory_space<vmem>>, vector<64x256xf32>
    tpu.vector_store %arg5[%c0_26, %c0_27], %80 {strides = array<i32>} : memref<192x256xf32, #tpu.memory_space<vmem>>, vector<64x256xf32>,
    %c64_28 = arith.constant 64 : index
    %c0_29 = arith.constant 0 : index
    %82 = vector.load %arg5[%c64_28, %c0_29] : memref<192x256xf32, #tpu.memory_space<vmem>>, vector<64x256xf32>
    tpu.vector_store %arg5[%c64_28, %c0_29], %72 {strides = array<i32>} : memref<192x256xf32, #tpu.memory_space<vmem>>, vector<64x256xf32>,
    %c255_i32 = arith.constant 255 : i32
    %83 = tpu.dynamic_rotate %72 by %c255_i32 dim 1 : vector<64x256xf32>, i32 -> vector<64x256xf32>
    %84 = vector.broadcast %38 : vector<1x256xf32> to vector<64x256xf32>
    %85 = arith.mulf %83, %84 : vector<64x256xf32>
    %c128_30 = arith.constant 128 : index
    %c0_31 = arith.constant 0 : index
    %86 = vector.load %arg5[%c128_30, %c0_31] : memref<192x256xf32, #tpu.memory_space<vmem>>, vector<64x256xf32>
    tpu.vector_store %arg5[%c128_30, %c0_31], %85 {strides = array<i32>} : memref<192x256xf32, #tpu.memory_space<vmem>>, vector<64x256xf32>,
    %c0_32 = arith.constant 0 : index
    %c0_33 = arith.constant 0 : index
    %87 = vector.load %arg2[%c0_32, %c0_33] : memref<256x192xf32, #tpu.memory_space<vmem>>, vector<128x192xf32>
    %c0_34 = arith.constant 0 : index
    %c0_35 = arith.constant 0 : index
    %88 = vector.load %arg5[%c0_34, %c0_35] : memref<192x256xf32, #tpu.memory_space<vmem>>, vector<192x256xf32>
    %cst_36 = arith.constant dense<0.000000e+00> : vector<128x256xf32>
    %89 = tpu.matmul %87, %88, %cst_36 {dimension_numbers = #tpu.dot_dimension_numbers<[1], [0], [0], [1], [0, 0, 1, 1], [], []>} : vector<128x192xf32>, vector<192x256xf32>, vector<128x256xf32> -> vector<128x256xf32>
    %90 = vector.extract_strided_slice %77 {offsets = [0, 0], sizes = [128, 256], strides = [1, 1]} : vector<256x256xf32> to vector<128x256xf32>
    %91 = arith.addf %89, %90 : vector<128x256xf32>
    %92 = vector.extract_strided_slice %91 {offsets = [0, 0], sizes = [64, 256], strides = [1, 1]} : vector<128x256xf32> to vector<64x256xf32>
    %93 = math.tanh %92 : vector<64x256xf32>
    %94 = vector.extract_strided_slice %91 {offsets = [64, 0], sizes = [64, 256], strides = [1, 1]} : vector<128x256xf32> to vector<64x256xf32>
    %95 = arith.negf %94 : vector<64x256xf32>
    %96 = math.exp %95 : vector<64x256xf32>
    %cst_37 = arith.constant 1.000000e+00 : f32
    %97 = vector.broadcast %cst_37 : f32 to vector<64x256xf32>
    %98 = arith.addf %97, %96 : vector<64x256xf32>
    %99 = arith.divf %97, %98 : vector<64x256xf32>
    %100 = arith.mulf %93, %99 : vector<64x256xf32>
    %c384 = arith.constant 384 : index
    %c0_38 = arith.constant 0 : index
    %101 = vector.load %arg1[%c384, %c0_38] : memref<672x64xf32, #tpu.memory_space<vmem>>, vector<128x64xf32>
    %cst_39 = arith.constant dense<0.000000e+00> : vector<128x256xf32>
    %102 = tpu.matmul %101, %100, %cst_39 {dimension_numbers = #tpu.dot_dimension_numbers<[1], [0], [0], [1], [0, 0, 1, 1], [], []>} : vector<128x64xf32>, vector<64x256xf32>, vector<128x256xf32> -> vector<128x256xf32>
    %c384_40 = arith.constant 384 : index
    %c0_41 = arith.constant 0 : index
    %103 = vector.load %arg3[%c384_40, %c0_41] : memref<672x1xf32, #tpu.memory_space<vmem>>, vector<128x1xf32>
    %104 = vector.broadcast %103 : vector<128x1xf32> to vector<128x256xf32>
    %105 = arith.addf %102, %104 : vector<128x256xf32>
    %106 = vector.extract_strided_slice %105 {offsets = [0, 0], sizes = [64, 256], strides = [1, 1]} : vector<128x256xf32> to vector<64x256xf32>
    %107 = arith.addf %72, %106 : vector<64x256xf32>
    %108 = vector.broadcast %1 : vector<1x256xf32> to vector<64x256xf32>
    %109 = arith.mulf %107, %108 : vector<64x256xf32>
    %110 = vector.extract_strided_slice %105 {offsets = [64, 0], sizes = [64, 256], strides = [1, 1]} : vector<128x256xf32> to vector<64x256xf32>
    %c2_i32_42 = arith.constant 2 : i32
    %111 = tpu.dynamic_rotate %109 by %c2_i32_42 dim 1 : vector<64x256xf32>, i32 -> vector<64x256xf32>
    %112 = vector.broadcast %14 : vector<1x256xf32> to vector<64x256xf32>
    %113 = arith.mulf %111, %112 : vector<64x256xf32>
    %c0_43 = arith.constant 0 : index
    %c0_44 = arith.constant 0 : index
    %114 = vector.load %arg5[%c0_43, %c0_44] : memref<192x256xf32, #tpu.memory_space<vmem>>, vector<64x256xf32>
    tpu.vector_store %arg5[%c0_43, %c0_44], %113 {strides = array<i32>} : memref<192x256xf32, #tpu.memory_space<vmem>>, vector<64x256xf32>,
    %c64_45 = arith.constant 64 : index
    %c0_46 = arith.constant 0 : index
    %115 = vector.load %arg5[%c64_45, %c0_46] : memref<192x256xf32, #tpu.memory_space<vmem>>, vector<64x256xf32>
    tpu.vector_store %arg5[%c64_45, %c0_46], %109 {strides = array<i32>} : memref<192x256xf32, #tpu.memory_space<vmem>>, vector<64x256xf32>,
    %c254_i32 = arith.constant 254 : i32
    %116 = tpu.dynamic_rotate %109 by %c254_i32 dim 1 : vector<64x256xf32>, i32 -> vector<64x256xf32>
    %117 = vector.broadcast %50 : vector<1x256xf32> to vector<64x256xf32>
    %118 = arith.mulf %116, %117 : vector<64x256xf32>
    %c128_47 = arith.constant 128 : index
    %c0_48 = arith.constant 0 : index
    %119 = vector.load %arg5[%c128_47, %c0_48] : memref<192x256xf32, #tpu.memory_space<vmem>>, vector<64x256xf32>
    tpu.vector_store %arg5[%c128_47, %c0_48], %118 {strides = array<i32>} : memref<192x256xf32, #tpu.memory_space<vmem>>, vector<64x256xf32>,
    %c128_49 = arith.constant 128 : index
    %c0_50 = arith.constant 0 : index
    %120 = vector.load %arg2[%c128_49, %c0_50] : memref<256x192xf32, #tpu.memory_space<vmem>>, vector<128x192xf32>
    %c0_51 = arith.constant 0 : index
    %c0_52 = arith.constant 0 : index
    %121 = vector.load %arg5[%c0_51, %c0_52] : memref<192x256xf32, #tpu.memory_space<vmem>>, vector<192x256xf32>
    %cst_53 = arith.constant dense<0.000000e+00> : vector<128x256xf32>
    %122 = tpu.matmul %120, %121, %cst_53 {dimension_numbers = #tpu.dot_dimension_numbers<[1], [0], [0], [1], [0, 0, 1, 1], [], []>} : vector<128x192xf32>, vector<192x256xf32>, vector<128x256xf32> -> vector<128x256xf32>
    %123 = vector.extract_strided_slice %77 {offsets = [128, 0], sizes = [128, 256], strides = [1, 1]} : vector<256x256xf32> to vector<128x256xf32>
    %124 = arith.addf %122, %123 : vector<128x256xf32>
    %125 = vector.extract_strided_slice %124 {offsets = [0, 0], sizes = [64, 256], strides = [1, 1]} : vector<128x256xf32> to vector<64x256xf32>
    %126 = math.tanh %125 : vector<64x256xf32>
    %127 = vector.extract_strided_slice %124 {offsets = [64, 0], sizes = [64, 256], strides = [1, 1]} : vector<128x256xf32> to vector<64x256xf32>
    %128 = arith.negf %127 : vector<64x256xf32>
    %129 = math.exp %128 : vector<64x256xf32>
    %cst_54 = arith.constant 1.000000e+00 : f32
    %130 = vector.broadcast %cst_54 : f32 to vector<64x256xf32>
    %131 = arith.addf %130, %129 : vector<64x256xf32>
    %132 = arith.divf %130, %131 : vector<64x256xf32>
    %133 = arith.mulf %126, %132 : vector<64x256xf32>
    %c512 = arith.constant 512 : index
    %c0_55 = arith.constant 0 : index
    %134 = vector.load %arg1[%c512, %c0_55] : memref<672x64xf32, #tpu.memory_space<vmem>>, vector<128x64xf32>
    %cst_56 = arith.constant dense<0.000000e+00> : vector<128x256xf32>
    %135 = tpu.matmul %134, %133, %cst_56 {dimension_numbers = #tpu.dot_dimension_numbers<[1], [0], [0], [1], [0, 0, 1, 1], [], []>} : vector<128x64xf32>, vector<64x256xf32>, vector<128x256xf32> -> vector<128x256xf32>
    %c512_57 = arith.constant 512 : index
    %c0_58 = arith.constant 0 : index
    %136 = vector.load %arg3[%c512_57, %c0_58] : memref<672x1xf32, #tpu.memory_space<vmem>>, vector<128x1xf32>
    %137 = vector.broadcast %136 : vector<128x1xf32> to vector<128x256xf32>
    %138 = arith.addf %135, %137 : vector<128x256xf32>
    %139 = vector.extract_strided_slice %138 {offsets = [64, 0], sizes = [64, 256], strides = [1, 1]} : vector<128x256xf32> to vector<64x256xf32>
    %140 = arith.addf %110, %139 : vector<64x256xf32>
    %141 = vector.broadcast %1 : vector<1x256xf32> to vector<64x256xf32>
    %142 = arith.mulf %140, %141 : vector<64x256xf32>
    %c640 = arith.constant 640 : index
    %c0_59 = arith.constant 0 : index
    %143 = vector.load %arg1[%c640, %c0_59] : memref<672x64xf32, #tpu.memory_space<vmem>>, vector<32x64xf32>
    %cst_60 = arith.constant dense<0.000000e+00> : vector<32x256xf32>
    %144 = tpu.matmul %143, %142, %cst_60 {dimension_numbers = #tpu.dot_dimension_numbers<[1], [0], [0], [1], [0, 0, 1, 1], [], []>} : vector<32x64xf32>, vector<64x256xf32>, vector<32x256xf32> -> vector<32x256xf32>
    %c640_61 = arith.constant 640 : index
    %c0_62 = arith.constant 0 : index
    %145 = vector.load %arg3[%c640_61, %c0_62] : memref<672x1xf32, #tpu.memory_space<vmem>>, vector<32x1xf32>
    %146 = vector.broadcast %145 : vector<32x1xf32> to vector<32x256xf32>
    %147 = arith.addf %144, %146 : vector<32x256xf32>
    %148 = vector.broadcast %1 : vector<1x256xf32> to vector<32x256xf32>
    %149 = arith.mulf %147, %148 : vector<32x256xf32>
    %c0_63 = arith.constant 0 : index
    %c0_64 = arith.constant 0 : index
    %150 = vector.load %arg4[%c0_63, %c0_64] : memref<32x256xf32, #tpu.memory_space<vmem>>, vector<32x256xf32>
    tpu.vector_store %arg4[%c0_63, %c0_64], %149 {strides = array<i32>} : memref<32x256xf32, #tpu.memory_space<vmem>>, vector<32x256xf32>,
    return
  }
}

</mosaic_0001>

<bundles_post_ra>
// kernel: wavenet_decoder_forward.1
= control target key start
LH: loop header
LB: loop body
LE: loop exit
PB: predicated region body
PF: predicated region fallthrough
CT: control target
= control target key end

     0   :  { %v5636_v3 = vmov 0.0   ;;  %v3870_v4 = vmov 0   ;;  %vm115_vm0 = vcmask 523264   ;;  %v33_v50 = vlaneseq  ;;  %s3871_s12 = smov 1   ;;  %s3872_s29 = smov 127   ;;  %s5631_s0 = inlined_call_operand.vmem [shape: f32[64,256], index: 0, kind: input, shape index: {}]   ;;  %s5632_s3 = inlined_call_operand.vmem [shape: f32[672,1], index: 3, kind: input, shape index: {}]   ;;  %s5633_s1 = inlined_call_operand.vmem [shape: f32[672,64], index: 1, kind: input, shape index: {}]   ;;  %s5634_s2 = inlined_call_operand.vmem [shape: f32[256,192], index: 2, kind: input, shape index: {}]   ;;  %s5635_s4 = inlined_call_operand.vmem [shape: f32[32,256], index: 4, kind: output, shape index: {}]  }
   0x1   :  { %v18_v0 = vld [vmem:[%s5631_s0 + $0x8] sm:$0xff]  ;;  %v20_v1 = vld [vmem:[%s5631_s0 + $0x18] sm:$0xff]  ;;  %v17_v2 = vld [vmem:[%s5631_s0] sm:$0xff]  ;;  %204 = vmatprep.mubr.f32.mxu0 %v5636_v3  ;;  %3675 = vset.pattern.permute.xlu0 %v3870_v4  ;;  %s3873_s9 = smov 2   ;;  %s3874_s10 = smov 126  }
   0x2   :  { %v3910_v5 = vpack.c.bf16 %v20_v1, %v18_v0  ;;  %v19_v6 = vld [vmem:[%s5631_s0 + $0x10] sm:$0xff]  ;;  %v22_v7 = vld [vmem:[%s5631_s0 + $0x28] sm:$0xff]  ;;  %v24_v8 = vld [vmem:[%s5631_s0 + $0x38] sm:$0xff]  ;;  %3676 = vset.pattern.permute.xlu1 %v3870_v4  ;;  %462 = vmatprep.mubr.f32.mxu1 %v5636_v3  ;;  %v4077_v51 = vshrl.u32 %v33_v50, 7 }
   0x3   :  { %v3922_v9 = vpack.c.bf16 %v19_v6, %v17_v2  ;;  %v3924_v10 = vpack.c.bf16 %v24_v8, %v22_v7  ;;  %v21_v11 = vld [vmem:[%s5631_s0 + $0x20] sm:$0xff]  ;;  %v23_v12 = vld [vmem:[%s5631_s0 + $0x30] sm:$0xff]  ;;  %v3935_v13 = vld [vmem:[%s5631_s0 + $0x48] sm:$0xff] }
   0x4   :  { %3294 = vmatprep.subr.bf16.mxu0 %v3910_v5  ;;  %v28_v14 = vld [vmem:[%s5631_s0 + $0x58] sm:$0xff]  ;;  %v3942_v15 = vpack.c.bf16 %v23_v12, %v21_v11  ;;  %v3951_v17 = vld [vmem:[%s5631_s0 + $0x40] sm:$0xff]  ;;  %v27_v18 = vld [vmem:[%s5631_s0 + $0x50] sm:$0xff]  ;;  %v304_v54 = vsub.s32 2, %v4077_v51 }
   0x5   :  { %3296 = vmatpush1.bf16.msra.mxu0 %v3922_v9  ;;  %v3946_v16 = vpack.c.bf16 %v28_v14, %v3935_v13  ;;  %v30_v19 = vld [vmem:[%s5631_s0 + $0x68] sm:$0xff]  ;;  %v32_v20 = vld [vmem:[%s5631_s0 + $0x78] sm:$0xff]  ;;  %v3964_v21 = vpack.c.bf16 %v27_v18, %v3951_v17  ;;  %v67_v22 = vld [vmem:[%s5632_s3] sm:$0xff] }
   0x6   :  { %3298 = vmatprep.subr.bf16.mxu0 %v3924_v10  ;;  %v69_v23 = vld [vmem:[%s5632_s3 + $0x10] sm:$0xff]  ;;  %v3973_v24 = vpack.c.bf16 %v32_v20, %v30_v19  ;;  %v29_v25 = vld [vmem:[%s5631_s0 + $0x60] sm:$0xff]  ;;  %77 = vperm.xlu0 %3675, %v67_v22   ;;  %v68_v27 = vld [vmem:[%s5632_s3 + $0x8] sm:$0xff]  ;;  %v4081_v60 = vrot.slane %v3951_v17, %v304_v54  ;;  %v4084_v0 = vrot.slane %v3935_v13, %v304_v54 }
   0x7   :  { %v31_v26 = vld [vmem:[%s5631_s0 + $0x70] sm:$0xff]  ;;  %87 = vperm.xlu1 %3676, %v69_v23   ;;  %v70_v28 = vld [vmem:[%s5632_s3 + $0x18] sm:$0xff]  ;;  %v71_v30 = vld [vmem:[%s5632_s3 + $0x20] sm:$0xff] }
   0x8   :  { %v3988_v29 = vpack.c.bf16 %v31_v26, %v29_v25  ;;  %v72_v31 = vld [vmem:[%s5632_s3 + $0x28] sm:$0xff]  ;;  %v59_v32 = vld [vmem:[%s5633_s1] sm:$0xff]  ;;  %v73_v33 = vld [vmem:[%s5632_s3 + $0x30] sm:$0xff]  ;;  %5642 = vst [vmem:[#allocation3_spill] sm:$0xff] %v4081_v60 }
   0x9   :  { %3300 = vmatpush1.bf16.msra.mxu0 %v3942_v15  ;;  %v74_v34 = vld [vmem:[%s5632_s3 + $0x38] sm:$0xff]  ;;  %v60_v35 = vld [vmem:[%s5633_s1 + $0x8] sm:$0xff]  ;;  %v326_v36 = vld [vmem:[%s5632_s3 + $0x40] sm:$0xff]  ;;  %5643 = vst [vmem:[#allocation4_spill] sm:$0xff] %v4084_v0 }
   0xa   :  { %3302 = vmatprep.subr.bf16.mxu0 %v3946_v16  ;;  %82 = vperm.xlu0 %3675, %v68_v27   ;;  %v327_v37 = vld [vmem:[%s5632_s3 + $0x48] sm:$0xff]  ;;  %v61_v38 = vld [vmem:[%s5633_s1 + $0x10] sm:$0xff]  ;;  %v329_v40 = vld [vmem:[%s5632_s3 + $0x58] sm:$0xff] }
   0xb   :  { %92 = vperm.xlu1 %3676, %v70_v28   ;;  %v328_v39 = vld [vmem:[%s5632_s3 + $0x50] sm:$0xff]  ;;  %v62_v41 = vld [vmem:[%s5633_s1 + $0x18] sm:$0xff]  ;;  %v330_v42 = vld [vmem:[%s5632_s3 + $0x60] sm:$0xff] }
   0xc   :  { %v331_v43 = vld [vmem:[%s5632_s3 + $0x68] sm:$0xff]  ;;  %v63_v44 = vld [vmem:[%s5633_s1 + $0x20] sm:$0xff]  ;;  %v332_v45 = vld [vmem:[%s5632_s3 + $0x70] sm:$0xff] }
   0xd   :  { %3304 = vmatpush1.bf16.msra.mxu0 %v3964_v21  ;;  %v333_v46 = vld [vmem:[%s5632_s3 + $0x78] sm:$0xff]  ;;  %v64_v47 = vld [vmem:[%s5633_s1 + $0x28] sm:$0xff]  ;;  %v65_v48 = vld [vmem:[%s5633_s1 + $0x30] sm:$0xff] }
   0xe   :  { %3306 = vmatprep.subr.bf16.mxu0 %v3973_v24  ;;  %97 = vperm.xlu0 %3675, %v71_v30   ;;  %v66_v49 = vld [vmem:[%s5633_s1 + $0x38] sm:$0xff] }
   0xf   :  { %102 = vperm.xlu1 %3676, %v72_v31  }
  0x11   :  { %3308 = vmatpush1.bf16.msra.mxu0 %v3988_v29 }
  0x12   :  { %3326 = vmatprep.subr.bf16.mxu0 %v3910_v5  ;;  %107 = vperm.xlu0 %3675, %v73_v33  }
  0x13   :  { %112 = vperm.xlu1 %3676, %v74_v34  }
  0x14   :  { %3145 = vmatmul.mubr.msk.f32.vlgmr.msra.gmra.mrb[0].mxu0 %vm115_vm0, %v59_v32 }
  0x15   :  { %210 = vmatprep.mubr.f32.mxu0 %v5636_v3  ;;  %3328 = vmatpush1.bf16.msra.mxu0 %v3922_v9 }
  0x16   :  { %3330 = vmatprep.subr.bf16.mxu0 %v3924_v10  ;;  %336 = vperm.xlu0 %3675, %v326_v36  }
  0x17   :  { %341 = vperm.xlu1 %3676, %v327_v37  }
  0x18   :  { %3146 = vmatmul.mubr.msk.f32.gmra.mrb[2].mxu0 %vm115_vm0, %v60_v35 }
  0x19   :  { %216 = vmatprep.mubr.f32.mxu0 %v5636_v3  ;;  %3332 = vmatpush1.bf16.msra.mxu0 %v3942_v15 }
  0x1a   :  { %3334 = vmatprep.subr.bf16.mxu0 %v3946_v16  ;;  %346 = vperm.xlu0 %3675, %v328_v39  }
  0x1b   :  { %351 = vperm.xlu1 %3676, %v329_v40  }
  0x1c   :  { %3147 = vmatmul.mubr.msk.f32.gmra.mrb[4].mxu0 %vm115_vm0, %v61_v38 }
  0x1d   :  { %222 = vmatprep.mubr.f32.mxu0 %v5636_v3  ;;  %3336 = vmatpush1.bf16.msra.mxu0 %v3964_v21 }
  0x1e   :  { %3338 = vmatprep.subr.bf16.mxu0 %v3973_v24  ;;  %356 = vperm.xlu0 %3675, %v330_v42  }
  0x1f   :  { %361 = vperm.xlu1 %3676, %v331_v43  }
  0x20   :  { %3148 = vmatmul.mubr.msk.f32.gmra.mrb[6].mxu0 %vm115_vm0, %v62_v41 }
  0x21   :  { %228 = vmatprep.mubr.f32.mxu0 %v5636_v3  ;;  %3340 = vmatpush1.bf16.msra.mxu0 %v3988_v29 }
  0x22   :  { %366 = vperm.xlu0 %3675, %v332_v45  }
  0x23   :  { %371 = vperm.xlu1 %3676, %v333_v46  }
  0x24   :  { %3149 = vmatmul.mubr.msk.f32.gmra.mrb[8].mxu0 %vm115_vm0, %v63_v44 }
  0x25   :  { %234 = vmatprep.mubr.f32.mxu0 %v5636_v3 }
  0x28   :  { %3150 = vmatmul.mubr.msk.f32.gmra.mrb[10].mxu0 %vm115_vm0, %v64_v47 }
  0x29   :  { %240 = vmatprep.mubr.f32.mxu0 %v5636_v3 }
  0x2c   :  { %3151 = vmatmul.mubr.msk.f32.gmra.mrb[12].mxu0 %vm115_vm0, %v65_v48 }
  0x2d   :  { %246 = vmatprep.mubr.f32.mxu0 %v5636_v3 }
  0x30   :  { %3152 = vmatmul.mubr.msk.f32.gmra.mrb[14].mxu0 %vm115_vm0, %v66_v49 }
  0x31   :  { %911 = vmatprep.mubr.f32.mxu0 %v5636_v3 }
  0x85   :  { %v78_v52 = vpop.permute.xlu0 %77 }
  0x86   :  { %v88_v1 = vpop.permute.xlu1 %87 }
  0x89   :  { %v83_v58 = vpop.permute.xlu0 %82 }
  0x8a   :  { %v93_v13 = vpop.permute.xlu1 %92 }
  0x8d   :  { %v98_v33 = vpop.permute.xlu0 %97 }
  0x8e   :  { %v103_v44 = vpop.permute.xlu1 %102 }
  0xe7   :  { %v206_v53 = vpop.f32.mrb[0].mxu0 }
  0xe8   :  { %v207_v55 = vadd.f32 %v206_v53, %v78_v52  ;;  %v208_v56 = vpop.f32.mrb[1].mxu0 }
  0xe9   :  { %v209_v57 = vadd.f32 %v208_v56, %v78_v52 }
  0xea   :  { %v278_v61 = vmax.f32 %v207_v55, 0.0  ;;  %v108_v55 = vpop.permute.xlu0 %107 }
  0xeb   :  { %v212_v59 = vpop.f32.mrb[2].mxu0  ;;  %v279_v2 = vmax.f32 %v209_v57, 0.0 }
  0xec   :  { %v213_v62 = vadd.f32 %v212_v59, %v83_v58  ;;  %v214_v63 = vpop.f32.mrb[3].mxu0  ;;  %v310_v11 = vmul.f32 %v4081_v60, %v278_v61 }
  0xed   :  { %v215_v4 = vadd.f32 %v214_v63, %v83_v58  ;;  %v311_v19 = vmul.f32 %v4084_v0, %v279_v2 }
  0xee   :  { %v280_v6 = vmax.f32 %v213_v62, 0.0 }
  0xef   :  { %v281_v7 = vmax.f32 %v215_v4, 0.0  ;;  %v218_v8 = vpop.f32.mrb[4].mxu0 }
  0xf0   :  { %v312_v12 = vmul.f32 %v4081_v60, %v280_v6  ;;  %v219_v14 = vadd.f32 %v218_v8, %v88_v1  ;;  %v220_v18 = vpop.f32.mrb[5].mxu0  ;;  %v113_v6 = vpop.permute.xlu1 %112 }
  0xf1   :  { %v221_v17 = vadd.f32 %v220_v18, %v88_v1  ;;  %v313_v20 = vmul.f32 %v4084_v0, %v281_v7 }
  0xf2   :  { %v3311_v22 = vpack.c.bf16 %v312_v12, %v310_v11  ;;  %v282_v26 = vmax.f32 %v219_v14, 0.0 }
  0xf3   :  { %v224_v23 = vpop.f32.mrb[6].mxu0  ;;  %v3309_v25 = vpack.c.bf16 %v313_v20, %v311_v19  ;;  %v283_v30 = vmax.f32 %v221_v17, 0.0 }
  0xf4   :  { %v225_v27 = vadd.f32 %v224_v23, %v93_v13  ;;  %v226_v28 = vpop.f32.mrb[7].mxu0  ;;  %v314_v36 = vmul.f32 %v4081_v60, %v282_v26 }
  0xf5   :  { %v227_v31 = vadd.f32 %v226_v28, %v93_v13  ;;  %3310 = vmatprep.subr.bf16.mxu1 %v3309_v25  ;;  %v315_v40 = vmul.f32 %v4084_v0, %v283_v30  ;;  %v294_v28 = vld [vmem:[%s5633_s1 + $0x40] sm:$0xff]  ;;  %v295_v30 = vld [vmem:[%s5633_s1 + $0x48] sm:$0xff] }
  0xf6   :  { %v284_v32 = vmax.f32 %v225_v27, 0.0  ;;  %3312 = vmatpush1.bf16.msra.mxu1 %v3311_v22 }
  0xf7   :  { %v285_v34 = vmax.f32 %v227_v31, 0.0  ;;  %v230_v35 = vpop.f32.mrb[8].mxu0  ;;  %v337_v31 = vpop.permute.xlu0 %336 }
  0xf8   :  { %v316_v37 = vmul.f32 %v4081_v60, %v284_v32  ;;  %v231_v38 = vadd.f32 %v230_v35, %v98_v33  ;;  %v232_v39 = vpop.f32.mrb[9].mxu0 }
  0xf9   :  { %v317_v41 = vmul.f32 %v4084_v0, %v285_v34  ;;  %v233_v42 = vadd.f32 %v232_v39, %v98_v33  ;;  %v529_v33 = vld [vmem:[%s5633_s1 + $0x90] sm:$0xff] }
  0xfa   :  { %v3315_v43 = vpack.c.bf16 %v316_v37, %v314_v36  ;;  %v286_v47 = vmax.f32 %v231_v38, -3.4028235e+38  ;;  %v342_v38 = vpop.permute.xlu1 %341 }
  0xfb   :  { %v236_v45 = vpop.f32.mrb[10].mxu0  ;;  %v3313_v46 = vpack.c.bf16 %v317_v41, %v315_v40  ;;  %v287_v52 = vmax.f32 %v233_v42, -3.4028235e+38  ;;  %v530_v40 = vld [vmem:[%s5633_s1 + $0x98] sm:$0xff] }
  0xfc   :  { %v237_v48 = vadd.f32 %v236_v45, %v103_v44  ;;  %v238_v49 = vpop.f32.mrb[11].mxu0  ;;  %v318_v58 = vmul.f32 %v4081_v60, %v286_v47 }
  0xfd   :  { %v239_v53 = vadd.f32 %v238_v49, %v103_v44  ;;  %3314 = vmatprep.subr.bf16.mxu1 %v3313_v46  ;;  %v319_v63 = vmul.f32 %v4084_v0, %v287_v52  ;;  %v347_v46 = vpop.permute.xlu0 %346 }
  0xfe   :  { %v288_v54 = vmax.f32 %v237_v48, -3.4028235e+38  ;;  %3316 = vmatpush1.bf16.msra.mxu1 %v3315_v43  ;;  %v531_v48 = vld [vmem:[%s5633_s1 + $0xa0] sm:$0xff] }
  0xff   :  { %v289_v56 = vmax.f32 %v239_v53, -3.4028235e+38  ;;  %v242_v57 = vpop.f32.mrb[12].mxu0 }
 0x100   :  { %v320_v59 = vmul.f32 %v4081_v60, %v288_v54  ;;  %v243_v61 = vadd.f32 %v242_v57, %v108_v55  ;;  %v244_v62 = vpop.f32.mrb[13].mxu0 }
 0x101   :  { %v321_v1 = vmul.f32 %v4084_v0, %v289_v56  ;;  %v245_v2 = vadd.f32 %v244_v62, %v108_v55  ;;  %v352_v56 = vpop.permute.xlu1 %351 }
 0x102   :  { %v3319_v4 = vpack.c.bf16 %v320_v59, %v318_v58  ;;  %v290_v11 = vmax.f32 %v243_v61, -3.4028235e+38  ;;  %v532_v58 = vld [vmem:[%s5633_s1 + $0xa8] sm:$0xff] }
 0x103   :  { %v248_v7 = vpop.f32.mrb[14].mxu0  ;;  %v3317_v8 = vpack.c.bf16 %v321_v1, %v319_v63  ;;  %v291_v18 = vmax.f32 %v245_v2, -3.4028235e+38  ;;  %v357_v2 = vpop.permute.xlu0 %356 }
 0x104   :  { %v249_v12 = vadd.f32 %v248_v7, %v113_v6  ;;  %v250_v14 = vpop.f32.mrb[15].mxu0  ;;  %v322_v22 = vmul.f32 %v4081_v60, %v290_v11 }
 0x105   :  { %v251_v17 = vadd.f32 %v250_v14, %v113_v6  ;;  %3318 = vmatprep.subr.bf16.mxu1 %v3317_v8  ;;  %v323_v23 = vmul.f32 %v4084_v0, %v291_v18  ;;  %v533_v6 = vld [vmem:[%s5633_s1 + $0xb0] sm:$0xff]  ;;  %v362_v18 = vpop.permute.xlu1 %361 }
 0x106   :  { %v292_v19 = vmax.f32 %v249_v12, -3.4028235e+38  ;;  %3320 = vmatpush1.bf16.msra.mxu1 %v3319_v4 }
 0x107   :  { %v293_v20 = vmax.f32 %v251_v17, -3.4028235e+38 }
 0x108   :  { %v324_v13 = vmul.f32 %v4081_v60, %v292_v19  ;;  %v534_v19 = vld [vmem:[%s5633_s1 + $0xb8] sm:$0xff] }
 0x109   :  { %v325_v25 = vmul.f32 %v4084_v0, %v293_v20 }
 0x10a   :  { %v3323_v26 = vpack.c.bf16 %v324_v13, %v322_v22 }
 0x10b   :  { %v3321_v27 = vpack.c.bf16 %v325_v25, %v323_v23 }
 0x10d   :  { %3322 = vmatprep.subr.bf16.mxu1 %v3321_v27 }
 0x10e   :  { %3324 = vmatpush1.bf16.msra.mxu1 %v3323_v26  ;;  %v367_v26 = vpop.permute.xlu0 %366 }
 0x10f   :  { %3485 = vmatprep.subr.bf16.mxu1 %v3910_v5  ;;  %v296_v5 = vld [vmem:[%s5633_s1 + $0x50] sm:$0xff] }
 0x111   :  { %3153 = vmatmul.mubr.msk.f32.vlgmr.msra.gmra.mrb[0].mxu1 %vm115_vm0, %v294_v28  ;;  %v535_v28 = vld [vmem:[%s5633_s1 + $0xc0] sm:$0xff] }
 0x112   :  { %468 = vmatprep.mubr.f32.mxu1 %v5636_v3  ;;  %3489 = vmatpush1.bf16.msra.mxu1 %v3922_v9  ;;  %v297_v9 = vld [vmem:[%s5633_s1 + $0x58] sm:$0xff] }
 0x113   :  { %3486 = vmatprep.subr.bf16.mxu1 %v3924_v10  ;;  %v298_v10 = vld [vmem:[%s5633_s1 + $0x60] sm:$0xff] }
 0x115   :  { %3154 = vmatmul.mubr.msk.f32.gmra.mrb[2].mxu1 %vm115_vm0, %v295_v30 }
 0x116   :  { %474 = vmatprep.mubr.f32.mxu1 %v5636_v3  ;;  %3490 = vmatpush1.bf16.msra.mxu1 %v3942_v15  ;;  %v299_v15 = vld [vmem:[%s5633_s1 + $0x68] sm:$0xff] }
 0x117   :  { %3487 = vmatprep.subr.bf16.mxu1 %v3946_v16  ;;  %v300_v16 = vld [vmem:[%s5633_s1 + $0x70] sm:$0xff] }
 0x119   :  { %3155 = vmatmul.mubr.msk.f32.gmra.mrb[4].mxu1 %vm115_vm0, %v296_v5 }
 0x11a   :  { %480 = vmatprep.mubr.f32.mxu1 %v5636_v3  ;;  %3491 = vmatpush1.bf16.msra.mxu1 %v3964_v21  ;;  %v301_v21 = vld [vmem:[%s5633_s1 + $0x78] sm:$0xff] }
 0x11b   :  { %3488 = vmatprep.subr.bf16.mxu1 %v3973_v24  ;;  %v527_v24 = vld [vmem:[%s5633_s1 + $0x80] sm:$0xff] }
 0x11c   :  { %3161 = vmatmul.mubr.msk.f32.vlgmr.msra.gmra.mrb[16].mxu0 %vm115_vm0, %v527_v24  ;;  %v536_v24 = vld [vmem:[%s5633_s1 + $0xc8] sm:$0xff] }
 0x11d   :  { %3156 = vmatmul.mubr.msk.f32.gmra.mrb[6].mxu1 %vm115_vm0, %v297_v9  ;;  %917 = vmatprep.mubr.f32.mxu0 %v5636_v3 }
 0x11e   :  { %486 = vmatprep.mubr.f32.mxu1 %v5636_v3  ;;  %3492 = vmatpush1.bf16.msra.mxu1 %v3988_v29  ;;  %v528_v29 = vld [vmem:[%s5633_s1 + $0x88] sm:$0xff] }
 0x120   :  { %3162 = vmatmul.mubr.msk.f32.gmra.mrb[18].mxu0 %vm115_vm0, %v528_v29 }
 0x121   :  { %3157 = vmatmul.mubr.msk.f32.gmra.mrb[8].mxu1 %vm115_vm0, %v298_v10  ;;  %923 = vmatprep.mubr.f32.mxu0 %v5636_v3 }
 0x122   :  { %492 = vmatprep.mubr.f32.mxu1 %v5636_v3 }
 0x124   :  { %3163 = vmatmul.mubr.msk.f32.gmra.mrb[20].mxu0 %vm115_vm0, %v529_v33 }
 0x125   :  { %3158 = vmatmul.mubr.msk.f32.gmra.mrb[10].mxu1 %vm115_vm0, %v299_v15  ;;  %929 = vmatprep.mubr.f32.mxu0 %v5636_v3 }
 0x126   :  { %498 = vmatprep.mubr.f32.mxu1 %v5636_v3 }
 0x128   :  { %3164 = vmatmul.mubr.msk.f32.gmra.mrb[22].mxu0 %vm115_vm0, %v530_v40  ;;  %v540_v40 = vld [vmem:[%s5633_s1 + $0xe8] sm:$0xff] }
 0x129   :  { %3159 = vmatmul.mubr.msk.f32.gmra.mrb[12].mxu1 %vm115_vm0, %v300_v16  ;;  %935 = vmatprep.mubr.f32.mxu0 %v5636_v3  ;;  %v372_v16 = vpop.permute.xlu1 %371 }
 0x12a   :  { %504 = vmatprep.mubr.f32.mxu1 %v5636_v3 }
 0x12c   :  { %3165 = vmatmul.mubr.msk.f32.gmra.mrb[24].mxu0 %vm115_vm0, %v531_v48  ;;  %v567_v48 = vld [vmem:[%s5632_s3 + $0xc0] sm:$0xff] }
 0x12d   :  { %3160 = vmatmul.mubr.msk.f32.gmra.mrb[14].mxu1 %vm115_vm0, %v301_v21  ;;  %941 = vmatprep.mubr.f32.mxu0 %v5636_v3 }
 0x12e   :  { %1019 = vmatprep.mubr.f32.mxu1 %v5636_v3 }
 0x130   :  { %3166 = vmatmul.mubr.msk.f32.gmra.mrb[26].mxu0 %vm115_vm0, %v532_v58  ;;  %v573_v58 = vld [vmem:[%s5632_s3 + $0xf0] sm:$0xff] }
 0x131   :  { %947 = vmatprep.mubr.f32.mxu0 %v5636_v3 }
 0x134   :  { %3167 = vmatmul.mubr.msk.f32.gmra.mrb[28].mxu0 %vm115_vm0, %v533_v6  ;;  %v563_v6 = vld [vmem:[%s5632_s3 + $0xa0] sm:$0xff] }
 0x135   :  { %953 = vmatprep.mubr.f32.mxu0 %v5636_v3 }
 0x138   :  { %3168 = vmatmul.mubr.msk.f32.gmra.mrb[30].mxu0 %vm115_vm0, %v534_v19  ;;  %v1725_v19 = vld [vmem:[%s5632_s3 + $0x190] sm:$0xff] }
 0x139   :  { %959 = vmatprep.mubr.f32.mxu0 %v5636_v3 }
 0x13c   :  { %3169 = vmatmul.mubr.msk.f32.gmra.mrb[32].mxu0 %vm115_vm0, %v535_v28  ;;  %v1730_v28 = vld [vmem:[%s5632_s3 + $0x1b8] sm:$0xff] }
 0x13d   :  { %965 = vmatprep.mubr.f32.mxu0 %v5636_v3 }
 0x140   :  { %3170 = vmatmul.mubr.msk.f32.gmra.mrb[34].mxu0 %vm115_vm0, %v536_v24 }
 0x141   :  { %971 = vmatprep.mubr.f32.mxu0 %v5636_v3 }
 0x1e4   :  { %v464_v32 = vpop.f32.mrb[0].mxu1 }
 0x1e5   :  { %v465_v34 = vadd.f32 %v464_v32, %v337_v31  ;;  %v466_v35 = vpop.f32.mrb[1].mxu1 }
 0x1e6   :  { %v467_v37 = vadd.f32 %v466_v35, %v337_v31  ;;  %v537_v35 = vld [vmem:[%s5633_s1 + $0xd0] sm:$0xff] }
 0x1e7   :  { %v4166_v36 = vmul.f32 %v465_v34, %v4081_v60  ;;  %3171 = vmatmul.mubr.msk.f32.gmra.mrb[36].mxu0 %vm115_vm0, %v537_v35 }
 0x1e8   :  { %v470_v39 = vpop.f32.mrb[2].mxu1  ;;  %v4176_v43 = vmul.f32 %v467_v37, %v4084_v0  ;;  %977 = vmatprep.mubr.f32.mxu0 %v5636_v3 }
 0x1e9   :  { %v471_v41 = vadd.f32 %v470_v39, %v342_v38  ;;  %v472_v42 = vpop.f32.mrb[3].mxu1  ;;  %1104 = vrot.lane.b32.xlu0 %v4166_v36, %s3871_s12  ;;  %v539_v39 = vld [vmem:[%s5633_s1 + $0xe0] sm:$0xff] }
 0x1ea   :  { %v473_v45 = vadd.f32 %v472_v42, %v342_v38  ;;  %v538_v38 = vld [vmem:[%s5633_s1 + $0xd8] sm:$0xff] }
 0x1eb   :  { %v4179_v44 = vmul.f32 %v471_v41, %v4081_v60  ;;  %3172 = vmatmul.mubr.msk.f32.gmra.mrb[38].mxu0 %vm115_vm0, %v538_v38  ;;  %v541_v41 = vld [vmem:[%s5633_s1 + $0xf0] sm:$0xff]  ;;  %v542_v42 = vld [vmem:[%s5633_s1 + $0xf8] sm:$0xff] }
 0x1ec   :  { %v476_v47 = vpop.f32.mrb[4].mxu1  ;;  %v4190_v53 = vmul.f32 %v473_v45, %v4084_v0  ;;  %983 = vmatprep.mubr.f32.mxu0 %v5636_v3  ;;  %v543_v45 = vld [vmem:[%s5633_s1 + $0x100] sm:$0xff] }
 0x1ed   :  { %v477_v49 = vadd.f32 %v476_v47, %v347_v46  ;;  %v478_v52 = vpop.f32.mrb[5].mxu1  ;;  %1106 = vrot.lane.b32.xlu1 %v4179_v44, %s3871_s12  ;;  %1120 = vrot.lane.b32.xlu0 %v4176_v43, %s3871_s12  ;;  %v1291_v47 = vld [vmem:[%s5634_s2 + $0x8] sm:$0xff] }
 0x1ee   :  { %v479_v55 = vadd.f32 %v478_v52, %v347_v46  ;;  %v544_v46 = vld [vmem:[%s5633_s1 + $0x108] sm:$0xff]  ;;  %v569_v52 = vld [vmem:[%s5632_s3 + $0xd0] sm:$0xff] }
 0x1ef   :  { %v4193_v54 = vmul.f32 %v477_v49, %v4081_v60  ;;  %3173 = vmatmul.mubr.msk.f32.gmra.mrb[40].mxu0 %vm115_vm0, %v539_v39  ;;  %v568_v49 = vld [vmem:[%s5632_s3 + $0xc8] sm:$0xff] }
 0x1f0   :  { %v482_v57 = vpop.f32.mrb[6].mxu1  ;;  %v4205_v62 = vmul.f32 %v479_v55, %v4084_v0  ;;  %989 = vmatprep.mubr.f32.mxu0 %v5636_v3  ;;  %v570_v55 = vld [vmem:[%s5632_s3 + $0xd8] sm:$0xff] }
 0x1f1   :  { %v483_v59 = vadd.f32 %v482_v57, %v352_v56  ;;  %v484_v61 = vpop.f32.mrb[7].mxu1  ;;  %1122 = vrot.lane.b32.xlu1 %v4190_v53, %s3871_s12  ;;  %1108 = vrot.lane.b32.xlu0 %v4193_v54, %s3871_s12  ;;  %v572_v57 = vld [vmem:[%s5632_s3 + $0xe8] sm:$0xff] }
 0x1f2   :  { %v485_v1 = vadd.f32 %v484_v61, %v352_v56  ;;  %v571_v56 = vld [vmem:[%s5632_s3 + $0xe0] sm:$0xff] }
 0x1f3   :  { %v4208_v63 = vmul.f32 %v483_v59, %v4081_v60  ;;  %3174 = vmatmul.mubr.msk.f32.gmra.mrb[42].mxu0 %vm115_vm0, %v540_v40  ;;  %v574_v59 = vld [vmem:[%s5632_s3 + $0xf8] sm:$0xff]  ;;  %v559_v61 = vld [vmem:[%s5632_s3 + $0x80] sm:$0xff] }
 0x1f4   :  { %v488_v4 = vpop.f32.mrb[8].mxu1  ;;  %v4220_v11 = vmul.f32 %v485_v1, %v4084_v0  ;;  %995 = vmatprep.mubr.f32.mxu0 %v5636_v3  ;;  %v560_v1 = vld [vmem:[%s5632_s3 + $0x88] sm:$0xff] }
 0x1f5   :  { %v489_v7 = vadd.f32 %v488_v4, %v357_v2  ;;  %v490_v8 = vpop.f32.mrb[9].mxu1  ;;  %1110 = vrot.lane.b32.xlu1 %v4208_v63, %s3871_s12  ;;  %1124 = vrot.lane.b32.xlu0 %v4205_v62, %s3871_s12  ;;  %v562_v4 = vld [vmem:[%s5632_s3 + $0x98] sm:$0xff] }
 0x1f6   :  { %v491_v14 = vadd.f32 %v490_v8, %v357_v2  ;;  %v561_v2 = vld [vmem:[%s5632_s3 + $0x90] sm:$0xff] }
 0x1f7   :  { %v4223_v12 = vmul.f32 %v489_v7, %v4081_v60  ;;  %3175 = vmatmul.mubr.msk.f32.gmra.mrb[44].mxu0 %vm115_vm0, %v541_v41  ;;  %v564_v7 = vld [vmem:[%s5632_s3 + $0xa8] sm:$0xff]  ;;  %v565_v8 = vld [vmem:[%s5632_s3 + $0xb0] sm:$0xff] }
 0x1f8   :  { %v494_v17 = vpop.f32.mrb[10].mxu1  ;;  %v4235_v13 = vmul.f32 %v491_v14, %v4084_v0  ;;  %1001 = vmatprep.mubr.f32.mxu0 %v5636_v3  ;;  %v566_v14 = vld [vmem:[%s5632_s3 + $0xb8] sm:$0xff] }
 0x1f9   :  { %v495_v20 = vadd.f32 %v494_v17, %v362_v18  ;;  %v496_v22 = vpop.f32.mrb[11].mxu1  ;;  %1126 = vrot.lane.b32.xlu1 %v4220_v11, %s3871_s12  ;;  %1112 = vrot.lane.b32.xlu0 %v4223_v12, %s3871_s12  ;;  %v1724_v17 = vld [vmem:[%s5632_s3 + $0x188] sm:$0xff] }
 0x1fa   :  { %v497_v25 = vadd.f32 %v496_v22, %v362_v18  ;;  %v1723_v18 = vld [vmem:[%s5632_s3 + $0x180] sm:$0xff] }
 0x1fb   :  { %v4238_v23 = vmul.f32 %v495_v20, %v4081_v60  ;;  %3176 = vmatmul.mubr.msk.f32.gmra.mrb[46].mxu0 %vm115_vm0, %v542_v42  ;;  %v1726_v20 = vld [vmem:[%s5632_s3 + $0x198] sm:$0xff]  ;;  %v1727_v22 = vld [vmem:[%s5632_s3 + $0x1a0] sm:$0xff] }
 0x1fc   :  { %v500_v27 = vpop.f32.mrb[12].mxu1  ;;  %v4250_v9 = vmul.f32 %v497_v25, %v4084_v0  ;;  %1007 = vmatprep.mubr.f32.mxu0 %v5636_v3  ;;  %v1728_v25 = vld [vmem:[%s5632_s3 + $0x1a8] sm:$0xff] }
 0x1fd   :  { %v501_v30 = vadd.f32 %v500_v27, %v367_v26  ;;  %v502_v5 = vpop.f32.mrb[13].mxu1  ;;  %1114 = vrot.lane.b32.xlu1 %v4238_v23, %s3871_s12  ;;  %1128 = vrot.lane.b32.xlu0 %v4235_v13, %s3871_s12  ;;  %v4425_v27 = vand.u32 127, %v33_v50 }
 0x1fe   :  { %v503_v15 = vadd.f32 %v502_v5, %v367_v26  ;;  %v1729_v26 = vld [vmem:[%s5632_s3 + $0x1b0] sm:$0xff] }
 0x1ff   :  { %v4253_v10 = vmul.f32 %v501_v30, %v4081_v60  ;;  %3177 = vmatmul.mubr.msk.f32.gmra.mrb[48].mxu0 %vm115_vm0, %v543_v45  ;;  %v41_v30 = vadd.s32 4294967295, %v4425_v27  ;;  %vm1136_vm2 = vcmp.lt.s32.totalorder %v4425_v27, 1  ;;  %vm1237_vm4 = vcmp.lt.s32.totalorder %v4425_v27, 127 }
 0x200   :  { %v506_v21 = vpop.f32.mrb[14].mxu1  ;;  %v4265_v32 = vmul.f32 %v503_v15, %v4084_v0  ;;  %1013 = vmatprep.mubr.f32.mxu0 %v5636_v3  ;;  %v4432_v15 = vsub.s32 0, %v4077_v51  ;;  %vm2092_vm6 = vcmp.lt.s32.totalorder %v4425_v27, 2  ;;  %vm2193_vm8 = vcmp.lt.s32.totalorder %v4425_v27, 126 }
 0x201   :  { %v507_v29 = vadd.f32 %v506_v21, %v372_v16  ;;  %v508_v31 = vpop.f32.mrb[15].mxu1  ;;  %1130 = vrot.lane.b32.xlu1 %v4250_v9, %s3871_s12  ;;  %1116 = vrot.lane.b32.xlu0 %v4253_v10, %s3871_s12  ;;  %vm42_vm1 = vcmp.ge.s32.totalorder %v41_v30, 0 }
 0x202   :  { %v509_v34 = vadd.f32 %v508_v31, %v372_v16  ;;  %v3142_v16 = vsel %vm42_vm1, 1.0, %v5636_v3 }
 0x203   :  { %v4268_v33 = vmul.f32 %v507_v29, %v4081_v60  ;;  %3178 = vmatmul.mubr.msk.f32.gmra.mrb[50].mxu0 %vm115_vm0, %v544_v46  ;;  %v1156_v24 = vrot.slane %v3142_v16, %v4432_v15 }
 0x204   :  { %v4280_v37 = vmul.f32 %v509_v34, %v4084_v0  ;;  %3193 = vmatprep.mubr.msk.f32.mxu0 %vm115_vm0, %v1291_v47 }
 0x205   :  { %1118 = vrot.lane.b32.xlu1 %v4268_v33, %s3871_s12  ;;  %1132 = vrot.lane.b32.xlu0 %v4265_v32, %s3871_s12 }
 0x209   :  { %1134 = vrot.lane.b32.xlu1 %v4280_v37, %s3871_s12  ;;  %1205 = vrot.lane.b32.xlu0 %v4166_v36, %s3872_s29 }
 0x20d   :  { %1207 = vrot.lane.b32.xlu1 %v4179_v44, %s3872_s29  ;;  %1221 = vrot.lane.b32.xlu0 %v4176_v43, %s3872_s29 }
 0x211   :  { %1223 = vrot.lane.b32.xlu1 %v4190_v53, %s3872_s29  ;;  %1209 = vrot.lane.b32.xlu0 %v4193_v54, %s3872_s29 }
 0x215   :  { %1211 = vrot.lane.b32.xlu1 %v4208_v63, %s3872_s29  ;;  %1225 = vrot.lane.b32.xlu0 %v4205_v62, %s3872_s29 }
 0x219   :  { %1227 = vrot.lane.b32.xlu1 %v4220_v11, %s3872_s29  ;;  %1213 = vrot.lane.b32.xlu0 %v4223_v12, %s3872_s29 }
 0x21d   :  { %1215 = vrot.lane.b32.xlu1 %v4238_v23, %s3872_s29  ;;  %1229 = vrot.lane.b32.xlu0 %v4235_v13, %s3872_s29 }
 0x221   :  { %1231 = vrot.lane.b32.xlu1 %v4250_v9, %s3872_s29  ;;  %1217 = vrot.lane.b32.xlu0 %v4253_v10, %s3872_s29 }
 0x225   :  { %1219 = vrot.lane.b32.xlu1 %v4268_v33, %s3872_s29  ;;  %1233 = vrot.lane.b32.xlu0 %v4265_v32, %s3872_s29 }
 0x229   :  { %1235 = vrot.lane.b32.xlu1 %v4280_v37, %s3872_s29  ;;  %633 = vperm.xlu0 %3675, %v567_v48  }
 0x22d   :  { %638 = vperm.xlu1 %3676, %v568_v49   ;;  %643 = vperm.xlu0 %3675, %v569_v52  }
 0x231   :  { %648 = vperm.xlu1 %3676, %v570_v55   ;;  %653 = vperm.xlu0 %3675, %v571_v56  }
 0x235   :  { %658 = vperm.xlu1 %3676, %v572_v57   ;;  %663 = vperm.xlu0 %3675, %v573_v58  }
 0x239   :  { %668 = vperm.xlu1 %3676, %v574_v59   ;;  %593 = vperm.xlu0 %3675, %v559_v61  }
 0x23d   :  { %598 = vperm.xlu1 %3676, %v560_v1   ;;  %603 = vperm.xlu0 %3675, %v561_v2  }
 0x241   :  { %608 = vperm.xlu1 %3676, %v562_v4   ;;  %613 = vperm.xlu0 %3675, %v563_v6  }
 0x245   :  { %618 = vperm.xlu1 %3676, %v564_v7   ;;  %623 = vperm.xlu0 %3675, %v565_v8  }
 0x249   :  { %628 = vperm.xlu1 %3676, %v566_v14   ;;  %1741 = vperm.xlu0 %3675, %v1723_v18  }
 0x24d   :  { %1746 = vperm.xlu1 %3676, %v1724_v17   ;;  %1751 = vperm.xlu0 %3675, %v1725_v19  }
 0x251   :  { %1756 = vperm.xlu1 %3676, %v1726_v20   ;;  %1761 = vperm.xlu0 %3675, %v1727_v22  }
 0x255   :  { %1766 = vperm.xlu1 %3676, %v1728_v25   ;;  %1771 = vperm.xlu0 %3675, %v1729_v26  }
 0x259   :  { %1776 = vperm.xlu1 %3676, %v1730_v28  }
 0x25b   :  { %v1105_v5 = vpop.permute.xlu0 %1104 }
 0x25f   :  { %v1107_v21 = vpop.permute.xlu1 %1106  ;;  %v1121_v50 = vpop.permute.xlu0 %1120 }
 0x260   :  { %v1137_v29 = vsel %vm1136_vm2, %v1105_v5, %v1121_v50  ;;  %v1145_v31 = vsel %vm1136_vm2, %v1121_v50, %v1105_v5 }
 0x261   :  { %v1157_v39 = vmul.f32 %v1156_v24, %v1145_v31  ;;  %v1158_v40 = vmul.f32 %v1156_v24, %v1137_v29 }
 0x263   :  { %v1123_v34 = vpop.permute.xlu1 %1122  ;;  %v1109_v35 = vpop.permute.xlu0 %1108 }
 0x264   :  { %v1138_v51 = vsel %vm1136_vm2, %v1107_v21, %v1123_v34  ;;  %v1146_v38 = vsel %vm1136_vm2, %v1123_v34, %v1107_v21 }
 0x265   :  { %v1159_v41 = vmul.f32 %v1156_v24, %v1146_v38  ;;  %v1160_v42 = vmul.f32 %v1156_v24, %v1138_v51 }
 0x267   :  { %v3343_v45 = vpack.c.bf16 %v1159_v41, %v1157_v39  ;;  %v1111_v46 = vpop.permute.xlu1 %1110  ;;  %v1125_v47 = vpop.permute.xlu0 %1124  ;;  %v3341_v48 = vpack.c.bf16 %v1160_v42, %v1158_v40 }
 0x268   :  { %v1139_v49 = vsel %vm1136_vm2, %v1109_v35, %v1125_v47  ;;  %v1147_v52 = vsel %vm1136_vm2, %v1125_v47, %v1109_v35 }
 0x269   :  { %3342 = vmatprep.subr.bf16.mxu0 %v3341_v48  ;;  %v1161_v59 = vmul.f32 %v1156_v24, %v1147_v52  ;;  %v1162_v61 = vmul.f32 %v1156_v24, %v1139_v49  ;;  %v47_v49 = vadd.s32 1, %v4425_v27  ;;  %v3357_v52 = vpack.c.bf16 %v4190_v53, %v4176_v43 }
 0x26a   :  { %3344 = vmatpush1.bf16.msra.mxu0 %v3343_v45 }
 0x26b   :  { %v1127_v55 = vpop.permute.xlu1 %1126  ;;  %v1113_v56 = vpop.permute.xlu0 %1112  ;;  %vm49_vm3 = vcmp.lt.s32.totalorder %v47_v49, 128 }
 0x26c   :  { %v1140_v57 = vsel %vm1136_vm2, %v1111_v46, %v1127_v55  ;;  %v1148_v58 = vsel %vm1136_vm2, %v1127_v55, %v1111_v46 }
 0x26d   :  { %v1163_v1 = vmul.f32 %v1156_v24, %v1148_v58  ;;  %v1164_v2 = vmul.f32 %v1156_v24, %v1140_v57  ;;  %v3359_v57 = vpack.c.bf16 %v4179_v44, %v4166_v36 }
 0x26f   :  { %v3347_v4 = vpack.c.bf16 %v1163_v1, %v1161_v59  ;;  %v1115_v6 = vpop.permute.xlu1 %1114  ;;  %v1129_v7 = vpop.permute.xlu0 %1128  ;;  %v3345_v8 = vpack.c.bf16 %v1164_v2, %v1162_v61  ;;  %v3143_v61 = vsel %vm49_vm3, 1.0, %v5636_v3  ;;  %v3363_v1 = vpack.c.bf16 %v4208_v63, %v4193_v54 }
 0x270   :  { %v1141_v14 = vsel %vm1136_vm2, %v1113_v56, %v1129_v7  ;;  %v1149_v18 = vsel %vm1136_vm2, %v1129_v7, %v1113_v56  ;;  %v3365_v2 = vpack.c.bf16 %v4250_v9, %v4235_v13 }
 0x271   :  { %3346 = vmatprep.subr.bf16.mxu0 %v3345_v8  ;;  %v1165_v25 = vmul.f32 %v1156_v24, %v1149_v18  ;;  %v1166_v26 = vmul.f32 %v1156_v24, %v1141_v14  ;;  %v3367_v18 = vpack.c.bf16 %v4238_v23, %v4223_v12 }
 0x272   :  { %3348 = vmatpush1.bf16.msra.mxu0 %v3347_v4 }
 0x273   :  { %v1131_v17 = vpop.permute.xlu1 %1130  ;;  %v1117_v19 = vpop.permute.xlu0 %1116 }
 0x274   :  { %v1142_v20 = vsel %vm1136_vm2, %v1115_v6, %v1131_v17  ;;  %v1150_v22 = vsel %vm1136_vm2, %v1131_v17, %v1115_v6  ;;  %v1257_v6 = vrot.slane %v3143_v61, %v4432_v15 }
 0x275   :  { %v1167_v28 = vmul.f32 %v1156_v24, %v1150_v22  ;;  %v1168_v30 = vmul.f32 %v1156_v24, %v1142_v20  ;;  %v3369_v20 = vpack.c.bf16 %v4280_v37, %v4265_v32 }
 0x277   :  { %v3351_v5 = vpack.c.bf16 %v1167_v28, %v1165_v25  ;;  %v1119_v16 = vpop.permute.xlu1 %1118  ;;  %v1133_v21 = vpop.permute.xlu0 %1132  ;;  %v3349_v50 = vpack.c.bf16 %v1168_v30, %v1166_v26 }
 0x278   :  { %v1143_v29 = vsel %vm1136_vm2, %v1117_v19, %v1133_v21  ;;  %v1151_v31 = vsel %vm1136_vm2, %v1133_v21, %v1117_v19  ;;  %v3371_v21 = vpack.c.bf16 %v4268_v33, %v4253_v10 }
 0x279   :  { %3350 = vmatprep.subr.bf16.mxu0 %v3349_v50  ;;  %v1169_v39 = vmul.f32 %v1156_v24, %v1151_v31  ;;  %v1170_v40 = vmul.f32 %v1156_v24, %v1143_v29 }
 0x27a   :  { %3352 = vmatpush1.bf16.msra.mxu0 %v3351_v5 }
 0x27b   :  { %v1135_v34 = vpop.permute.xlu1 %1134  ;;  %v1206_v35 = vpop.permute.xlu0 %1205 }
 0x27c   :  { %v1144_v51 = vsel %vm1136_vm2, %v1119_v16, %v1135_v34  ;;  %v1152_v38 = vsel %vm1136_vm2, %v1135_v34, %v1119_v16 }
 0x27d   :  { %v1171_v41 = vmul.f32 %v1156_v24, %v1152_v38  ;;  %v1172_v42 = vmul.f32 %v1156_v24, %v1144_v51  ;;  %v3361_v24 = vpack.c.bf16 %v4220_v11, %v4205_v62 }
 0x27f   :  { %v3355_v45 = vpack.c.bf16 %v1171_v41, %v1169_v39  ;;  %v1208_v46 = vpop.permute.xlu1 %1207  ;;  %v1222_v47 = vpop.permute.xlu0 %1221  ;;  %v3353_v48 = vpack.c.bf16 %v1172_v42, %v1170_v40 }
 0x280   :  { %v1246_v14 = vsel %vm1237_vm4, %v1222_v47, %v1206_v35  ;;  %v1238_v25 = vsel %vm1237_vm4, %v1206_v35, %v1222_v47 }
 0x281   :  { %3354 = vmatprep.subr.bf16.mxu0 %v3353_v48  ;;  %v1259_v26 = vmul.f32 %v1257_v6, %v1246_v14  ;;  %v1258_v34 = vmul.f32 %v1257_v6, %v1238_v25 }
 0x282   :  { %3356 = vmatpush1.bf16.msra.mxu0 %v3355_v45 }
 0x283   :  { %v1224_v55 = vpop.permute.xlu1 %1223  ;;  %3358 = vmatprep.subr.bf16.mxu0 %v3357_v52  ;;  %v1210_v56 = vpop.permute.xlu0 %1209 }
 0x284   :  { %v1247_v4 = vsel %vm1237_vm4, %v1224_v55, %v1208_v46  ;;  %v1239_v17 = vsel %vm1237_vm4, %v1208_v46, %v1224_v55 }
 0x285   :  { %v1261_v19 = vmul.f32 %v1257_v6, %v1247_v4  ;;  %v1260_v5 = vmul.f32 %v1257_v6, %v1239_v17 }
 0x286   :  { %3360 = vmatpush1.bf16.msra.mxu0 %v3359_v57 }
 0x287   :  { %v1212_v58 = vpop.permute.xlu1 %1211  ;;  %v1226_v59 = vpop.permute.xlu0 %1225  ;;  %3362 = vmatprep.subr.bf16.mxu0 %v3361_v24  ;;  %v3373_v31 = vpack.c.bf16 %v1261_v19, %v1259_v26  ;;  %v3375_v40 = vpack.c.bf16 %v1260_v5, %v1258_v34  ;;  %v1290_v26 = vld [vmem:[%s5634_s2] sm:$0xff]  ;;  %v1300_v34 = vld [vmem:[%s5634_s2 + $0x50] sm:$0xff] }
 0x288   :  { %v1248_v16 = vsel %vm1237_vm4, %v1226_v59, %v1210_v56  ;;  %v1240_v35 = vsel %vm1237_vm4, %v1210_v56, %v1226_v59  ;;  %v1294_v5 = vld [vmem:[%s5634_s2 + $0x20] sm:$0xff] }
 0x289   :  { %v1263_v51 = vmul.f32 %v1257_v6, %v1248_v16  ;;  %v1262_v49 = vmul.f32 %v1257_v6, %v1240_v35  ;;  %v1297_v16 = vld [vmem:[%s5634_s2 + $0x38] sm:$0xff]  ;;  %v1303_v35 = vld [vmem:[%s5634_s2 + $0x68] sm:$0xff] }
 0x28a   :  { %3364 = vmatpush1.bf16.msra.mxu0 %v3363_v1 }
 0x28b   :  { %v1228_v7 = vpop.permute.xlu1 %1227  ;;  %v1214_v8 = vpop.permute.xlu0 %1213  ;;  %3366 = vmatprep.subr.bf16.mxu0 %v3365_v2 }
 0x28c   :  { %v1249_v22 = vsel %vm1237_vm4, %v1228_v7, %v1212_v58  ;;  %v1241_v50 = vsel %vm1237_vm4, %v1212_v58, %v1228_v7 }
 0x28d   :  { %v1265_v29 = vmul.f32 %v1257_v6, %v1249_v22  ;;  %v1264_v41 = vmul.f32 %v1257_v6, %v1241_v50  ;;  %v1299_v50 = vld [vmem:[%s5634_s2 + $0x48] sm:$0xff] }
 0x28e   :  { %3368 = vmatpush1.bf16.msra.mxu0 %v3367_v18 }
 0x28f   :  { %v1216_v28 = vpop.permute.xlu1 %1215  ;;  %v1230_v30 = vpop.permute.xlu0 %1229  ;;  %3370 = vmatprep.subr.bf16.mxu0 %v3369_v20  ;;  %v3377_v48 = vpack.c.bf16 %v1265_v29, %v1263_v51  ;;  %v3379_v24 = vpack.c.bf16 %v1264_v41, %v1262_v49  ;;  %v1298_v29 = vld [vmem:[%s5634_s2 + $0x40] sm:$0xff]  ;;  %v1312_v49 = vld [vmem:[%s5634_s2 + $0xb0] sm:$0xff] }
 0x290   :  { %v1250_v42 = vsel %vm1237_vm4, %v1230_v30, %v1214_v8  ;;  %v1242_v52 = vsel %vm1237_vm4, %v1214_v8, %v1230_v30  ;;  %v1295_v30 = vld [vmem:[%s5634_s2 + $0x28] sm:$0xff]  ;;  %v1302_v51 = vld [vmem:[%s5634_s2 + $0x60] sm:$0xff] }
 0x291   :  { %v1267_v55 = vmul.f32 %v1257_v6, %v1250_v42  ;;  %v1266_v61 = vmul.f32 %v1257_v6, %v1242_v52  ;;  %v1306_v41 = vld [vmem:[%s5634_s2 + $0x80] sm:$0xff]  ;;  %v1309_v42 = vld [vmem:[%s5634_s2 + $0x98] sm:$0xff]  ;;  %v1315_v52 = vld [vmem:[%s5634_s2 + $0xc8] sm:$0xff] }
 0x292   :  { %3372 = vmatpush1.bf16.msra.mxu0 %v3371_v21  ;;  %v1296_v21 = vld [vmem:[%s5634_s2 + $0x30] sm:$0xff] }
 0x293   :  { %v1232_v38 = vpop.permute.xlu1 %1231  ;;  %v1218_v39 = vpop.permute.xlu0 %1217  ;;  %3374 = vmatprep.subr.bf16.mxu0 %v3373_v31  ;;  %v1301_v31 = vld [vmem:[%s5634_s2 + $0x58] sm:$0xff] }
 0x294   :  { %v1251_v45 = vsel %vm1237_vm4, %v1232_v38, %v1216_v28  ;;  %v1243_v46 = vsel %vm1237_vm4, %v1216_v28, %v1232_v38  ;;  %v1293_v28 = vld [vmem:[%s5634_s2 + $0x18] sm:$0xff] }
 0x295   :  { %v1269_v47 = vmul.f32 %v1257_v6, %v1251_v45  ;;  %v1268_v58 = vmul.f32 %v1257_v6, %v1243_v46  ;;  %v1305_v38 = vld [vmem:[%s5634_s2 + $0x78] sm:$0xff]  ;;  %v1308_v45 = vld [vmem:[%s5634_s2 + $0x90] sm:$0xff]  ;;  %v1311_v46 = vld [vmem:[%s5634_s2 + $0xa8] sm:$0xff] }
 0x296   :  { %3376 = vmatpush1.bf16.msra.mxu0 %v3375_v40  ;;  %v1307_v40 = vld [vmem:[%s5634_s2 + $0x88] sm:$0xff] }
 0x297   :  { %v1220_v56 = vpop.permute.xlu1 %1219  ;;  %v1234_v57 = vpop.permute.xlu0 %1233  ;;  %3378 = vmatprep.subr.bf16.mxu0 %v3377_v48  ;;  %v3381_v59 = vpack.c.bf16 %v1269_v47, %v1267_v55  ;;  %v3383_v7 = vpack.c.bf16 %v1268_v58, %v1266_v61  ;;  %v1310_v47 = vld [vmem:[%s5634_s2 + $0xa0] sm:$0xff]  ;;  %v1313_v48 = vld [vmem:[%s5634_s2 + $0xb8] sm:$0xff]  ;;  %v1320_v61 = vld [vmem:[%s5634_s2 + $0xf0] sm:$0xff] }
 0x298   :  { %v1244_v1 = vsel %vm1237_vm4, %v1218_v39, %v1234_v57  ;;  %v1252_v2 = vsel %vm1237_vm4, %v1234_v57, %v1218_v39  ;;  %v1304_v39 = vld [vmem:[%s5634_s2 + $0x70] sm:$0xff]  ;;  %v1314_v55 = vld [vmem:[%s5634_s2 + $0xc0] sm:$0xff] }
 0x299   :  { %v1270_v18 = vmul.f32 %v1257_v6, %v1244_v1  ;;  %v1271_v17 = vmul.f32 %v1257_v6, %v1252_v2  ;;  %v1316_v57 = vld [vmem:[%s5634_s2 + $0xd0] sm:$0xff]  ;;  %v1318_v58 = vld [vmem:[%s5634_s2 + $0xe0] sm:$0xff]  ;;  %v546_v2 = vld [vmem:[%s5633_s1 + $0x118] sm:$0xff] }
 0x29a   :  { %3380 = vmatpush1.bf16.msra.mxu0 %v3379_v24  ;;  %v1319_v24 = vld [vmem:[%s5634_s2 + $0xe8] sm:$0xff]  ;;  %v545_v1 = vld [vmem:[%s5633_s1 + $0x110] sm:$0xff] }
 0x29b   :  { %v1236_v4 = vpop.permute.xlu1 %1235  ;;  %3382 = vmatprep.subr.bf16.mxu0 %v3381_v59  ;;  %v1321_v59 = vld [vmem:[%s5634_s2 + $0xf8] sm:$0xff]  ;;  %3179 = vmatmul.mubr.msk.f32.vlgmr.msra.gmra.mrb[16].mxu1 %vm115_vm0, %v545_v1 }
 0x29c   :  { %v1245_v8 = vsel %vm1237_vm4, %v1220_v56, %v1236_v4  ;;  %v1253_v14 = vsel %vm1237_vm4, %v1236_v4, %v1220_v56  ;;  %v1317_v56 = vld [vmem:[%s5634_s2 + $0xd8] sm:$0xff]  ;;  %1025 = vmatprep.mubr.f32.mxu1 %v5636_v3  ;;  %v547_v4 = vld [vmem:[%s5633_s1 + $0x120] sm:$0xff] }
 0x29d   :  { %v1272_v19 = vmul.f32 %v1257_v6, %v1245_v8  ;;  %v1273_v20 = vmul.f32 %v1257_v6, %v1253_v14  ;;  %v1292_v6 = vld [vmem:[%s5634_s2 + $0x10] sm:$0xff]  ;;  %v550_v14 = vld [vmem:[%s5633_s1 + $0x138] sm:$0xff] }
 0x29e   :  { %3384 = vmatpush1.bf16.msra.mxu0 %v3383_v7  ;;  %v548_v7 = vld [vmem:[%s5633_s1 + $0x128] sm:$0xff]  ;;  %v549_v8 = vld [vmem:[%s5633_s1 + $0x130] sm:$0xff] }
 0x29f   :  { %v3387_v22 = vpack.c.bf16 %v1272_v19, %v1270_v18  ;;  %v3385_v25 = vpack.c.bf16 %v1273_v20, %v1271_v17  ;;  %3180 = vmatmul.mubr.msk.f32.gmra.mrb[18].mxu1 %vm115_vm0, %v546_v2  ;;  %v551_v18 = vld [vmem:[%s5633_s1 + $0x140] sm:$0xff]  ;;  %v552_v17 = vld [vmem:[%s5633_s1 + $0x148] sm:$0xff]  ;;  %v553_v19 = vld [vmem:[%s5633_s1 + $0x150] sm:$0xff] }
 0x2a0   :  { %1031 = vmatprep.mubr.f32.mxu1 %v5636_v3  ;;  %v554_v20 = vld [vmem:[%s5633_s1 + $0x158] sm:$0xff] }
 0x2a1   :  { %3386 = vmatprep.subr.bf16.mxu0 %v3385_v25  ;;  %v556_v25 = vld [vmem:[%s5633_s1 + $0x168] sm:$0xff] }
 0x2a2   :  { %3388 = vmatpush1.bf16.msra.mxu0 %v3387_v22  ;;  %v555_v22 = vld [vmem:[%s5633_s1 + $0x160] sm:$0xff] }
 0x2a3   :  { %3181 = vmatmul.mubr.msk.f32.gmra.mrb[20].mxu1 %vm115_vm0, %v547_v4 }
 0x2a4   :  { %1037 = vmatprep.mubr.f32.mxu1 %v5636_v3 }
 0x2a5   :  { %1483 = vmatmul.mubr.f32.vlgmr.msra.gmra.mrb[16].mxu0 %v1290_v26  ;;  %v557_v26 = vld [vmem:[%s5633_s1 + $0x170] sm:$0xff] }
 0x2a6   :  { %3194 = vmatprep.mubr.msk.f32.mxu0 %vm115_vm0, %v1293_v28  ;;  %v558_v28 = vld [vmem:[%s5633_s1 + $0x178] sm:$0xff] }
 0x2a7   :  { %3182 = vmatmul.mubr.msk.f32.gmra.mrb[22].mxu1 %vm115_vm0, %v548_v7 }
 0x2a8   :  { %1043 = vmatprep.mubr.f32.mxu1 %v5636_v3 }
 0x2a9   :  { %1489 = vmatmul.mubr.f32.gmra.mrb[18].mxu0 %v1292_v6 }
 0x2aa   :  { %3195 = vmatprep.mubr.msk.f32.mxu0 %vm115_vm0, %v1295_v30 }
 0x2ab   :  { %3183 = vmatmul.mubr.msk.f32.gmra.mrb[24].mxu1 %vm115_vm0, %v549_v8 }
 0x2ac   :  { %1049 = vmatprep.mubr.f32.mxu1 %v5636_v3 }
 0x2ad   :  { %1495 = vmatmul.mubr.f32.gmra.mrb[20].mxu0 %v1294_v5  ;;  %v634_v5 = vpop.permute.xlu0 %633 }
 0x2ae   :  { %3196 = vmatprep.mubr.msk.f32.mxu0 %vm115_vm0, %v1297_v16 }
 0x2af   :  { %3184 = vmatmul.mubr.msk.f32.gmra.mrb[26].mxu1 %vm115_vm0, %v550_v14 }
 0x2b0   :  { %1055 = vmatprep.mubr.f32.mxu1 %v5636_v3 }
 0x2b1   :  { %1501 = vmatmul.mubr.f32.gmra.mrb[22].mxu0 %v1296_v21 }
 0x2b2   :  { %3197 = vmatprep.mubr.msk.f32.mxu0 %vm115_vm0, %v1299_v50  ;;  %v639_v50 = vpop.permute.xlu1 %638 }
 0x2b3   :  { %3185 = vmatmul.mubr.msk.f32.gmra.mrb[28].mxu1 %vm115_vm0, %v551_v18 }
 0x2b4   :  { %1061 = vmatprep.mubr.f32.mxu1 %v5636_v3 }
 0x2b5   :  { %1507 = vmatmul.mubr.f32.gmra.mrb[24].mxu0 %v1298_v29 }
 0x2b6   :  { %3198 = vmatprep.mubr.msk.f32.mxu0 %vm115_vm0, %v1301_v31 }
 0x2b7   :  { %3186 = vmatmul.mubr.msk.f32.gmra.mrb[30].mxu1 %vm115_vm0, %v552_v17 }
 0x2b8   :  { %1067 = vmatprep.mubr.f32.mxu1 %v5636_v3 }
 0x2b9   :  { %1513 = vmatmul.mubr.f32.gmra.mrb[26].mxu0 %v1300_v34  ;;  %v644_v34 = vpop.permute.xlu0 %643 }
 0x2ba   :  { %3199 = vmatprep.mubr.msk.f32.mxu0 %vm115_vm0, %v1303_v35  ;;  %v4699_v35 = vpop.permute.xlu1 %648 }
 0x2bb   :  { %3187 = vmatmul.mubr.msk.f32.gmra.mrb[32].mxu1 %vm115_vm0, %v553_v19 }
 0x2bc   :  { %1073 = vmatprep.mubr.f32.mxu1 %v5636_v3 }
 0x2bd   :  { %1519 = vmatmul.mubr.f32.gmra.mrb[28].mxu0 %v1302_v51 }
 0x2be   :  { %3200 = vmatprep.mubr.msk.f32.mxu0 %vm115_vm0, %v1305_v38 }
 0x2bf   :  { %3188 = vmatmul.mubr.msk.f32.gmra.mrb[34].mxu1 %vm115_vm0, %v554_v20 }
 0x2c0   :  { %1079 = vmatprep.mubr.f32.mxu1 %v5636_v3 }
 0x2c1   :  { %1525 = vmatmul.mubr.f32.gmra.mrb[30].mxu0 %v1304_v39  ;;  %v4701_v39 = vpop.permute.xlu0 %653 }
 0x2c2   :  { %3201 = vmatprep.mubr.msk.f32.mxu0 %vm115_vm0, %v1307_v40 }
 0x2c3   :  { %3189 = vmatmul.mubr.msk.f32.gmra.mrb[36].mxu1 %vm115_vm0, %v555_v22 }
 0x2c4   :  { %1085 = vmatprep.mubr.f32.mxu1 %v5636_v3 }
 0x2c5   :  { %1531 = vmatmul.mubr.f32.gmra.mrb[32].mxu0 %v1306_v41 }
 0x2c6   :  { %3202 = vmatprep.mubr.msk.f32.mxu0 %vm115_vm0, %v1309_v42  ;;  %v4703_v42 = vpop.permute.xlu1 %658 }
 0x2c7   :  { %3190 = vmatmul.mubr.msk.f32.gmra.mrb[38].mxu1 %vm115_vm0, %v556_v25 }
 0x2c8   :  { %1091 = vmatprep.mubr.f32.mxu1 %v5636_v3 }
 0x2c9   :  { %1537 = vmatmul.mubr.f32.gmra.mrb[34].mxu0 %v1308_v45 }
 0x2ca   :  { %3203 = vmatprep.mubr.msk.f32.mxu0 %vm115_vm0, %v1311_v46 }
 0x2cb   :  { %3191 = vmatmul.mubr.msk.f32.gmra.mrb[40].mxu1 %vm115_vm0, %v557_v26 }
 0x2cc   :  { %1097 = vmatprep.mubr.f32.mxu1 %v5636_v3 }
 0x2cd   :  { %1543 = vmatmul.mubr.f32.gmra.mrb[36].mxu0 %v1310_v47  ;;  %v4709_v47 = vpop.permute.xlu0 %663 }
 0x2ce   :  { %3204 = vmatprep.mubr.msk.f32.mxu0 %vm115_vm0, %v1313_v48  ;;  %v4711_v48 = vpop.permute.xlu1 %668 }
 0x2cf   :  { %3192 = vmatmul.mubr.msk.f32.gmra.mrb[42].mxu1 %vm115_vm0, %v558_v28 }
 0x2d0   :  { %1931 = vmatprep.mubr.f32.mxu1 %v5636_v3 }
 0x2d1   :  { %1549 = vmatmul.mubr.f32.gmra.mrb[38].mxu0 %v1312_v49 }
 0x2d2   :  { %3205 = vmatprep.mubr.msk.f32.mxu0 %vm115_vm0, %v1315_v52 }
 0x2d5   :  { %1555 = vmatmul.mubr.f32.gmra.mrb[40].mxu0 %v1314_v55  ;;  %v594_v55 = vpop.permute.xlu0 %593 }
 0x2d6   :  { %3206 = vmatprep.mubr.msk.f32.mxu0 %vm115_vm0, %v1317_v56 }
 0x2d9   :  { %1561 = vmatmul.mubr.f32.gmra.mrb[42].mxu0 %v1316_v57  ;;  %v604_v8 = vpop.permute.xlu0 %603 }
 0x2da   :  { %3207 = vmatprep.mubr.msk.f32.mxu0 %vm115_vm0, %v1319_v24 }
 0x2dd   :  { %1567 = vmatmul.mubr.f32.gmra.mrb[44].mxu0 %v1318_v58  ;;  %v599_v58 = vpop.permute.xlu1 %598 }
 0x2de   :  { %3208 = vmatprep.mubr.msk.f32.mxu0 %vm115_vm0, %v1321_v59 }
 0x2e1   :  { %1573 = vmatmul.mubr.f32.gmra.mrb[46].mxu0 %v1320_v61  ;;  %v609_v28 = vpop.permute.xlu1 %608 }
 0x378   :  { %v1484_v6 = vpop.f32.mrb[16].mxu0 }
 0x379   :  { %v1486_v30 = vpop.f32.mrb[17].mxu0  ;;  %v3493_v57 = vadd.f32 %v1484_v6, %v594_v55 }
 0x37a   :  { %v3494_v59 = vadd.f32 %v1486_v30, %v594_v55 }
 0x37b   :  { %3677 = vtanh.f32 %v3493_v57 }
 0x37c   :  { %v1490_v16 = vpop.f32.mrb[18].mxu0  ;;  %3679 = vtanh.f32 %v3494_v59 }
 0x37d   :  { %v1492_v21 = vpop.f32.mrb[19].mxu0  ;;  %v3495_v61 = vadd.f32 %v1490_v16, %v599_v58 }
 0x37e   :  { %v3496_v1 = vadd.f32 %v1492_v21, %v599_v58  ;;  %v614_v58 = vpop.permute.xlu0 %613 }
 0x37f   :  { %3681 = vtanh.f32 %v3495_v61 }
 0x380   :  { %v1496_v29 = vpop.f32.mrb[20].mxu0  ;;  %3683 = vtanh.f32 %v3496_v1 }
 0x381   :  { %v1498_v31 = vpop.f32.mrb[21].mxu0  ;;  %v3497_v18 = vadd.f32 %v1496_v29, %v604_v8 }
 0x382   :  { %v3498_v19 = vadd.f32 %v1498_v31, %v604_v8 }
 0x384   :  { %v1502_v51 = vpop.f32.mrb[22].mxu0 }
 0x385   :  { %v1504_v38 = vpop.f32.mrb[23].mxu0  ;;  %v3499_v30 = vadd.f32 %v1502_v51, %v609_v28  ;;  %v4721_v59 = vpop.eup %3677 }
 0x386   :  { %v3500_v21 = vadd.f32 %v1504_v38, %v609_v28 }
 0x388   :  { %v1508_v40 = vpop.f32.mrb[24].mxu0 }
 0x389   :  { %v1510_v41 = vpop.f32.mrb[25].mxu0  ;;  %v3501_v61 = vadd.f32 %v1508_v40, %v614_v58 }
 0x38c   :  { %v4705_v45 = vpop.f32.mrb[26].mxu0 }
 0x38d   :  { %v4707_v46 = vpop.f32.mrb[27].mxu0 }
 0x390   :  { %v4713_v49 = vpop.f32.mrb[28].mxu0 }
 0x391   :  { %v4715_v52 = vpop.f32.mrb[29].mxu0 }
 0x394   :  { %v4717_v56 = vpop.f32.mrb[30].mxu0 }
 0x395   :  { %v4719_v24 = vpop.f32.mrb[31].mxu0 }
 0x398   :  { %v1532_v2 = vpop.f32.mrb[32].mxu0 }
 0x399   :  { %v3509_v4 = vadd.f32 %v1532_v2, %v634_v5  ;;  %v1534_v7 = vpop.f32.mrb[33].mxu0  ;;  %v4723_v2 = vpop.eup %3679 }
 0x39a   :  { %v3510_v14 = vadd.f32 %v1534_v7, %v634_v5  ;;  %v4725_v38 = vpop.eup %3681 }
 0x39b   :  { %v3209_v17 = vmul.f32 -1.442695, %v3509_v4 }
 0x39c   :  { %v3210_v20 = vmul.f32 -1.442695, %v3510_v14  ;;  %v1538_v22 = vpop.f32.mrb[34].mxu0  ;;  %v4728_v14 = vpop.eup %3683 }
 0x39d   :  { %3685 = vpow2.f32 %v3209_v17  ;;  %v3511_v25 = vadd.f32 %v1538_v22, %v639_v50  ;;  %v1540_v26 = vpop.f32.mrb[35].mxu0 }
 0x39e   :  { %3687 = vpow2.f32 %v3210_v20  ;;  %v3512_v6 = vadd.f32 %v1540_v26, %v639_v50  ;;  %v3502_v50 = vadd.f32 %v1510_v41, %v614_v58 }
 0x39f   :  { %3689 = vtanh.f32 %v3497_v18  ;;  %v3211_v16 = vmul.f32 -1.442695, %v3511_v25 }
 0x3a0   :  { %3691 = vtanh.f32 %v3498_v19  ;;  %v3212_v55 = vmul.f32 -1.442695, %v3512_v6  ;;  %v1544_v5 = vpop.f32.mrb[36].mxu0 }
 0x3a1   :  { %3693 = vpow2.f32 %v3211_v16  ;;  %v3513_v29 = vadd.f32 %v1544_v5, %v644_v34  ;;  %v1546_v57 = vpop.f32.mrb[37].mxu0 }
 0x3a2   :  { %3695 = vpow2.f32 %v3212_v55  ;;  %v3514_v31 = vadd.f32 %v1546_v57, %v644_v34 }
 0x3a3   :  { %3697 = vtanh.f32 %v3499_v30  ;;  %v3213_v1 = vmul.f32 -1.442695, %v3513_v29 }
 0x3a4   :  { %3699 = vtanh.f32 %v3500_v21  ;;  %v3214_v51 = vmul.f32 -1.442695, %v3514_v31  ;;  %v1550_v4 = vpop.f32.mrb[38].mxu0 }
 0x3a5   :  { %3701 = vpow2.f32 %v3213_v1  ;;  %v3515_v7 = vadd.f32 %v1550_v4, %v4699_v35  ;;  %v1552_v8 = vpop.f32.mrb[39].mxu0 }
 0x3a6   :  { %3703 = vpow2.f32 %v3214_v51  ;;  %v3516_v34 = vadd.f32 %v1552_v8, %v4699_v35 }
 0x3a7   :  { %v3686_v18 = vpop.eup %3685  ;;  %3705 = vtanh.f32 %v3501_v61  ;;  %v3215_v40 = vmul.f32 -1.442695, %v3515_v7 }
 0x3a8   :  { %v3688_v17 = vpop.eup %3687  ;;  %3707 = vtanh.f32 %v3502_v50  ;;  %v1643_v19 = vadd.f32 1.0, %v3686_v18  ;;  %v3216_v41 = vmul.f32 -1.442695, %v3516_v34  ;;  %v1556_v20 = vpop.f32.mrb[40].mxu0 }
 0x3a9   :  { %v4731_v22 = vpop.eup %3689  ;;  %v1644_v25 = vadd.f32 1.0, %v3688_v17  ;;  %3709 = vpow2.f32 %v3215_v40  ;;  %v3517_v26 = vadd.f32 %v1556_v20, %v4701_v39  ;;  %v1558_v28 = vpop.f32.mrb[41].mxu0 }
 0x3aa   :  { %v4734_v6 = vpop.eup %3691  ;;  %3711 = vrcp.f32 %v1643_v19  ;;  %v3518_v35 = vadd.f32 %v1558_v28, %v4701_v39 }
 0x3ab   :  { %v3694_v30 = vpop.eup %3693  ;;  %3713 = vrcp.f32 %v1644_v25  ;;  %v3217_v16 = vmul.f32 -1.442695, %v3517_v26  ;;  %v619_v25 = vpop.permute.xlu1 %618 }
 0x3ac   :  { %v3696_v21 = vpop.eup %3695  ;;  %v1645_v55 = vadd.f32 1.0, %v3694_v30  ;;  %3715 = vpow2.f32 %v3216_v41  ;;  %v3218_v5 = vmul.f32 -1.442695, %v3518_v35  ;;  %v1562_v29 = vpop.f32.mrb[42].mxu0  ;;  %v3503_v35 = vadd.f32 %v4705_v45, %v619_v25 }
 0x3ad   :  { %v4737_v57 = vpop.eup %3697  ;;  %v1646_v58 = vadd.f32 1.0, %v3696_v21  ;;  %3717 = vpow2.f32 %v3217_v16  ;;  %v3519_v31 = vadd.f32 %v1562_v29, %v4703_v42  ;;  %v1564_v61 = vpop.f32.mrb[43].mxu0 }
 0x3ae   :  { %v4740_v1 = vpop.eup %3699  ;;  %3719 = vrcp.f32 %v1645_v55  ;;  %v3520_v39 = vadd.f32 %v1564_v61, %v4703_v42 }
 0x3af   :  { %v3702_v50 = vpop.eup %3701  ;;  %3721 = vrcp.f32 %v1646_v58  ;;  %v3219_v51 = vmul.f32 -1.442695, %v3519_v31 }
 0x3b0   :  { %v3704_v4 = vpop.eup %3703  ;;  %v1647_v7 = vadd.f32 1.0, %v3702_v50  ;;  %3723 = vpow2.f32 %v3218_v5  ;;  %v3220_v8 = vmul.f32 -1.442695, %v3520_v39  ;;  %v1568_v34 = vpop.f32.mrb[44].mxu0 }
 0x3b1   :  { %v4743_v18 = vpop.eup %3705  ;;  %v1648_v40 = vadd.f32 1.0, %v3704_v4  ;;  %3725 = vpow2.f32 %v3219_v51  ;;  %v3521_v17 = vadd.f32 %v1568_v34, %v4709_v47  ;;  %v1570_v19 = vpop.f32.mrb[45].mxu0 }
 0x3b2   :  { %v4746_v41 = vpop.eup %3707  ;;  %3727 = vrcp.f32 %v1647_v7  ;;  %v3522_v42 = vadd.f32 %v1570_v19, %v4709_v47 }
 0x3b3   :  { %v3710_v20 = vpop.eup %3709  ;;  %3729 = vrcp.f32 %v1648_v40  ;;  %v3221_v26 = vmul.f32 -1.442695, %v3521_v17 }
 0x3b4   :  { %v3712_v28 = vpop.eup %3711  ;;  %v1649_v30 = vadd.f32 1.0, %v3710_v20  ;;  %3731 = vpow2.f32 %v3220_v8  ;;  %v3222_v16 = vmul.f32 -1.442695, %v3522_v42  ;;  %v1574_v21 = vpop.f32.mrb[46].mxu0 }
 0x3b5   :  { %v3714_v55 = vpop.eup %3713  ;;  %3733 = vpow2.f32 %v3221_v26  ;;  %v3523_v5 = vadd.f32 %v1574_v21, %v4711_v48  ;;  %v1576_v29 = vpop.f32.mrb[47].mxu0  ;;  %v1691_v58 = vmul.f32 %v3712_v28, %v4721_v59 }
 0x3b6   :  { %v3716_v31 = vpop.eup %3715  ;;  %3735 = vrcp.f32 %v1649_v30  ;;  %v3524_v47 = vadd.f32 %v1576_v29, %v4711_v48  ;;  %v1692_v61 = vmul.f32 %v3714_v55, %v4723_v2  ;;  %v624_v48 = vpop.permute.xlu0 %623  ;;  %v3504_v2 = vadd.f32 %v4707_v46, %v619_v25 }
 0x3b7   :  { %v3718_v39 = vpop.eup %3717  ;;  %v1650_v50 = vadd.f32 1.0, %v3716_v31  ;;  %3737 = vpow2.f32 %v3222_v16  ;;  %v3223_v45 = vmul.f32 -1.442695, %v3523_v5  ;;  %v3505_v26 = vadd.f32 %v4713_v49, %v624_v48  ;;  %v629_v29 = vpop.permute.xlu1 %628 }
 0x3b8   :  { %v3720_v51 = vpop.eup %3719  ;;  %3739 = vtanh.f32 %v3503_v35  ;;  %v1651_v4 = vadd.f32 1.0, %v3718_v39  ;;  %v3224_v7 = vmul.f32 -1.442695, %v3524_v47  ;;  %v3506_v46 = vadd.f32 %v4715_v52, %v624_v48 }
 0x3b9   :  { %v3722_v8 = vpop.eup %3721  ;;  %3741 = vrcp.f32 %v1650_v50  ;;  %v1693_v34 = vmul.f32 %v3720_v51, %v4725_v38  ;;  %v3507_v31 = vadd.f32 %v4717_v56, %v629_v29 }
 0x3ba   :  { %v3724_v40 = vpop.eup %3723  ;;  %3743 = vrcp.f32 %v1651_v4  ;;  %v1694_v59 = vmul.f32 %v3722_v8, %v4728_v14 }
 0x3bb   :  { %v3726_v17 = vpop.eup %3725  ;;  %v1652_v19 = vadd.f32 1.0, %v3724_v40  ;;  %3745 = vpow2.f32 %v3223_v45  ;;  %v3391_v42 = vpack.c.bf16 %v1693_v34, %v1691_v58 }
 0x3bc   :  { %v3728_v20 = vpop.eup %3727  ;;  %v1653_v28 = vadd.f32 1.0, %v3726_v17  ;;  %3747 = vpow2.f32 %v3224_v7  ;;  %v3389_v35 = vpack.c.bf16 %v1694_v59, %v1692_v61  ;;  %v3508_v61 = vadd.f32 %v4719_v24, %v629_v29  ;;  %v1711_v29 = vld [vmem:[%s5633_s1 + $0x1a0] sm:$0xff] }
 0x3bd   :  { %v3730_v30 = vpop.eup %3729  ;;  %3749 = vrcp.f32 %v1652_v19  ;;  %v1695_v38 = vmul.f32 %v3728_v20, %v4731_v22 }
 0x3be   :  { %v3732_v16 = vpop.eup %3731  ;;  %3751 = vrcp.f32 %v1653_v28  ;;  %3390 = vmatprep.subr.bf16.mxu1 %v3389_v35  ;;  %v1696_v14 = vmul.f32 %v3730_v30, %v4734_v6 }
 0x3bf   :  { %v3734_v21 = vpop.eup %3733  ;;  %3753 = vtanh.f32 %v3504_v2  ;;  %v1654_v25 = vadd.f32 1.0, %v3732_v16  ;;  %3392 = vmatpush1.bf16.msra.mxu1 %v3391_v42 }
 0x3c0   :  { %v3736_v55 = vpop.eup %3735  ;;  %3755 = vtanh.f32 %v3505_v26  ;;  %v1655_v49 = vadd.f32 1.0, %v3734_v21 }
 0x3c1   :  { %v3738_v5 = vpop.eup %3737  ;;  %3757 = vrcp.f32 %v1654_v25  ;;  %v1697_v58 = vmul.f32 %v3736_v55, %v4737_v57  ;;  %v1707_v25 = vld [vmem:[%s5633_s1 + $0x180] sm:$0xff]  ;;  %v1708_v55 = vld [vmem:[%s5633_s1 + $0x188] sm:$0xff] }
 0x3c2   :  { %v3740_v22 = vpop.eup %3739  ;;  %3759 = vrcp.f32 %v1655_v49  ;;  %v1656_v47 = vadd.f32 1.0, %v3738_v5  ;;  %v1709_v49 = vld [vmem:[%s5633_s1 + $0x190] sm:$0xff]  ;;  %v1710_v5 = vld [vmem:[%s5633_s1 + $0x198] sm:$0xff] }
 0x3c3   :  { %v3742_v6 = vpop.eup %3741  ;;  %3761 = vtanh.f32 %v3506_v46  ;;  %v3395_v52 = vpack.c.bf16 %v1697_v58, %v1695_v38  ;;  %v1712_v58 = vld [vmem:[%s5633_s1 + $0x1a8] sm:$0xff] }
 0x3c4   :  { %v3744_v39 = vpop.eup %3743  ;;  %3763 = vrcp.f32 %v1656_v47  ;;  %v1698_v50 = vmul.f32 %v3742_v6, %v4740_v1  ;;  %v1714_v47 = vld [vmem:[%s5633_s1 + $0x1b8] sm:$0xff] }
 0x3c5   :  { %v3746_v45 = vpop.eup %3745  ;;  %v1699_v51 = vmul.f32 %v3744_v39, %v4743_v18  ;;  %3765 = vtanh.f32 %v3507_v31  ;;  %v4801_v31 = vpop.f32.mrb[16].mxu1 }
 0x3c6   :  { %v3748_v4 = vpop.eup %3747  ;;  %v1657_v57 = vadd.f32 1.0, %v3746_v45  ;;  %v3393_v7 = vpack.c.bf16 %v1698_v50, %v1696_v14  ;;  %3767 = vtanh.f32 %v3508_v61  ;;  %v4807_v6 = vpop.f32.mrb[17].mxu1 }
 0x3c7   :  { %v3750_v8 = vpop.eup %3749  ;;  %v1658_v56 = vadd.f32 1.0, %v3748_v4  ;;  %v4810_v61 = vpop.f32.mrb[18].mxu1 }
 0x3c8   :  { %v3752_v34 = vpop.eup %3751  ;;  %3769 = vrcp.f32 %v1657_v57  ;;  %3394 = vmatprep.subr.bf16.mxu1 %v3393_v7  ;;  %v1700_v24 = vmul.f32 %v3750_v8, %v4746_v41 }
 0x3c9   :  { %v3754_v40 = vpop.eup %3753  ;;  %3771 = vrcp.f32 %v1658_v56  ;;  %3396 = vmatpush1.bf16.msra.mxu1 %v3395_v52  ;;  %v1701_v59 = vmul.f32 %v3752_v34, %v3740_v22  ;;  %v1713_v22 = vld [vmem:[%s5633_s1 + $0x1b0] sm:$0xff]  ;;  %v4812_v52 = vpop.f32.mrb[19].mxu1 }
 0x3ca   :  { %v3756_v1 = vpop.eup %3755  ;;  %v4815_v39 = vpop.f32.mrb[20].mxu1 }
 0x3cb   :  { %v3758_v17 = vpop.eup %3757  ;;  %v3399_v48 = vpack.c.bf16 %v1701_v59, %v1699_v51  ;;  %v4817_v50 = vpop.f32.mrb[21].mxu1 }
 0x3cc   :  { %v3760_v18 = vpop.eup %3759  ;;  %v1702_v2 = vmul.f32 %v3758_v17, %v3754_v40  ;;  %v4819_v45 = vpop.f32.mrb[22].mxu1 }
 0x3cd   :  { %v3762_v19 = vpop.eup %3761  ;;  %v1703_v42 = vmul.f32 %v3760_v18, %v3756_v1  ;;  %v4821_v51 = vpop.f32.mrb[23].mxu1 }
 0x3ce   :  { %v3764_v20 = vpop.eup %3763  ;;  %v3397_v26 = vpack.c.bf16 %v1702_v2, %v1700_v24  ;;  %v4823_v4 = vpop.f32.mrb[24].mxu1 }
 0x3cf   :  { %v1704_v28 = vmul.f32 %v3764_v20, %v3762_v19  ;;  %v3766_v35 = vpop.eup %3765  ;;  %v4825_v57 = vpop.f32.mrb[25].mxu1 }
 0x3d0   :  { %3398 = vmatprep.subr.bf16.mxu1 %v3397_v26  ;;  %v3768_v30 = vpop.eup %3767  ;;  %v4827_v7 = vpop.f32.mrb[26].mxu1 }
 0x3d1   :  { %3400 = vmatpush1.bf16.msra.mxu1 %v3399_v48  ;;  %v4829_v8 = vpop.f32.mrb[27].mxu1 }
 0x3d2   :  { %v3770_v38 = vpop.eup %3769  ;;  %v4831_v56 = vpop.f32.mrb[28].mxu1 }
 0x3d3   :  { %v3772_v41 = vpop.eup %3771  ;;  %v1705_v16 = vmul.f32 %v3770_v38, %v3766_v35  ;;  %v4833_v34 = vpop.f32.mrb[29].mxu1 }
 0x3d4   :  { %v1706_v14 = vmul.f32 %v3772_v41, %v3768_v30  ;;  %v4835_v24 = vpop.f32.mrb[30].mxu1  ;;  %v1742_v30 = vpop.permute.xlu0 %1741 }
 0x3d5   :  { %v3403_v21 = vpack.c.bf16 %v1705_v16, %v1703_v42  ;;  %v4837_v40 = vpop.f32.mrb[31].mxu1 }
 0x3d6   :  { %v3401_v46 = vpack.c.bf16 %v1706_v14, %v1704_v28  ;;  %v4839_v59 = vpop.f32.mrb[32].mxu1 }
 0x3d7   :  { %v4841_v1 = vpop.f32.mrb[33].mxu1 }
 0x3d8   :  { %3402 = vmatprep.subr.bf16.mxu1 %v3401_v46  ;;  %v4843_v17 = vpop.f32.mrb[34].mxu1  ;;  %v1747_v46 = vpop.permute.xlu1 %1746 }
 0x3d9   :  { %3404 = vmatpush1.bf16.msra.mxu1 %v3403_v21  ;;  %v4845_v48 = vpop.f32.mrb[35].mxu1 }
 0x3da   :  { %v4847_v18 = vpop.f32.mrb[36].mxu1 }
 0x3db   :  { %v4849_v2 = vpop.f32.mrb[37].mxu1 }
 0x3dc   :  { %3225 = vmatmul.mubr.msk.f32.vlgmr.msra.gmra.mrb[44].mxu1 %vm115_vm0, %v1707_v25  ;;  %v4851_v19 = vpop.f32.mrb[38].mxu1 }
 0x3dd   :  { %1937 = vmatprep.mubr.f32.mxu1 %v5636_v3  ;;  %v4853_v42 = vpop.f32.mrb[39].mxu1 }
 0x3de   :  { %v4855_v20 = vpop.f32.mrb[40].mxu1 }
 0x3df   :  { %v4857_v26 = vpop.f32.mrb[41].mxu1 }
 0x3e0   :  { %3226 = vmatmul.mubr.msk.f32.gmra.mrb[46].mxu1 %vm115_vm0, %v1708_v55  ;;  %v4859_v28 = vpop.f32.mrb[42].mxu1 }
 0x3e1   :  { %1943 = vmatprep.mubr.f32.mxu1 %v5636_v3  ;;  %v4861_v35 = vpop.f32.mrb[43].mxu1 }
 0x3e4   :  { %3227 = vmatmul.mubr.msk.f32.gmra.mrb[48].mxu1 %vm115_vm0, %v1709_v49 }
 0x3e5   :  { %1949 = vmatprep.mubr.f32.mxu1 %v5636_v3 }
 0x3e8   :  { %3228 = vmatmul.mubr.msk.f32.gmra.mrb[50].mxu1 %vm115_vm0, %v1710_v5 }
 0x3e9   :  { %1955 = vmatprep.mubr.f32.mxu1 %v5636_v3 }
 0x3ec   :  { %3229 = vmatmul.mubr.msk.f32.gmra.mrb[52].mxu1 %vm115_vm0, %v1711_v29 }
 0x3ed   :  { %1961 = vmatprep.mubr.f32.mxu1 %v5636_v3 }
 0x3f0   :  { %3230 = vmatmul.mubr.msk.f32.gmra.mrb[54].mxu1 %vm115_vm0, %v1712_v58 }
 0x3f1   :  { %1967 = vmatprep.mubr.f32.mxu1 %v5636_v3 }
 0x3f4   :  { %3231 = vmatmul.mubr.msk.f32.gmra.mrb[56].mxu1 %vm115_vm0, %v1713_v22 }
 0x3f5   :  { %1973 = vmatprep.mubr.f32.mxu1 %v5636_v3 }
 0x3f8   :  { %3232 = vmatmul.mubr.msk.f32.gmra.mrb[58].mxu1 %vm115_vm0, %v1714_v47  ;;  %v1752_v47 = vpop.permute.xlu0 %1751 }
 0x3f9   :  { %1979 = vmatprep.mubr.f32.mxu1 %v5636_v3 }
 0x4af   :  { %v1933_v38 = vpop.f32.mrb[44].mxu1 }
 0x4b0   :  { %v1934_v41 = vadd.f32 %v1933_v38, %v1742_v30  ;;  %v1935_v16 = vpop.f32.mrb[45].mxu1 }
 0x4b1   :  { %v1936_v14 = vadd.f32 %v1935_v16, %v1742_v30 }
 0x4b2   :  { %v2028_v21 = vadd.f32 %v1934_v41, %v4166_v36 }
 0x4b3   :  { %v1939_v25 = vpop.f32.mrb[46].mxu1  ;;  %v2029_v55 = vadd.f32 %v1936_v14, %v4176_v43 }
 0x4b4   :  { %v1940_v49 = vadd.f32 %v1939_v25, %v1747_v46  ;;  %v1941_v5 = vpop.f32.mrb[47].mxu1  ;;  %v4866_v29 = vmul.f32 %v2028_v21, %v4081_v60 }
 0x4b5   :  { %v1942_v58 = vadd.f32 %v1941_v5, %v1747_v46  ;;  %v4876_v16 = vmul.f32 %v2029_v55, %v4084_v0  ;;  %v1757_v46 = vpop.permute.xlu1 %1756 }
 0x4b6   :  { %v2030_v22 = vadd.f32 %v1940_v49, %v4179_v44  ;;  %2060 = vrot.lane.b32.xlu0 %v4866_v29, %s3873_s9 }
 0x4b7   :  { %v2031_v30 = vadd.f32 %v1942_v58, %v4190_v53  ;;  %v1945_v36 = vpop.f32.mrb[48].mxu1  ;;  %v2694_v53 = vld [vmem:[%s5632_s3 + $0x278] sm:$0xff] }
 0x4b8   :  { %v1946_v38 = vadd.f32 %v1945_v36, %v1752_v47  ;;  %v1947_v41 = vpop.f32.mrb[49].mxu1  ;;  %v4873_v43 = vmul.f32 %v2030_v22, %v4081_v60 }
 0x4b9   :  { %v1948_v14 = vadd.f32 %v1947_v41, %v1752_v47  ;;  %v4879_v21 = vmul.f32 %v2031_v30, %v4084_v0  ;;  %v1762_v30 = vpop.permute.xlu0 %1761 }
 0x4ba   :  { %v2032_v44 = vadd.f32 %v1946_v38, %v4193_v54  ;;  %2062 = vrot.lane.b32.xlu1 %v4873_v43, %s3873_s9  ;;  %2076 = vrot.lane.b32.xlu0 %v4876_v16, %s3873_s9 }
 0x4bb   :  { %v1951_v25 = vpop.f32.mrb[50].mxu1  ;;  %v2033_v49 = vadd.f32 %v1948_v14, %v4205_v62 }
 0x4bc   :  { %v1952_v5 = vadd.f32 %v1951_v25, %v1757_v46  ;;  %v1953_v58 = vpop.f32.mrb[51].mxu1  ;;  %v4892_v54 = vmul.f32 %v2032_v44, %v4081_v60 }
 0x4bd   :  { %v1954_v22 = vadd.f32 %v1953_v58, %v1757_v46  ;;  %v4904_v44 = vmul.f32 %v2033_v49, %v4084_v0 }
 0x4be   :  { %v2034_v47 = vadd.f32 %v1952_v5, %v4208_v63  ;;  %2078 = vrot.lane.b32.xlu1 %v4879_v21, %s3873_s9  ;;  %2064 = vrot.lane.b32.xlu0 %v4892_v54, %s3873_s9  ;;  %v1767_v5 = vpop.permute.xlu1 %1766 }
 0x4bf   :  { %v2035_v36 = vadd.f32 %v1954_v22, %v4220_v11  ;;  %v1957_v38 = vpop.f32.mrb[52].mxu1 }
 0x4c0   :  { %v1958_v41 = vadd.f32 %v1957_v38, %v1762_v30  ;;  %v1959_v62 = vpop.f32.mrb[53].mxu1  ;;  %v4901_v14 = vmul.f32 %v2034_v47, %v4081_v60 }
 0x4c1   :  { %v1960_v46 = vadd.f32 %v1959_v62, %v1762_v30  ;;  %v4907_v63 = vmul.f32 %v2035_v36, %v4084_v0 }
 0x4c2   :  { %v2036_v25 = vadd.f32 %v1958_v41, %v4223_v12  ;;  %2066 = vrot.lane.b32.xlu1 %v4901_v14, %s3873_s9  ;;  %2080 = vrot.lane.b32.xlu0 %v4904_v44, %s3873_s9  ;;  %v1772_v41 = vpop.permute.xlu0 %1771 }
 0x4c3   :  { %v1963_v58 = vpop.f32.mrb[54].mxu1  ;;  %v2037_v22 = vadd.f32 %v1960_v46, %v4235_v13 }
 0x4c4   :  { %v1964_v47 = vadd.f32 %v1963_v58, %v1767_v5  ;;  %v1965_v30 = vpop.f32.mrb[55].mxu1  ;;  %v4920_v12 = vmul.f32 %v2036_v25, %v4081_v60 }
 0x4c5   :  { %v1966_v36 = vadd.f32 %v1965_v30, %v1767_v5  ;;  %v4932_v25 = vmul.f32 %v2037_v22, %v4084_v0 }
 0x4c6   :  { %v2038_v38 = vadd.f32 %v1964_v47, %v4238_v23  ;;  %2082 = vrot.lane.b32.xlu1 %v4907_v63, %s3873_s9  ;;  %2068 = vrot.lane.b32.xlu0 %v4920_v12, %s3873_s9 }
 0x4c7   :  { %v2039_v62 = vadd.f32 %v1966_v36, %v4250_v9  ;;  %v1969_v11 = vpop.f32.mrb[56].mxu1 }
 0x4c8   :  { %v1970_v49 = vadd.f32 %v1969_v11, %v1772_v41  ;;  %v1971_v13 = vpop.f32.mrb[57].mxu1  ;;  %v4929_v46 = vmul.f32 %v2038_v38, %v4081_v60  ;;  %v1777_v11 = vpop.permute.xlu1 %1776 }
 0x4c9   :  { %v1972_v5 = vadd.f32 %v1971_v13, %v1772_v41  ;;  %v4935_v23 = vmul.f32 %v2039_v62, %v4084_v0 }
 0x4ca   :  { %v2040_v58 = vadd.f32 %v1970_v49, %v4253_v10  ;;  %2070 = vrot.lane.b32.xlu1 %v4929_v46, %s3873_s9  ;;  %2084 = vrot.lane.b32.xlu0 %v4932_v25, %s3873_s9 }
 0x4cb   :  { %v1975_v47 = vpop.f32.mrb[58].mxu1  ;;  %v2041_v30 = vadd.f32 %v1972_v5, %v4265_v32 }
 0x4cc   :  { %v1976_v36 = vadd.f32 %v1975_v47, %v1777_v11  ;;  %v1977_v38 = vpop.f32.mrb[59].mxu1  ;;  %v4948_v10 = vmul.f32 %v2040_v58, %v4081_v60  ;;  %v2247_v58 = vld [vmem:[%s5634_s2 + $0x108] sm:$0xff] }
 0x4cd   :  { %v1978_v49 = vadd.f32 %v1977_v38, %v1777_v11  ;;  %v4960_v32 = vmul.f32 %v2041_v30, %v4084_v0  ;;  %3241 = vmatprep.mubr.msk.f32.mxu0 %vm115_vm0, %v2247_v58  ;;  %v583_v11 = vld [vmem:[%s5632_s3 + $0x140] sm:$0xff]  ;;  %v584_v47 = vld [vmem:[%s5632_s3 + $0x148] sm:$0xff]  ;;  %v585_v30 = vld [vmem:[%s5632_s3 + $0x150] sm:$0xff] }
 0x4ce   :  { %v2042_v41 = vadd.f32 %v1976_v36, %v4268_v33  ;;  %2086 = vrot.lane.b32.xlu1 %v4935_v23, %s3873_s9  ;;  %2072 = vrot.lane.b32.xlu0 %v4948_v10, %s3873_s9  ;;  %v586_v36 = vld [vmem:[%s5632_s3 + $0x158] sm:$0xff]  ;;  %v587_v38 = vld [vmem:[%s5632_s3 + $0x160] sm:$0xff] }
 0x4cf   :  { %v2043_v62 = vadd.f32 %v1978_v49, %v4280_v37  ;;  %v588_v49 = vld [vmem:[%s5632_s3 + $0x168] sm:$0xff]  ;;  %v575_v58 = vld [vmem:[%s5632_s3 + $0x100] sm:$0xff]  ;;  %v2693_v37 = vld [vmem:[%s5632_s3 + $0x270] sm:$0xff] }
 0x4d0   :  { %v4957_v13 = vmul.f32 %v2042_v41, %v4081_v60  ;;  %v589_v41 = vld [vmem:[%s5632_s3 + $0x170] sm:$0xff] }
 0x4d1   :  { %v4963_v5 = vmul.f32 %v2043_v62, %v4084_v0  ;;  %v590_v62 = vld [vmem:[%s5632_s3 + $0x178] sm:$0xff] }
 0x4d2   :  { %2074 = vrot.lane.b32.xlu1 %v4957_v13, %s3873_s9  ;;  %2088 = vrot.lane.b32.xlu0 %v4960_v32, %s3873_s9 }
 0x4d6   :  { %2090 = vrot.lane.b32.xlu1 %v4963_v5, %s3873_s9  ;;  %2161 = vrot.lane.b32.xlu0 %v4866_v29, %s3874_s10 }
 0x4da   :  { %2163 = vrot.lane.b32.xlu1 %v4873_v43, %s3874_s10  ;;  %2177 = vrot.lane.b32.xlu0 %v4876_v16, %s3874_s10 }
 0x4de   :  { %2179 = vrot.lane.b32.xlu1 %v4879_v21, %s3874_s10  ;;  %2165 = vrot.lane.b32.xlu0 %v4892_v54, %s3874_s10 }
 0x4e2   :  { %2167 = vrot.lane.b32.xlu1 %v4901_v14, %s3874_s10  ;;  %2181 = vrot.lane.b32.xlu0 %v4904_v44, %s3874_s10 }
 0x4e6   :  { %2183 = vrot.lane.b32.xlu1 %v4907_v63, %s3874_s10  ;;  %2169 = vrot.lane.b32.xlu0 %v4920_v12, %s3874_s10 }
 0x4ea   :  { %2171 = vrot.lane.b32.xlu1 %v4929_v46, %s3874_s10  ;;  %2185 = vrot.lane.b32.xlu0 %v4932_v25, %s3874_s10 }
 0x4ee   :  { %2187 = vrot.lane.b32.xlu1 %v4935_v23, %s3874_s10  ;;  %2173 = vrot.lane.b32.xlu0 %v4948_v10, %s3874_s10 }
 0x4f2   :  { %2175 = vrot.lane.b32.xlu1 %v4957_v13, %s3874_s10  ;;  %2189 = vrot.lane.b32.xlu0 %v4960_v32, %s3874_s10 }
 0x4f6   :  { %2191 = vrot.lane.b32.xlu1 %v4963_v5, %s3874_s10  ;;  %713 = vperm.xlu0 %3675, %v583_v11   ;;  %v576_v11 = vld [vmem:[%s5632_s3 + $0x108] sm:$0xff] }
 0x4fa   :  { %718 = vperm.xlu1 %3676, %v584_v47   ;;  %723 = vperm.xlu0 %3675, %v585_v30   ;;  %v577_v47 = vld [vmem:[%s5632_s3 + $0x110] sm:$0xff]  ;;  %v578_v30 = vld [vmem:[%s5632_s3 + $0x118] sm:$0xff] }
 0x4fe   :  { %728 = vperm.xlu1 %3676, %v586_v36   ;;  %733 = vperm.xlu0 %3675, %v587_v38   ;;  %v579_v36 = vld [vmem:[%s5632_s3 + $0x120] sm:$0xff]  ;;  %v580_v38 = vld [vmem:[%s5632_s3 + $0x128] sm:$0xff] }
 0x502   :  { %738 = vperm.xlu1 %3676, %v588_v49   ;;  %743 = vperm.xlu0 %3675, %v589_v41   ;;  %v581_v49 = vld [vmem:[%s5632_s3 + $0x130] sm:$0xff]  ;;  %v582_v41 = vld [vmem:[%s5632_s3 + $0x138] sm:$0xff] }
 0x506   :  { %748 = vperm.xlu1 %3676, %v590_v62   ;;  %673 = vperm.xlu0 %3675, %v575_v58   ;;  %v1731_v62 = vld [vmem:[%s5632_s3 + $0x1c0] sm:$0xff]  ;;  %v1732_v58 = vld [vmem:[%s5632_s3 + $0x1c8] sm:$0xff] }
 0x50a   :  { %678 = vperm.xlu1 %3676, %v576_v11   ;;  %683 = vperm.xlu0 %3675, %v577_v47   ;;  %v2687_v11 = vld [vmem:[%s5632_s3 + $0x240] sm:$0xff]  ;;  %v2688_v47 = vld [vmem:[%s5632_s3 + $0x248] sm:$0xff] }
 0x50e   :  { %688 = vperm.xlu1 %3676, %v578_v30   ;;  %693 = vperm.xlu0 %3675, %v579_v36   ;;  %v1733_v30 = vld [vmem:[%s5632_s3 + $0x1d0] sm:$0xff]  ;;  %v1734_v36 = vld [vmem:[%s5632_s3 + $0x1d8] sm:$0xff] }
 0x512   :  { %698 = vperm.xlu1 %3676, %v580_v38   ;;  %703 = vperm.xlu0 %3675, %v581_v49   ;;  %v2689_v38 = vld [vmem:[%s5632_s3 + $0x250] sm:$0xff]  ;;  %v2690_v49 = vld [vmem:[%s5632_s3 + $0x258] sm:$0xff] }
 0x516   :  { %708 = vperm.xlu1 %3676, %v582_v41   ;;  %1781 = vperm.xlu0 %3675, %v1731_v62   ;;  %v1735_v41 = vld [vmem:[%s5632_s3 + $0x1e0] sm:$0xff]  ;;  %v35_v62 = vadd.s32 4294967294, %v4425_v27 }
 0x518   :  { %vm36_vm5 = vcmp.ge.s32.totalorder %v35_v62, 0 }
 0x51a   :  { %1786 = vperm.xlu1 %3676, %v1732_v58   ;;  %2729 = vperm.xlu0 %3675, %v2687_v11   ;;  %v1736_v58 = vld [vmem:[%s5632_s3 + $0x1e8] sm:$0xff]  ;;  %v2691_v11 = vld [vmem:[%s5632_s3 + $0x260] sm:$0xff] }
 0x51e   :  { %2734 = vperm.xlu1 %3676, %v2688_v47   ;;  %1791 = vperm.xlu0 %3675, %v1733_v30   ;;  %v3141_v30 = vsel %vm36_vm5, 1.0, %v5636_v3 }
 0x51f   :  { %v5086_v33 = vrot.slane %v3141_v30, %v4432_v15 }
 0x522   :  { %1796 = vperm.xlu1 %3676, %v1734_v36   ;;  %2739 = vperm.xlu0 %3675, %v2689_v38   ;;  %v2692_v36 = vld [vmem:[%s5632_s3 + $0x268] sm:$0xff]  ;;  %v1737_v38 = vld [vmem:[%s5632_s3 + $0x1f0] sm:$0xff] }
 0x526   :  { %2744 = vperm.xlu1 %3676, %v2690_v49   ;;  %1801 = vperm.xlu0 %3675, %v1735_v41  }
 0x528   :  { %v2061_v47 = vpop.permute.xlu0 %2060 }
 0x52a   :  { %1806 = vperm.xlu1 %3676, %v1736_v58   ;;  %2749 = vperm.xlu0 %3675, %v2691_v11   ;;  %v1738_v11 = vld [vmem:[%s5632_s3 + $0x1f8] sm:$0xff] }
 0x52c   :  { %v2063_v49 = vpop.permute.xlu1 %2062  ;;  %v2077_v41 = vpop.permute.xlu0 %2076 }
 0x52d   :  { %v2101_v62 = vsel %vm2092_vm6, %v2077_v41, %v2061_v47  ;;  %v2093_v58 = vsel %vm2092_vm6, %v2061_v47, %v2077_v41 }
 0x52e   :  { %2754 = vperm.xlu1 %3676, %v2692_v36   ;;  %1811 = vperm.xlu0 %3675, %v1737_v38   ;;  %v2113_v30 = vmul.f32 %v5086_v33, %v2101_v62  ;;  %v2114_v47 = vmul.f32 %v5086_v33, %v2093_v58  ;;  %v2996_v62 = vld [vmem:[%s5632_s3 + $0x280] sm:$0xff]  ;;  %v2998_v58 = vld [vmem:[%s5632_s3 + $0x290] sm:$0xff] }
 0x530   :  { %v2079_v9 = vpop.permute.xlu1 %2078  ;;  %v2065_v22 = vpop.permute.xlu0 %2064 }
 0x531   :  { %v2094_v3 = vsel %vm2092_vm6, %v2063_v49, %v2079_v9  ;;  %v2102_v36 = vsel %vm2092_vm6, %v2079_v9, %v2063_v49 }
 0x532   :  { %v2115_v38 = vmul.f32 %v5086_v33, %v2102_v36  ;;  %v2116_v41 = vmul.f32 %v5086_v33, %v2094_v3  ;;  %1816 = vperm.xlu1 %3676, %v1738_v11   ;;  %2759 = vperm.xlu0 %3675, %v2693_v37   ;;  %v2997_v37 = vld [vmem:[%s5632_s3 + $0x288] sm:$0xff] }
 0x534   :  { %v3407_v55 = vpack.c.bf16 %v2115_v38, %v2113_v30  ;;  %v2067_v0 = vpop.permute.xlu1 %2066  ;;  %v2081_v60 = vpop.permute.xlu0 %2080  ;;  %v3405_v9 = vpack.c.bf16 %v2116_v41, %v2114_v47 }
 0x535   :  { %v2103_v49 = vsel %vm2092_vm6, %v2081_v60, %v2065_v22  ;;  %v2095_v3 = vsel %vm2092_vm6, %v2065_v22, %v2081_v60 }
 0x536   :  { %2764 = vperm.xlu1 %3676, %v2694_v53   ;;  %3002 = vperm.xlu0 %3675, %v2996_v62   ;;  %v2117_v36 = vmul.f32 %v5086_v33, %v2103_v49  ;;  %v2118_v22 = vmul.f32 %v5086_v33, %v2095_v3 }
 0x537   :  { %3406 = vmatprep.subr.bf16.mxu0 %v3405_v9 }
 0x538   :  { %3408 = vmatpush1.bf16.msra.mxu0 %v3407_v55  ;;  %v2083_v11 = vpop.permute.xlu1 %2082  ;;  %v2069_v30 = vpop.permute.xlu0 %2068  ;;  %v2999_v55 = vld [vmem:[%s5632_s3 + $0x298] sm:$0xff] }
 0x539   :  { %v2096_v53 = vsel %vm2092_vm6, %v2067_v0, %v2083_v11  ;;  %v2104_v60 = vsel %vm2092_vm6, %v2083_v11, %v2067_v0 }
 0x53a   :  { %v2119_v47 = vmul.f32 %v5086_v33, %v2104_v60  ;;  %v2120_v38 = vmul.f32 %v5086_v33, %v2096_v53  ;;  %3007 = vperm.xlu1 %3676, %v2997_v37   ;;  %3012 = vperm.xlu0 %3675, %v2998_v58  }
 0x53c   :  { %v3411_v41 = vpack.c.bf16 %v2119_v47, %v2117_v36  ;;  %v2071_v62 = vpop.permute.xlu1 %2070  ;;  %v2085_v9 = vpop.permute.xlu0 %2084  ;;  %v3409_v49 = vpack.c.bf16 %v2120_v38, %v2118_v22 }
 0x53d   :  { %v2097_v0 = vsel %vm2092_vm6, %v2069_v30, %v2085_v9  ;;  %v2105_v3 = vsel %vm2092_vm6, %v2085_v9, %v2069_v30 }
 0x53e   :  { %3017 = vperm.xlu1 %3676, %v2999_v55   ;;  %3410 = vmatprep.subr.bf16.mxu0 %v3409_v49  ;;  %v2121_v53 = vmul.f32 %v5086_v33, %v2105_v3  ;;  %v2122_v60 = vmul.f32 %v5086_v33, %v2097_v0 }
 0x53f   :  { %3412 = vmatpush1.bf16.msra.mxu0 %v3411_v41 }
 0x540   :  { %v2087_v11 = vpop.permute.xlu1 %2086  ;;  %v2073_v37 = vpop.permute.xlu0 %2072 }
 0x541   :  { %v2098_v58 = vsel %vm2092_vm6, %v2071_v62, %v2087_v11  ;;  %v2106_v36 = vsel %vm2092_vm6, %v2087_v11, %v2071_v62 }
 0x542   :  { %v2123_v22 = vmul.f32 %v5086_v33, %v2106_v36  ;;  %v2124_v47 = vmul.f32 %v5086_v33, %v2098_v58 }
 0x544   :  { %v3415_v38 = vpack.c.bf16 %v2123_v22, %v2121_v53  ;;  %v2075_v55 = vpop.permute.xlu1 %2074  ;;  %v2089_v30 = vpop.permute.xlu0 %2088  ;;  %v3413_v41 = vpack.c.bf16 %v2124_v47, %v2122_v60 }
 0x545   :  { %v2099_v9 = vsel %vm2092_vm6, %v2073_v37, %v2089_v30  ;;  %v2107_v49 = vsel %vm2092_vm6, %v2089_v30, %v2073_v37  ;;  %v53_v30 = vadd.s32 2, %v4425_v27  ;;  %v2248_v27 = vld [vmem:[%s5634_s2 + $0x110] sm:$0xff] }
 0x546   :  { %3414 = vmatprep.subr.bf16.mxu0 %v3413_v41  ;;  %v2125_v58 = vmul.f32 %v5086_v33, %v2107_v49  ;;  %v2126_v36 = vmul.f32 %v5086_v33, %v2099_v9  ;;  %v5645_v9 = vpack.c.bf16 %v4873_v43, %v4866_v29 }
 0x547   :  { %3416 = vmatpush1.bf16.msra.mxu0 %v3415_v38  ;;  %vm55_vm7 = vcmp.lt.s32.totalorder %v53_v30, 128 }
 0x548   :  { %v2091_v62 = vpop.permute.xlu1 %2090  ;;  %v2162_v3 = vpop.permute.xlu0 %2161 }
 0x549   :  { %v2100_v0 = vsel %vm2092_vm6, %v2075_v55, %v2091_v62  ;;  %v2108_v11 = vsel %vm2092_vm6, %v2091_v62, %v2075_v55  ;;  %v5644_v55 = vpack.c.bf16 %v4879_v21, %v4876_v16  ;;  %v5648_v21 = vpack.c.bf16 %v4901_v14, %v4892_v54 }
 0x54a   :  { %v2127_v53 = vmul.f32 %v5086_v33, %v2108_v11  ;;  %v2128_v60 = vmul.f32 %v5086_v33, %v2100_v0  ;;  %v5646_v0 = vpack.c.bf16 %v4907_v63, %v4904_v44  ;;  %v5647_v11 = vmov 0.0  }
 0x54b   :  { %v5650_v54 = vpack.c.bf16 %v4929_v46, %v4920_v12 }
 0x54c   :  { %v3419_v22 = vpack.c.bf16 %v2127_v53, %v2125_v58  ;;  %v2164_v47 = vpop.permute.xlu1 %2163  ;;  %v2178_v37 = vpop.permute.xlu0 %2177  ;;  %v3417_v38 = vpack.c.bf16 %v2128_v60, %v2126_v36  ;;  %v3144_v58 = vsel %vm55_vm7, 1.0, %v5647_v11  ;;  %v5649_v53 = vpack.c.bf16 %v4935_v23, %v4932_v25 }
 0x54d   :  { %v2213_v29 = vrot.slane %v3144_v58, %v4432_v15  ;;  %v2202_v44 = vsel %vm2193_vm8, %v2178_v37, %v2162_v3  ;;  %v2194_v15 = vsel %vm2193_vm8, %v2162_v3, %v2178_v37  ;;  %v5652_v3 = vpack.c.bf16 %v4957_v13, %v4948_v10 }
 0x54e   :  { %3418 = vmatprep.subr.bf16.mxu0 %v3417_v38  ;;  %v5651_v38 = vpack.c.bf16 %v4963_v5, %v4960_v32 }
 0x54f   :  { %3420 = vmatpush1.bf16.msra.mxu0 %v3419_v22  ;;  %v2215_v14 = vmul.f32 %v2213_v29, %v2202_v44  ;;  %v2214_v46 = vmul.f32 %v2213_v29, %v2194_v15 }
 0x550   :  { %v2180_v41 = vpop.permute.xlu1 %2179  ;;  %3422 = vmatprep.subr.bf16.mxu0 %v5644_v55  ;;  %v2166_v49 = vpop.permute.xlu0 %2165 }
 0x551   :  { %v2203_v16 = vsel %vm2193_vm8, %v2180_v41, %v2164_v47  ;;  %v2195_v63 = vsel %vm2193_vm8, %v2164_v47, %v2180_v41 }
 0x552   :  { %v2217_v60 = vmul.f32 %v2213_v29, %v2203_v16  ;;  %v2216_v30 = vmul.f32 %v2213_v29, %v2195_v63 }
 0x553   :  { %3424 = vmatpush1.bf16.msra.mxu0 %v5645_v9 }
 0x554   :  { %v2168_v33 = vpop.permute.xlu1 %2167  ;;  %v2182_v62 = vpop.permute.xlu0 %2181  ;;  %3426 = vmatprep.subr.bf16.mxu0 %v5646_v0  ;;  %v3437_v12 = vpack.c.bf16 %v2217_v60, %v2215_v14  ;;  %v3439_v0 = vpack.c.bf16 %v2216_v30, %v2214_v46 }
 0x555   :  { %v2204_v47 = vsel %vm2193_vm8, %v2182_v62, %v2166_v49  ;;  %v2196_v37 = vsel %vm2193_vm8, %v2166_v49, %v2182_v62 }
 0x556   :  { %v2219_v9 = vmul.f32 %v2213_v29, %v2204_v47 }
 0x557   :  { %3428 = vmatpush1.bf16.msra.mxu0 %v5648_v21 }
 0x558   :  { %v2184_v43 = vpop.permute.xlu1 %2183  ;;  %v2170_v36 = vpop.permute.xlu0 %2169  ;;  %3430 = vmatprep.subr.bf16.mxu0 %v5649_v53 }
 0x559   :  { %v2205_v22 = vsel %vm2193_vm8, %v2184_v43, %v2168_v33  ;;  %v2197_v41 = vsel %vm2193_vm8, %v2168_v33, %v2184_v43  ;;  %v2218_v43 = vmul.f32 %v2213_v29, %v2196_v37  ;;  %v2249_v37 = vld [vmem:[%s5634_s2 + $0x118] sm:$0xff] }
 0x55a   :  { %v2221_v55 = vmul.f32 %v2213_v29, %v2205_v22  ;;  %v2220_v58 = vmul.f32 %v2213_v29, %v2197_v41 }
 0x55b   :  { %3432 = vmatpush1.bf16.msra.mxu0 %v5650_v54 }
 0x55c   :  { %v2172_v25 = vpop.permute.xlu1 %2171  ;;  %v2186_v23 = vpop.permute.xlu0 %2185  ;;  %3434 = vmatprep.subr.bf16.mxu0 %v5651_v38  ;;  %v3441_v13 = vpack.c.bf16 %v2221_v55, %v2219_v9  ;;  %v3443_v63 = vpack.c.bf16 %v2220_v58, %v2218_v43  ;;  %v2250_v9 = vld [vmem:[%s5634_s2 + $0x120] sm:$0xff]  ;;  %v2260_v43 = vld [vmem:[%s5634_s2 + $0x170] sm:$0xff] }
 0x55d   :  { %v2206_v16 = vsel %vm2193_vm8, %v2186_v23, %v2170_v36  ;;  %v2198_v49 = vsel %vm2193_vm8, %v2170_v36, %v2186_v23  ;;  %v2254_v58 = vld [vmem:[%s5634_s2 + $0x140] sm:$0xff] }
 0x55e   :  { %v2223_v62 = vmul.f32 %v2213_v29, %v2206_v16  ;;  %v2222_v54 = vmul.f32 %v2213_v29, %v2198_v49  ;;  %v2257_v16 = vld [vmem:[%s5634_s2 + $0x158] sm:$0xff]  ;;  %v2263_v49 = vld [vmem:[%s5634_s2 + $0x188] sm:$0xff] }
 0x55f   :  { %3436 = vmatpush1.bf16.msra.mxu0 %v5652_v3  ;;  %v2246_v3 = vld [vmem:[%s5634_s2 + $0x100] sm:$0xff] }
 0x560   :  { %v2188_v32 = vpop.permute.xlu1 %2187  ;;  %v2174_v5 = vpop.permute.xlu0 %2173  ;;  %3438 = vmatprep.subr.bf16.mxu0 %v3437_v12 }
 0x561   :  { %v2207_v33 = vsel %vm2193_vm8, %v2188_v32, %v2172_v25  ;;  %v2199_v21 = vsel %vm2193_vm8, %v2172_v25, %v2188_v32  ;;  %v2253_v32 = vld [vmem:[%s5634_s2 + $0x138] sm:$0xff] }
 0x562   :  { %v2225_v10 = vmul.f32 %v2213_v29, %v2207_v33  ;;  %v2224_v60 = vmul.f32 %v2213_v29, %v2199_v21  ;;  %v2256_v33 = vld [vmem:[%s5634_s2 + $0x150] sm:$0xff]  ;;  %v2259_v21 = vld [vmem:[%s5634_s2 + $0x168] sm:$0xff] }
 0x563   :  { %3440 = vmatpush1.bf16.msra.mxu0 %v3439_v0  ;;  %v2255_v0 = vld [vmem:[%s5634_s2 + $0x148] sm:$0xff] }
 0x564   :  { %v2176_v53 = vpop.permute.xlu1 %2175  ;;  %v2190_v44 = vpop.permute.xlu0 %2189  ;;  %3442 = vmatprep.subr.bf16.mxu0 %v3441_v13  ;;  %v3445_v22 = vpack.c.bf16 %v2225_v10, %v2223_v62  ;;  %v3447_v38 = vpack.c.bf16 %v2224_v60, %v2222_v54  ;;  %v2258_v10 = vld [vmem:[%s5634_s2 + $0x160] sm:$0xff]  ;;  %v2261_v13 = vld [vmem:[%s5634_s2 + $0x178] sm:$0xff]  ;;  %v2268_v54 = vld [vmem:[%s5634_s2 + $0x1b0] sm:$0xff] }
 0x565   :  { %v2200_v15 = vsel %vm2193_vm8, %v2174_v5, %v2190_v44  ;;  %v2208_v14 = vsel %vm2193_vm8, %v2190_v44, %v2174_v5  ;;  %v2252_v5 = vld [vmem:[%s5634_s2 + $0x130] sm:$0xff]  ;;  %v2262_v62 = vld [vmem:[%s5634_s2 + $0x180] sm:$0xff] }
 0x566   :  { %v2226_v30 = vmul.f32 %v2213_v29, %v2200_v15  ;;  %v2227_v47 = vmul.f32 %v2213_v29, %v2208_v14  ;;  %v2264_v44 = vld [vmem:[%s5634_s2 + $0x190] sm:$0xff]  ;;  %v2266_v60 = vld [vmem:[%s5634_s2 + $0x1a0] sm:$0xff]  ;;  %v2271_v15 = vld [vmem:[%s5634_s2 + $0x1c8] sm:$0xff] }
 0x567   :  { %3444 = vmatpush1.bf16.msra.mxu0 %v3443_v63  ;;  %v2267_v63 = vld [vmem:[%s5634_s2 + $0x1a8] sm:$0xff]  ;;  %v2270_v14 = vld [vmem:[%s5634_s2 + $0x1c0] sm:$0xff] }
 0x568   :  { %v2192_v25 = vpop.permute.xlu1 %2191  ;;  %3446 = vmatprep.subr.bf16.mxu0 %v3445_v22  ;;  %v2269_v22 = vld [vmem:[%s5634_s2 + $0x1b8] sm:$0xff] }
 0x569   :  { %v2201_v36 = vsel %vm2193_vm8, %v2176_v53, %v2192_v25  ;;  %v2209_v23 = vsel %vm2193_vm8, %v2192_v25, %v2176_v53  ;;  %v2265_v53 = vld [vmem:[%s5634_s2 + $0x198] sm:$0xff] }
 0x56a   :  { %v2228_v41 = vmul.f32 %v2213_v29, %v2201_v36  ;;  %v2229_v55 = vmul.f32 %v2213_v29, %v2209_v23  ;;  %v2251_v29 = vld [vmem:[%s5634_s2 + $0x128] sm:$0xff]  ;;  %v2273_v25 = vld [vmem:[%s5634_s2 + $0x1d8] sm:$0xff]  ;;  %v2274_v23 = vld [vmem:[%s5634_s2 + $0x1e0] sm:$0xff] }
 0x56b   :  { %3448 = vmatpush1.bf16.msra.mxu0 %v3447_v38  ;;  %v2272_v38 = vld [vmem:[%s5634_s2 + $0x1d0] sm:$0xff]  ;;  %v2275_v36 = vld [vmem:[%s5634_s2 + $0x1e8] sm:$0xff] }
 0x56c   :  { %v3451_v12 = vpack.c.bf16 %v2228_v41, %v2226_v30  ;;  %v3449_v46 = vpack.c.bf16 %v2229_v55, %v2227_v47  ;;  %v2277_v30 = vld [vmem:[%s5634_s2 + $0x1f8] sm:$0xff]  ;;  %v2276_v47 = vld [vmem:[%s5634_s2 + $0x1f0] sm:$0xff]  ;;  %v1715_v41 = vld [vmem:[%s5633_s1 + $0x1c0] sm:$0xff] }
 0x56d   :  { %3233 = vmatmul.mubr.msk.f32.gmra.mrb[60].mxu1 %vm115_vm0, %v1715_v41  ;;  %v1716_v55 = vld [vmem:[%s5633_s1 + $0x1c8] sm:$0xff] }
 0x56e   :  { %3450 = vmatprep.subr.bf16.mxu0 %v3449_v46  ;;  %1985 = vmatprep.mubr.f32.mxu1 %v5647_v11  ;;  %v1718_v46 = vld [vmem:[%s5633_s1 + $0x1d8] sm:$0xff] }
 0x56f   :  { %3452 = vmatpush1.bf16.msra.mxu0 %v3451_v12  ;;  %v1717_v12 = vld [vmem:[%s5633_s1 + $0x1d0] sm:$0xff] }
 0x571   :  { %3234 = vmatmul.mubr.msk.f32.gmra.mrb[62].mxu1 %vm115_vm0, %v1716_v55 }
 0x572   :  { %2439 = vmatmul.mubr.f32.vlgmr.msra.gmra.mrb[48].mxu0 %v2246_v3  ;;  %1991 = vmatprep.mubr.f32.mxu1 %v5647_v11  ;;  %v1719_v3 = vld [vmem:[%s5633_s1 + $0x1e0] sm:$0xff] }
 0x573   :  { %3242 = vmatprep.mubr.msk.f32.mxu0 %vm115_vm0, %v2249_v37  ;;  %v1720_v37 = vld [vmem:[%s5633_s1 + $0x1e8] sm:$0xff] }
 0x575   :  { %3235 = vmatmul.mubr.msk.f32.gmra.mrb[64].mxu1 %vm115_vm0, %v1717_v12 }
 0x576   :  { %2445 = vmatmul.mubr.f32.gmra.mrb[50].mxu0 %v2248_v27  ;;  %1997 = vmatprep.mubr.f32.mxu1 %v5647_v11  ;;  %v1721_v27 = vld [vmem:[%s5633_s1 + $0x1f0] sm:$0xff] }
 0x577   :  { %3243 = vmatprep.mubr.msk.f32.mxu0 %vm115_vm0, %v2251_v29  ;;  %v1722_v29 = vld [vmem:[%s5633_s1 + $0x1f8] sm:$0xff] }
 0x579   :  { %3236 = vmatmul.mubr.msk.f32.gmra.mrb[66].mxu1 %vm115_vm0, %v1718_v46 }
 0x57a   :  { %2451 = vmatmul.mubr.f32.gmra.mrb[52].mxu0 %v2250_v9  ;;  %2003 = vmatprep.mubr.f32.mxu1 %v5647_v11  ;;  %v714_v9 = vpop.permute.xlu0 %713 }
 0x57b   :  { %3244 = vmatprep.mubr.msk.f32.mxu0 %vm115_vm0, %v2253_v32  ;;  %v5365_v32 = vpop.permute.xlu1 %718 }
 0x57d   :  { %3237 = vmatmul.mubr.msk.f32.gmra.mrb[68].mxu1 %vm115_vm0, %v1719_v3 }
 0x57e   :  { %2457 = vmatmul.mubr.f32.gmra.mrb[54].mxu0 %v2252_v5  ;;  %2009 = vmatprep.mubr.f32.mxu1 %v5647_v11  ;;  %v5367_v5 = vpop.permute.xlu0 %723 }
 0x57f   :  { %3245 = vmatprep.mubr.msk.f32.mxu0 %vm115_vm0, %v2255_v0  ;;  %v5369_v0 = vpop.permute.xlu1 %728 }
 0x581   :  { %3238 = vmatmul.mubr.msk.f32.gmra.mrb[70].mxu1 %vm115_vm0, %v1720_v37 }
 0x582   :  { %2463 = vmatmul.mubr.f32.gmra.mrb[56].mxu0 %v2254_v58  ;;  %2015 = vmatprep.mubr.f32.mxu1 %v5647_v11  ;;  %v5371_v58 = vpop.permute.xlu0 %733 }
 0x583   :  { %3246 = vmatprep.mubr.msk.f32.mxu0 %vm115_vm0, %v2257_v16  ;;  %v5373_v16 = vpop.permute.xlu1 %738 }
 0x585   :  { %3239 = vmatmul.mubr.msk.f32.gmra.mrb[72].mxu1 %vm115_vm0, %v1721_v27 }
 0x586   :  { %2469 = vmatmul.mubr.f32.gmra.mrb[58].mxu0 %v2256_v33  ;;  %2021 = vmatprep.mubr.f32.mxu1 %v5647_v11  ;;  %v5375_v33 = vpop.permute.xlu0 %743 }
 0x587   :  { %3247 = vmatprep.mubr.msk.f32.mxu0 %vm115_vm0, %v2259_v21  ;;  %v5377_v21 = vpop.permute.xlu1 %748 }
 0x589   :  { %3240 = vmatmul.mubr.msk.f32.gmra.mrb[74].mxu1 %vm115_vm0, %v1722_v29 }
 0x58a   :  { %2475 = vmatmul.mubr.f32.gmra.mrb[60].mxu0 %v2258_v10  ;;  %2879 = vmatprep.mubr.f32.mxu1 %v5647_v11  ;;  %v674_v10 = vpop.permute.xlu0 %673 }
 0x58b   :  { %3248 = vmatprep.mubr.msk.f32.mxu0 %vm115_vm0, %v2261_v13 }
 0x58e   :  { %2481 = vmatmul.mubr.f32.gmra.mrb[62].mxu0 %v2260_v43 }
 0x58f   :  { %3249 = vmatprep.mubr.msk.f32.mxu0 %vm115_vm0, %v2263_v49  ;;  %v679_v49 = vpop.permute.xlu1 %678 }
 0x592   :  { %2487 = vmatmul.mubr.f32.gmra.mrb[64].mxu0 %v2262_v62  ;;  %v684_v62 = vpop.permute.xlu0 %683 }
 0x593   :  { %3250 = vmatprep.mubr.msk.f32.mxu0 %vm115_vm0, %v2265_v53 }
 0x596   :  { %2493 = vmatmul.mubr.f32.gmra.mrb[66].mxu0 %v2264_v44 }
 0x597   :  { %3251 = vmatprep.mubr.msk.f32.mxu0 %vm115_vm0, %v2267_v63  ;;  %v1022_v63 = vadd.f32 %v4801_v31, %v684_v62 }
 0x59a   :  { %2499 = vmatmul.mubr.f32.gmra.mrb[68].mxu0 %v2266_v60  ;;  %v1024_v60 = vadd.f32 %v4807_v6, %v684_v62 }
 0x59b   :  { %3252 = vmatprep.mubr.msk.f32.mxu0 %vm115_vm0, %v2269_v22  ;;  %v689_v22 = vpop.permute.xlu1 %688 }
 0x59e   :  { %2505 = vmatmul.mubr.f32.gmra.mrb[70].mxu0 %v2268_v54 }
 0x59f   :  { %3253 = vmatprep.mubr.msk.f32.mxu0 %vm115_vm0, %v2271_v15  ;;  %v699_v12 = vpop.permute.xlu1 %698 }
 0x5a2   :  { %2511 = vmatmul.mubr.f32.gmra.mrb[72].mxu0 %v2270_v14 }
 0x5a3   :  { %3254 = vmatprep.mubr.msk.f32.mxu0 %vm115_vm0, %v2273_v25 }
 0x5a6   :  { %2517 = vmatmul.mubr.f32.gmra.mrb[74].mxu0 %v2272_v38  ;;  %v1028_v38 = vadd.f32 %v4810_v61, %v689_v22  ;;  %v1040_v61 = vadd.f32 %v4819_v45, %v699_v12 }
 0x5a7   :  { %3255 = vmatprep.mubr.msk.f32.mxu0 %vm115_vm0, %v2275_v36  ;;  %v1030_v36 = vadd.f32 %v4812_v52, %v689_v22  ;;  %v1042_v52 = vadd.f32 %v4821_v51, %v699_v12 }
 0x5aa   :  { %2523 = vmatmul.mubr.f32.gmra.mrb[76].mxu0 %v2274_v23  ;;  %v694_v23 = vpop.permute.xlu0 %693 }
 0x5ab   :  { %3256 = vmatprep.mubr.msk.f32.mxu0 %vm115_vm0, %v2277_v30  ;;  %v1034_v31 = vadd.f32 %v4815_v39, %v694_v23  ;;  %v1036_v6 = vadd.f32 %v4817_v50, %v694_v23 }
 0x5ae   :  { %2529 = vmatmul.mubr.f32.gmra.mrb[78].mxu0 %v2276_v47  ;;  %v704_v29 = vpop.permute.xlu0 %703 }
 0x5af   :  { %v1046_v39 = vadd.f32 %v4823_v4, %v704_v29  ;;  %v1048_v50 = vadd.f32 %v4825_v57, %v704_v29  ;;  %v1058_v57 = vadd.f32 %v4831_v56, %v714_v9 }
 0x645   :  { %v2440_v13 = vpop.f32.mrb[48].mxu0 }
 0x646   :  { %v2442_v43 = vpop.f32.mrb[49].mxu0 }
 0x647   :  { %v3526_v12 = vadd.f32 %v2442_v43, %v674_v10 }
 0x649   :  { %v2446_v53 = vpop.f32.mrb[50].mxu0 }
 0x64a   :  { %v2448_v44 = vpop.f32.mrb[51].mxu0 }
 0x64d   :  { %v2452_v54 = vpop.f32.mrb[52].mxu0 }
 0x64e   :  { %v2453_v15 = vadd.f32 %v2452_v54, %v1022_v63  ;;  %v2454_v14 = vpop.f32.mrb[53].mxu0  ;;  %v709_v54 = vpop.permute.xlu1 %708 }
 0x64f   :  { %v5381_v25 = vadd.f32 %v2454_v14, %v1024_v60  ;;  %v1052_v45 = vadd.f32 %v4827_v7, %v709_v54  ;;  %v1054_v51 = vadd.f32 %v4829_v8, %v709_v54 }
 0x651   :  { %v2458_v30 = vpop.f32.mrb[54].mxu0 }
 0x652   :  { %v5385_v47 = vadd.f32 %v2458_v30, %v1028_v38  ;;  %v2460_v41 = vpop.f32.mrb[55].mxu0 }
 0x653   :  { %v5387_v55 = vadd.f32 %v2460_v41, %v1030_v36  ;;  %v3525_v41 = vadd.f32 %v2440_v13, %v674_v10  ;;  %v1064_v13 = vadd.f32 %v4835_v24, %v5365_v32  ;;  %v1066_v10 = vadd.f32 %v4837_v40, %v5365_v32 }
 0x654   :  { %v1072_v24 = vadd.f32 %v4841_v1, %v5367_v5  ;;  %v1078_v1 = vadd.f32 %v4845_v48, %v5369_v0 }
 0x655   :  { %v2464_v46 = vpop.f32.mrb[56].mxu0  ;;  %3773 = vtanh.f32 %v3525_v41  ;;  %v1082_v41 = vadd.f32 %v4847_v18, %v5371_v58 }
 0x656   :  { %v5391_v3 = vadd.f32 %v2464_v46, %v1034_v31  ;;  %v2466_v37 = vpop.f32.mrb[57].mxu0  ;;  %v3527_v46 = vadd.f32 %v2446_v53, %v679_v49  ;;  %3775 = vtanh.f32 %v3526_v12  ;;  %v1070_v53 = vadd.f32 %v4839_v59, %v5367_v5 }
 0x657   :  { %v5393_v27 = vadd.f32 %v2466_v37, %v1036_v6  ;;  %v1060_v37 = vadd.f32 %v4833_v34, %v714_v9 }
 0x658   :  { %3777 = vtanh.f32 %v3527_v46 }
 0x659   :  { %v2470_v62 = vpop.f32.mrb[58].mxu0 }
 0x65a   :  { %v5397_v63 = vadd.f32 %v2470_v62, %v1040_v61  ;;  %v2472_v60 = vpop.f32.mrb[59].mxu0  ;;  %v3528_v61 = vadd.f32 %v2448_v44, %v679_v49 }
 0x65b   :  { %v5399_v22 = vadd.f32 %v2472_v60, %v1042_v52 }
 0x65c   :  { %3779 = vtanh.f32 %v3528_v61 }
 0x65d   :  { %v2476_v14 = vpop.f32.mrb[60].mxu0 }
 0x65e   :  { %v5403_v38 = vadd.f32 %v2476_v14, %v1046_v39  ;;  %v2478_v36 = vpop.f32.mrb[61].mxu0  ;;  %v1076_v14 = vadd.f32 %v4843_v17, %v5369_v0 }
 0x65f   :  { %v5405_v23 = vadd.f32 %v2478_v36, %v1048_v50  ;;  %v5424_v54 = vpop.eup %3773 }
 0x661   :  { %v2482_v30 = vpop.f32.mrb[62].mxu0 }
 0x662   :  { %v5409_v31 = vadd.f32 %v2482_v30, %v1052_v45  ;;  %v2484_v6 = vpop.f32.mrb[63].mxu0 }
 0x663   :  { %v5411_v4 = vadd.f32 %v2484_v6, %v1054_v51 }
 0x665   :  { %v2488_v52 = vpop.f32.mrb[64].mxu0 }
 0x666   :  { %v2489_v29 = vadd.f32 %v2488_v52, %v1058_v57  ;;  %v2490_v7 = vpop.f32.mrb[65].mxu0 }
 0x667   :  { %v2491_v8 = vadd.f32 %v2490_v7, %v1060_v37  ;;  %v1088_v7 = vadd.f32 %v4851_v19, %v5373_v16 }
 0x668   :  { %v3257_v62 = vmul.f32 -1.442695, %v2489_v29 }
 0x669   :  { %v3258_v56 = vmul.f32 -1.442695, %v2491_v8  ;;  %v2494_v43 = vpop.f32.mrb[66].mxu0 }
 0x66a   :  { %3781 = vpow2.f32 %v3257_v62  ;;  %v2495_v34 = vadd.f32 %v2494_v43, %v1064_v13  ;;  %v2496_v9 = vpop.f32.mrb[67].mxu0 }
 0x66b   :  { %3783 = vpow2.f32 %v3258_v56  ;;  %v2497_v49 = vadd.f32 %v2496_v9, %v1066_v10 }
 0x66c   :  { %3785 = vtanh.f32 %v2453_v15  ;;  %v3259_v44 = vmul.f32 -1.442695, %v2495_v34  ;;  %v5429_v15 = vpop.eup %3775 }
 0x66d   :  { %3787 = vtanh.f32 %v5381_v25  ;;  %v3260_v60 = vmul.f32 -1.442695, %v2497_v49  ;;  %v2500_v40 = vpop.f32.mrb[68].mxu0  ;;  %v5434_v36 = vpop.eup %3777 }
 0x66e   :  { %3789 = vpow2.f32 %v3259_v44  ;;  %v2501_v32 = vadd.f32 %v2500_v40, %v1070_v53  ;;  %v2502_v39 = vpop.f32.mrb[69].mxu0  ;;  %v5436_v30 = vpop.eup %3779  ;;  %v1094_v53 = vadd.f32 %v4855_v20, %v5375_v33  ;;  %v1096_v44 = vadd.f32 %v4857_v26, %v5375_v33 }
 0x66f   :  { %3791 = vpow2.f32 %v3260_v60  ;;  %v2503_v50 = vadd.f32 %v2502_v39, %v1072_v24 }
 0x670   :  { %3793 = vtanh.f32 %v5385_v47  ;;  %v3261_v59 = vmul.f32 -1.442695, %v2501_v32 }
 0x671   :  { %3795 = vtanh.f32 %v5387_v55  ;;  %v3262_v5 = vmul.f32 -1.442695, %v2503_v50  ;;  %v2506_v25 = vpop.f32.mrb[70].mxu0  ;;  %v1084_v55 = vadd.f32 %v4849_v2, %v5371_v58 }
 0x672   :  { %3797 = vpow2.f32 %v3261_v59  ;;  %v2507_v45 = vadd.f32 %v2506_v25, %v1076_v14  ;;  %v2508_v51 = vpop.f32.mrb[71].mxu0  ;;  %v1102_v25 = vadd.f32 %v4861_v35, %v5377_v21 }
 0x673   :  { %3799 = vpow2.f32 %v3262_v5  ;;  %v2509_v17 = vadd.f32 %v2508_v51, %v1078_v1  ;;  %v1100_v5 = vadd.f32 %v4859_v28, %v5377_v21 }
 0x674   :  { %v3782_v47 = vpop.eup %3781  ;;  %3801 = vtanh.f32 %v5391_v3  ;;  %v3263_v48 = vmul.f32 -1.442695, %v2507_v45 }
 0x675   :  { %v3784_v0 = vpop.eup %3783  ;;  %3803 = vtanh.f32 %v5393_v27  ;;  %v2599_v6 = vadd.f32 1.0, %v3782_v47  ;;  %v3264_v12 = vmul.f32 -1.442695, %v2509_v17  ;;  %v2512_v57 = vpop.f32.mrb[72].mxu0  ;;  %v1090_v27 = vadd.f32 %v4853_v42, %v5373_v16 }
 0x676   :  { %v5444_v46 = vpop.eup %3785  ;;  %v2600_v37 = vadd.f32 1.0, %v3784_v0  ;;  %3805 = vpow2.f32 %v3263_v48  ;;  %v2513_v61 = vadd.f32 %v2512_v57, %v1082_v41  ;;  %v2514_v52 = vpop.f32.mrb[73].mxu0 }
 0x677   :  { %v5446_v29 = vpop.eup %3787  ;;  %3807 = vrcp.f32 %v2599_v6  ;;  %v2515_v18 = vadd.f32 %v2514_v52, %v1084_v55 }
 0x678   :  { %v3790_v3 = vpop.eup %3789  ;;  %3809 = vrcp.f32 %v2600_v37  ;;  %v3265_v2 = vmul.f32 -1.442695, %v2513_v61 }
 0x679   :  { %v3792_v58 = vpop.eup %3791  ;;  %v2601_v8 = vadd.f32 1.0, %v3790_v3  ;;  %3811 = vpow2.f32 %v3264_v12  ;;  %v3266_v13 = vmul.f32 -1.442695, %v2515_v18  ;;  %v2518_v62 = vpop.f32.mrb[74].mxu0 }
 0x67a   :  { %v5452_v10 = vpop.eup %3793  ;;  %v2602_v56 = vadd.f32 1.0, %v3792_v58  ;;  %3813 = vpow2.f32 %v3265_v2  ;;  %v2519_v43 = vadd.f32 %v2518_v62, %v1088_v7  ;;  %v2520_v34 = vpop.f32.mrb[75].mxu0 }
 0x67b   :  { %v5454_v9 = vpop.eup %3795  ;;  %3815 = vrcp.f32 %v2601_v8  ;;  %v2521_v19 = vadd.f32 %v2520_v34, %v1090_v27 }
 0x67c   :  { %v3798_v49 = vpop.eup %3797  ;;  %3817 = vrcp.f32 %v2602_v56  ;;  %v3267_v42 = vmul.f32 -1.442695, %v2519_v43 }
 0x67d   :  { %v3800_v16 = vpop.eup %3799  ;;  %v2603_v24 = vadd.f32 1.0, %v3798_v49  ;;  %3819 = vpow2.f32 %v3266_v13  ;;  %v3268_v60 = vmul.f32 -1.442695, %v2521_v19  ;;  %v2524_v40 = vpop.f32.mrb[76].mxu0 }
 0x67e   :  { %v5460_v32 = vpop.eup %3801  ;;  %v2604_v39 = vadd.f32 1.0, %v3800_v16  ;;  %3821 = vpow2.f32 %v3267_v42  ;;  %v2525_v50 = vadd.f32 %v2524_v40, %v1094_v53  ;;  %v2526_v14 = vpop.f32.mrb[77].mxu0 }
 0x67f   :  { %v5462_v59 = vpop.eup %3803  ;;  %3823 = vrcp.f32 %v2603_v24  ;;  %v2527_v20 = vadd.f32 %v2526_v14, %v1096_v44 }
 0x680   :  { %v3806_v1 = vpop.eup %3805  ;;  %3825 = vrcp.f32 %v2604_v39  ;;  %v3269_v26 = vmul.f32 -1.442695, %v2525_v50 }
 0x681   :  { %v3808_v33 = vpop.eup %3807  ;;  %v2605_v45 = vadd.f32 1.0, %v3806_v1  ;;  %3827 = vpow2.f32 %v3268_v60  ;;  %v3270_v51 = vmul.f32 -1.442695, %v2527_v20  ;;  %v2530_v17 = vpop.f32.mrb[78].mxu0 }
 0x682   :  { %v3810_v47 = vpop.eup %3809  ;;  %3829 = vpow2.f32 %v3269_v26  ;;  %v2531_v41 = vadd.f32 %v2530_v17, %v1100_v5  ;;  %v2532_v48 = vpop.f32.mrb[79].mxu0  ;;  %v2647_v0 = vmul.f32 %v3808_v33, %v5424_v54 }
 0x683   :  { %v3812_v55 = vpop.eup %3811  ;;  %3831 = vrcp.f32 %v2605_v45  ;;  %v2533_v6 = vadd.f32 %v2532_v48, %v1102_v25  ;;  %v2648_v28 = vmul.f32 %v3810_v47, %v5429_v15 }
 0x684   :  { %v3814_v12 = vpop.eup %3813  ;;  %v2606_v57 = vadd.f32 1.0, %v3812_v55  ;;  %3833 = vpow2.f32 %v3270_v51  ;;  %v3271_v37 = vmul.f32 -1.442695, %v2531_v41 }
 0x685   :  { %v3816_v35 = vpop.eup %3815  ;;  %3835 = vtanh.f32 %v5397_v63  ;;  %v2607_v21 = vadd.f32 1.0, %v3814_v12  ;;  %v3272_v61 = vmul.f32 -1.442695, %v2533_v6  ;;  %v2663_v6 = vld [vmem:[%s5633_s1 + $0x200] sm:$0xff]  ;;  %v2665_v12 = vld [vmem:[%s5633_s1 + $0x210] sm:$0xff] }
 0x686   :  { %v3818_v52 = vpop.eup %3817  ;;  %3837 = vrcp.f32 %v2606_v57  ;;  %v2649_v18 = vmul.f32 %v3816_v35, %v5434_v36  ;;  %v2666_v57 = vld [vmem:[%s5633_s1 + $0x218] sm:$0xff]  ;;  %v2668_v35 = vld [vmem:[%s5633_s1 + $0x228] sm:$0xff] }
 0x687   :  { %v3820_v3 = vpop.eup %3819  ;;  %3839 = vrcp.f32 %v2607_v21  ;;  %v2650_v54 = vmul.f32 %v3818_v52, %v5436_v30  ;;  %v2669_v21 = vld [vmem:[%s5633_s1 + $0x230] sm:$0xff]  ;;  %v2671_v52 = vld [vmem:[%s5633_s1 + $0x240] sm:$0xff] }
 0x688   :  { %v3822_v7 = vpop.eup %3821  ;;  %v2608_v2 = vadd.f32 1.0, %v3820_v3  ;;  %3841 = vpow2.f32 %v3271_v37  ;;  %v3455_v15 = vpack.c.bf16 %v2649_v18, %v2647_v0  ;;  %v2667_v37 = vld [vmem:[%s5633_s1 + $0x220] sm:$0xff]  ;;  %v2672_v18 = vld [vmem:[%s5633_s1 + $0x248] sm:$0xff]  ;;  %v2673_v3 = vld [vmem:[%s5633_s1 + $0x250] sm:$0xff] }
 0x689   :  { %v3824_v58 = vpop.eup %3823  ;;  %v2609_v27 = vadd.f32 1.0, %v3822_v7  ;;  %3843 = vpow2.f32 %v3272_v61  ;;  %v3453_v8 = vpack.c.bf16 %v2650_v54, %v2648_v28  ;;  %v2664_v28 = vld [vmem:[%s5633_s1 + $0x208] sm:$0xff]  ;;  %v2670_v61 = vld [vmem:[%s5633_s1 + $0x238] sm:$0xff]  ;;  %v2675_v7 = vld [vmem:[%s5633_s1 + $0x260] sm:$0xff] }
 0x68a   :  { %v3826_v13 = vpop.eup %3825  ;;  %3845 = vrcp.f32 %v2608_v2  ;;  %v2651_v63 = vmul.f32 %v3824_v58, %v5444_v46  ;;  %v2674_v54 = vld [vmem:[%s5633_s1 + $0x258] sm:$0xff]  ;;  %v2676_v2 = vld [vmem:[%s5633_s1 + $0x268] sm:$0xff] }
 0x68b   :  { %v3828_v62 = vpop.eup %3827  ;;  %3847 = vrcp.f32 %v2609_v27  ;;  %3454 = vmatprep.subr.bf16.mxu1 %v3453_v8  ;;  %v2652_v36 = vmul.f32 %v3826_v13, %v5446_v29  ;;  %v2678_v58 = vld [vmem:[%s5633_s1 + $0x278] sm:$0xff] }
 0x68c   :  { %v3830_v56 = vpop.eup %3829  ;;  %3849 = vtanh.f32 %v5399_v22  ;;  %v2610_v30 = vadd.f32 1.0, %v3828_v62  ;;  %3456 = vmatpush1.bf16.msra.mxu1 %v3455_v15  ;;  %v2677_v15 = vld [vmem:[%s5633_s1 + $0x270] sm:$0xff] }
 0x68d   :  { %v3832_v43 = vpop.eup %3831  ;;  %3851 = vtanh.f32 %v5403_v38  ;;  %v2611_v34 = vadd.f32 1.0, %v3830_v56  ;;  %v1782_v56 = vpop.permute.xlu0 %1781 }
 0x68e   :  { %v3834_v19 = vpop.eup %3833  ;;  %3853 = vrcp.f32 %v2610_v30  ;;  %v2653_v49 = vmul.f32 %v3832_v43, %v5452_v10 }
 0x68f   :  { %v3836_v53 = vpop.eup %3835  ;;  %3855 = vrcp.f32 %v2611_v34  ;;  %v2612_v46 = vadd.f32 1.0, %v3834_v19  ;;  %v1787_v34 = vpop.permute.xlu1 %1786 }
 0x690   :  { %v3838_v42 = vpop.eup %3837  ;;  %3857 = vtanh.f32 %v5405_v23  ;;  %v3459_v29 = vpack.c.bf16 %v2653_v49, %v2651_v63 }
 0x691   :  { %v3840_v16 = vpop.eup %3839  ;;  %3859 = vrcp.f32 %v2612_v46  ;;  %v2654_v22 = vmul.f32 %v3838_v42, %v5454_v9 }
 0x692   :  { %v3842_v44 = vpop.eup %3841  ;;  %v2655_v24 = vmul.f32 %v3840_v16, %v5460_v32  ;;  %3861 = vtanh.f32 %v5409_v31 }
 0x693   :  { %v3844_v38 = vpop.eup %3843  ;;  %v2613_v60 = vadd.f32 1.0, %v3842_v44  ;;  %v3457_v40 = vpack.c.bf16 %v2654_v22, %v2652_v36  ;;  %3863 = vtanh.f32 %v5411_v4  ;;  %v2735_v46 = vpop.permute.xlu1 %2734 }
 0x694   :  { %v3846_v10 = vpop.eup %3845  ;;  %v2614_v39 = vadd.f32 1.0, %v3844_v38 }
 0x695   :  { %v3848_v50 = vpop.eup %3847  ;;  %3865 = vrcp.f32 %v2613_v60  ;;  %3458 = vmatprep.subr.bf16.mxu1 %v3457_v40  ;;  %v2656_v23 = vmul.f32 %v3846_v10, %v5462_v59 }
 0x696   :  { %v3850_v14 = vpop.eup %3849  ;;  %3867 = vrcp.f32 %v2614_v39  ;;  %3460 = vmatpush1.bf16.msra.mxu1 %v3459_v29  ;;  %v2657_v9 = vmul.f32 %v3848_v50, %v3836_v53  ;;  %v2730_v53 = vpop.permute.xlu0 %2729 }
 0x697   :  { %v3852_v20 = vpop.eup %3851  ;;  %v3585_v50 = vadd.f32 %v2730_v53, %v1782_v56 }
 0x698   :  { %v3854_v32 = vpop.eup %3853  ;;  %v3463_v1 = vpack.c.bf16 %v2657_v9, %v2655_v24  ;;  %v1797_v24 = vpop.permute.xlu1 %1796 }
 0x699   :  { %v3856_v5 = vpop.eup %3855  ;;  %v2658_v31 = vmul.f32 %v3854_v32, %v3850_v14  ;;  %v3589_v14 = vadd.f32 %v2735_v46, %v1787_v34 }
 0x69a   :  { %v3858_v26 = vpop.eup %3857  ;;  %v2659_v33 = vmul.f32 %v3856_v5, %v3852_v20  ;;  %v1792_v16 = vpop.permute.xlu0 %1791 }
 0x69b   :  { %v3860_v25 = vpop.eup %3859  ;;  %v3461_v45 = vpack.c.bf16 %v2658_v31, %v2656_v23 }
 0x69c   :  { %v2660_v4 = vmul.f32 %v3860_v25, %v3858_v26  ;;  %v3862_v51 = vpop.eup %3861  ;;  %v2745_v10 = vpop.permute.xlu1 %2744  ;;  %v5653_v25 = vld [vmem:[#allocation3_spill] sm:$0xff] }
 0x69d   :  { %3462 = vmatprep.subr.bf16.mxu1 %v3461_v45  ;;  %v3864_v17 = vpop.eup %3863 }
 0x69e   :  { %3464 = vmatpush1.bf16.msra.mxu1 %v3463_v1  ;;  %v2740_v40 = vpop.permute.xlu0 %2739 }
 0x69f   :  { %v3866_v47 = vpop.eup %3865 }
 0x6a0   :  { %v3868_v59 = vpop.eup %3867  ;;  %v2661_v41 = vmul.f32 %v3866_v47, %v3862_v51  ;;  %v1807_v26 = vpop.permute.xlu1 %1806  ;;  %v5654_v51 = vld [vmem:[#allocation4_spill] sm:$0xff] }
 0x6a1   :  { %v2662_v48 = vmul.f32 %v3868_v59, %v3864_v17 }
 0x6a2   :  { %v3467_v0 = vpack.c.bf16 %v2661_v41, %v2659_v33  ;;  %v1802_v20 = vpop.permute.xlu0 %1801  ;;  %v3593_v41 = vadd.f32 %v2740_v40, %v1792_v16 }
 0x6a3   :  { %v3465_v55 = vpack.c.bf16 %v2662_v48, %v2660_v4 }
 0x6a5   :  { %3466 = vmatprep.subr.bf16.mxu1 %v3465_v55 }
 0x6a6   :  { %3468 = vmatpush1.bf16.msra.mxu1 %v3467_v0  ;;  %v2750_v55 = vpop.permute.xlu0 %2749 }
 0x6a9   :  { %3273 = vmatmul.mubr.msk.f32.vlgmr.msra.gmra.mrb[76].mxu1 %vm115_vm0, %v2663_v6 }
 0x6aa   :  { %2883 = vmatprep.mubr.f32.mxu1 %v5647_v11 }
 0x6ad   :  { %3274 = vmatmul.mubr.msk.f32.gmra.mrb[78].mxu1 %vm115_vm0, %v2664_v28  ;;  %v3597_v28 = vadd.f32 %v2745_v10, %v1797_v24 }
 0x6ae   :  { %2887 = vmatprep.mubr.f32.mxu1 %v5647_v11 }
 0x6b1   :  { %3275 = vmatmul.mubr.msk.f32.gmra.mrb[80].mxu1 %vm115_vm0, %v2665_v12 }
 0x6b2   :  { %2891 = vmatprep.mubr.f32.mxu1 %v5647_v11 }
 0x6b5   :  { %3276 = vmatmul.mubr.msk.f32.gmra.mrb[82].mxu1 %vm115_vm0, %v2666_v57  ;;  %v2755_v57 = vpop.permute.xlu1 %2754 }
 0x6b6   :  { %2895 = vmatprep.mubr.f32.mxu1 %v5647_v11 }
 0x6b9   :  { %3277 = vmatmul.mubr.msk.f32.gmra.mrb[84].mxu1 %vm115_vm0, %v2667_v37 }
 0x6ba   :  { %2899 = vmatprep.mubr.f32.mxu1 %v5647_v11 }
 0x6bd   :  { %3278 = vmatmul.mubr.msk.f32.gmra.mrb[86].mxu1 %vm115_vm0, %v2668_v35 }
 0x6be   :  { %2903 = vmatprep.mubr.f32.mxu1 %v5647_v11 }
 0x6c1   :  { %3279 = vmatmul.mubr.msk.f32.gmra.mrb[88].mxu1 %vm115_vm0, %v2669_v21 }
 0x6c2   :  { %2907 = vmatprep.mubr.f32.mxu1 %v5647_v11 }
 0x6c5   :  { %3280 = vmatmul.mubr.msk.f32.gmra.mrb[90].mxu1 %vm115_vm0, %v2670_v61 }
 0x6c6   :  { %2911 = vmatprep.mubr.f32.mxu1 %v5647_v11 }
 0x6c9   :  { %3281 = vmatmul.mubr.msk.f32.gmra.mrb[60].mxu1 %vm115_vm0, %v2671_v52 }
 0x6ca   :  { %2917 = vmatprep.mubr.f32.mxu1 %v5647_v11 }
 0x6cd   :  { %3282 = vmatmul.mubr.msk.f32.gmra.mrb[62].mxu1 %vm115_vm0, %v2672_v18 }
 0x6ce   :  { %2923 = vmatprep.mubr.f32.mxu1 %v5647_v11 }
 0x6d1   :  { %3283 = vmatmul.mubr.msk.f32.gmra.mrb[64].mxu1 %vm115_vm0, %v2673_v3 }
 0x6d2   :  { %2929 = vmatprep.mubr.f32.mxu1 %v5647_v11 }
 0x6d5   :  { %3284 = vmatmul.mubr.msk.f32.gmra.mrb[66].mxu1 %vm115_vm0, %v2674_v54  ;;  %v1812_v54 = vpop.permute.xlu0 %1811 }
 0x6d6   :  { %2935 = vmatprep.mubr.f32.mxu1 %v5647_v11 }
 0x6d9   :  { %3285 = vmatmul.mubr.msk.f32.gmra.mrb[68].mxu1 %vm115_vm0, %v2675_v7 }
 0x6da   :  { %2941 = vmatprep.mubr.f32.mxu1 %v5647_v11 }
 0x6dd   :  { %3286 = vmatmul.mubr.msk.f32.gmra.mrb[70].mxu1 %vm115_vm0, %v2676_v2 }
 0x6de   :  { %2947 = vmatprep.mubr.f32.mxu1 %v5647_v11 }
 0x6e1   :  { %3287 = vmatmul.mubr.msk.f32.gmra.mrb[72].mxu1 %vm115_vm0, %v2677_v15 }
 0x6e2   :  { %2953 = vmatprep.mubr.f32.mxu1 %v5647_v11 }
 0x6e5   :  { %3288 = vmatmul.mubr.msk.f32.gmra.mrb[74].mxu1 %vm115_vm0, %v2678_v58  ;;  %v3601_v58 = vadd.f32 %v2750_v55, %v1802_v20 }
 0x6e6   :  { %3096 = vmatprep.mubr.f32.mxu1 %v5647_v11 }
 0x77c   :  { %v2881_v27 = vpop.f32.mrb[76].mxu1 }
 0x77d   :  { %v2882_v8 = vpop.f32.mrb[77].mxu1 }
 0x780   :  { %v2885_v13 = vpop.f32.mrb[78].mxu1 }
 0x781   :  { %v2886_v63 = vpop.f32.mrb[79].mxu1  ;;  %v1817_v13 = vpop.permute.xlu1 %1816 }
 0x784   :  { %v2889_v62 = vpop.f32.mrb[80].mxu1 }
 0x785   :  { %v2890_v36 = vpop.f32.mrb[81].mxu1  ;;  %v3605_v62 = vadd.f32 %v2755_v57, %v1807_v26 }
 0x788   :  { %v2893_v30 = vpop.f32.mrb[82].mxu1 }
 0x789   :  { %v2894_v43 = vpop.f32.mrb[83].mxu1 }
 0x78c   :  { %v2897_v19 = vpop.f32.mrb[84].mxu1 }
 0x78d   :  { %v2898_v49 = vpop.f32.mrb[85].mxu1  ;;  %v2760_v19 = vpop.permute.xlu0 %2759 }
 0x790   :  { %v2901_v42 = vpop.f32.mrb[86].mxu1 }
 0x791   :  { %v2902_v29 = vpop.f32.mrb[87].mxu1  ;;  %v2765_v42 = vpop.permute.xlu1 %2764 }
 0x792   :  { %v3613_v40 = vadd.f32 %v2765_v42, %v1817_v13 }
 0x794   :  { %v2905_v22 = vpop.f32.mrb[88].mxu1 }
 0x795   :  { %v2906_v44 = vpop.f32.mrb[89].mxu1 }
 0x796   :  { %v3609_v44 = vadd.f32 %v2760_v19, %v1812_v54 }
 0x798   :  { %v2909_v38 = vpop.f32.mrb[90].mxu1 }
 0x799   :  { %v2910_v60 = vpop.f32.mrb[91].mxu1 }
 0x79c   :  { %v2913_v39 = vpop.f32.mrb[60].mxu1 }
 0x79d   :  { %v2915_v23 = vpop.f32.mrb[61].mxu1  ;;  %v3586_v9 = vadd.f32 %v3585_v50, %v2913_v39 }
 0x79e   :  { %v3588_v32 = vadd.f32 %v3585_v50, %v2915_v23 }
 0x79f   :  { %v2976_v45 = vmul.f32 %v3586_v9, %v5653_v25 }
 0x7a0   :  { %v2919_v1 = vpop.f32.mrb[62].mxu1  ;;  %v2977_v17 = vmul.f32 %v3588_v32, %v5654_v51 }
 0x7a1   :  { %v3590_v5 = vadd.f32 %v3589_v14, %v2919_v1  ;;  %v2921_v31 = vpop.f32.mrb[63].mxu1 }
 0x7a2   :  { %v3592_v33 = vadd.f32 %v3589_v14, %v2921_v31 }
 0x7a3   :  { %v2978_v4 = vmul.f32 %v3590_v5, %v5653_v25 }
 0x7a4   :  { %v2979_v47 = vmul.f32 %v3592_v33, %v5654_v51  ;;  %v2925_v59 = vpop.f32.mrb[64].mxu1  ;;  %v2992_v33 = vld [vmem:[%s5633_s1 + $0x280] sm:$0xff] }
 0x7a5   :  { %v3471_v48 = vpack.c.bf16 %v2978_v4, %v2976_v45  ;;  %v2927_v0 = vpop.f32.mrb[65].mxu1  ;;  %v3594_v12 = vadd.f32 %v3593_v41, %v2925_v59  ;;  %v2993_v45 = vld [vmem:[%s5633_s1 + $0x288] sm:$0xff]  ;;  %v2994_v4 = vld [vmem:[%s5633_s1 + $0x290] sm:$0xff] }
 0x7a6   :  { %v3469_v6 = vpack.c.bf16 %v2979_v47, %v2977_v17  ;;  %v3596_v37 = vadd.f32 %v3593_v41, %v2927_v0  ;;  %v2995_v17 = vld [vmem:[%s5633_s1 + $0x298] sm:$0xff]  ;;  %v3003_v47 = vpop.permute.xlu0 %3002 }
 0x7a7   :  { %v2980_v18 = vmul.f32 %v3594_v12, %v5653_v25 }
 0x7a8   :  { %v2931_v35 = vpop.f32.mrb[66].mxu1  ;;  %3470 = vmatprep.subr.bf16.mxu1 %v3469_v6  ;;  %v2981_v7 = vmul.f32 %v3596_v37, %v5654_v51  ;;  %v3008_v6 = vpop.permute.xlu1 %3007 }
 0x7a9   :  { %v3598_v21 = vadd.f32 %v3597_v28, %v2931_v35  ;;  %v2933_v61 = vpop.f32.mrb[67].mxu1  ;;  %3472 = vmatpush1.bf16.msra.mxu1 %v3471_v48 }
 0x7aa   :  { %v3600_v52 = vadd.f32 %v3597_v28, %v2933_v61 }
 0x7ab   :  { %v2982_v3 = vmul.f32 %v3598_v21, %v5653_v25  ;;  %v3013_v21 = vpop.permute.xlu0 %3012 }
 0x7ac   :  { %v2983_v2 = vmul.f32 %v3600_v52, %v5654_v51  ;;  %v2937_v15 = vpop.f32.mrb[68].mxu1 }
 0x7ad   :  { %v3475_v27 = vpack.c.bf16 %v2982_v3, %v2980_v18  ;;  %v2939_v8 = vpop.f32.mrb[69].mxu1  ;;  %v3602_v36 = vadd.f32 %v3601_v58, %v2937_v15 }
 0x7ae   :  { %v3473_v63 = vpack.c.bf16 %v2983_v2, %v2981_v7  ;;  %v3604_v56 = vadd.f32 %v3601_v58, %v2939_v8  ;;  %v3018_v2 = vpop.permute.xlu1 %3017 }
 0x7af   :  { %v2984_v53 = vmul.f32 %v3602_v36, %v5653_v25 }
 0x7b0   :  { %v2943_v30 = vpop.f32.mrb[70].mxu1  ;;  %3474 = vmatprep.subr.bf16.mxu1 %v3473_v63  ;;  %v2985_v29 = vmul.f32 %v3604_v56, %v5654_v51 }
 0x7b1   :  { %v3606_v43 = vadd.f32 %v3605_v62, %v2943_v30  ;;  %v2945_v34 = vpop.f32.mrb[71].mxu1  ;;  %3476 = vmatpush1.bf16.msra.mxu1 %v3475_v27 }
 0x7b2   :  { %v3608_v49 = vadd.f32 %v3605_v62, %v2945_v34 }
 0x7b3   :  { %v2986_v46 = vmul.f32 %v3606_v43, %v5653_v25 }
 0x7b4   :  { %v2987_v16 = vmul.f32 %v3608_v49, %v5654_v51  ;;  %v2949_v22 = vpop.f32.mrb[72].mxu1 }
 0x7b5   :  { %v3479_v24 = vpack.c.bf16 %v2986_v46, %v2984_v53  ;;  %v2951_v38 = vpop.f32.mrb[73].mxu1  ;;  %v3610_v10 = vadd.f32 %v3609_v44, %v2949_v22 }
 0x7b6   :  { %v3477_v60 = vpack.c.bf16 %v2987_v16, %v2985_v29  ;;  %v3612_v39 = vadd.f32 %v3609_v44, %v2951_v38 }
 0x7b7   :  { %v2988_v20 = vmul.f32 %v3610_v10, %v5653_v25 }
 0x7b8   :  { %v2955_v50 = vpop.f32.mrb[74].mxu1  ;;  %3478 = vmatprep.subr.bf16.mxu1 %v3477_v60  ;;  %v2989_v1 = vmul.f32 %v3612_v39, %v5654_v51 }
 0x7b9   :  { %v3614_v23 = vadd.f32 %v3613_v40, %v2955_v50  ;;  %v2957_v14 = vpop.f32.mrb[75].mxu1  ;;  %3480 = vmatpush1.bf16.msra.mxu1 %v3479_v24 }
 0x7ba   :  { %v3616_v9 = vadd.f32 %v3613_v40, %v2957_v14 }
 0x7bb   :  { %v2990_v32 = vmul.f32 %v3614_v23, %v5653_v25 }
 0x7bc   :  { %v2991_v5 = vmul.f32 %v3616_v9, %v5654_v51 }
 0x7bd   :  { %v3483_v31 = vpack.c.bf16 %v2990_v32, %v2988_v20 }
 0x7be   :  { %v3481_v26 = vpack.c.bf16 %v2991_v5, %v2989_v1 }
 0x7c0   :  { %3482 = vmatprep.subr.bf16.mxu1 %v3481_v26 }
 0x7c1   :  { %3484 = vmatpush1.bf16.msra.mxu1 %v3483_v31 }
 0x7c4   :  { %3289 = vmatmul.mubr.msk.f32.vlgmr.msra.gmra.mrb[92].mxu1 %vm115_vm0, %v2992_v33 }
 0x7c5   :  { %3102 = vmatprep.mubr.f32.mxu1 %v5647_v11 }
 0x7c8   :  { %3290 = vmatmul.mubr.msk.f32.gmra.mrb[94].mxu1 %vm115_vm0, %v2993_v45 }
 0x7c9   :  { %3108 = vmatprep.mubr.f32.mxu1 %v5647_v11 }
 0x7cc   :  { %3291 = vmatmul.mubr.msk.f32.gmra.mrb[96].mxu1 %vm115_vm0, %v2994_v4 }
 0x7cd   :  { %3114 = vmatprep.mubr.f32.mxu1 %v5647_v11 }
 0x7d0   :  { %3292 = vmatmul.mubr.msk.f32.gmra.mrb[98].mxu1 %vm115_vm0, %v2995_v17 }
 0x897   :  { %v3098_v59 = vpop.f32.mrb[92].mxu1 }
 0x898   :  { %v3099_v41 = vadd.f32 %v3098_v59, %v3003_v47  ;;  %v3100_v48 = vpop.f32.mrb[93].mxu1 }
 0x899   :  { %v3101_v0 = vadd.f32 %v3100_v48, %v3003_v47 }
 0x89a   :  { %v3121_v55 = vmul.f32 %v3099_v41, %v5653_v25 }
 0x89b   :  { %v3122_v28 = vmul.f32 %v3101_v0, %v5654_v51  ;;  %v3104_v12 = vpop.f32.mrb[94].mxu1 }
 0x89c   :  { %3129 = vst [vmem:[%s5635_s4] sm:$0xff] %v3121_v55  ;;  %v3105_v11 = vadd.f32 %v3104_v12, %v3008_v6  ;;  %v3106_v57 = vpop.f32.mrb[95].mxu1 }
 0x89d   :  { %3130 = vst [vmem:[%s5635_s4 + $0x8] sm:$0xff] %v3122_v28  ;;  %v3107_v37 = vadd.f32 %v3106_v57, %v3008_v6 }
 0x89e   :  { %v3123_v35 = vmul.f32 %v3105_v11, %v5653_v25 }
 0x89f   :  { %v3124_v61 = vmul.f32 %v3107_v37, %v5654_v51  ;;  %v3110_v52 = vpop.f32.mrb[96].mxu1 }
 0x8a0   :  { %3131 = vst [vmem:[%s5635_s4 + $0x10] sm:$0xff] %v3123_v35  ;;  %v3111_v18 = vadd.f32 %v3110_v52, %v3013_v21  ;;  %v3112_v3 = vpop.f32.mrb[97].mxu1 }
 0x8a1   :  { %3132 = vst [vmem:[%s5635_s4 + $0x18] sm:$0xff] %v3124_v61  ;;  %v3113_v54 = vadd.f32 %v3112_v3, %v3013_v21 }
 0x8a2   :  { %v3125_v7 = vmul.f32 %v3111_v18, %v5653_v25 }
 0x8a3   :  { %v3126_v15 = vmul.f32 %v3113_v54, %v5654_v51  ;;  %v3116_v58 = vpop.f32.mrb[98].mxu1 }
 0x8a4   :  { %3133 = vst [vmem:[%s5635_s4 + $0x20] sm:$0xff] %v3125_v7  ;;  %v3117_v27 = vadd.f32 %v3116_v58, %v3018_v2  ;;  %v3118_v8 = vpop.f32.mrb[99].mxu1 }
 0x8a5   :  { %3134 = vst [vmem:[%s5635_s4 + $0x28] sm:$0xff] %v3126_v15  ;;  %v3119_v13 = vadd.f32 %v3118_v8, %v3018_v2 }
 0x8a6   :  { %v3127_v63 = vmul.f32 %v3117_v27, %v5653_v25 }
 0x8a7   :  { %v3128_v62 = vmul.f32 %v3119_v13, %v5654_v51 }
 0x8a8   :  { %3135 = vst [vmem:[%s5635_s4 + $0x30] sm:$0xff] %v3127_v63 }
 0x8a9   :  { %3136 = vst [vmem:[%s5635_s4 + $0x38] sm:$0xff] %v3128_v62 }

</bundles_post_ra>
